<compile_context>
chip_gen: v5e
topology: v5e:2x2
jax: 0.10.0
libtpu: 0.0.40
codegen_flags: <defaults>
</compile_context>

<pallas_src>
import jax
import jax.numpy as jnp
from jax.experimental import pallas as pl
from jax.experimental.pallas import tpu as pltpu

# ----- model hyper-parameters (PyTorch defaults, small demo sizes) -----------
INPUT_DIM = 8            # tabular feature count == pos_encoder sequence length
NUM_CLASSES = 3
D_MODEL = 64
NHEAD = 4
NUM_LAYERS = 2
DIM_FF = 128
HEAD_DIM = D_MODEL // NHEAD
BATCH = 8                # multiple of 8 keeps the (S*B, D) slab sublane-aligned
LN_EPS = 1e-5
C_PAD = 128              # lane-padded logits width (sliced back to NUM_CLASSES)
SB = INPUT_DIM * BATCH   # residual-stream rows


# ----------------------------- Pallas kernel --------------------------------
def _tabular_transformer_kernel(
    x_ref, wemb_ref, bemb_ref, pos_ref, mask_ref,
    wqkv_ref, bqkv_ref, wo_ref, bo_ref,
    n1w_ref, n1b_ref, n2w_ref, n2b_ref,
    w1_ref, b1_ref, w2_ref, b2_ref,
    fcw_ref, fcb_ref, out_ref):
    S, B, H, Dh, D = INPUT_DIM, BATCH, NHEAD, HEAD_DIM, D_MODEL
    L = wqkv_ref.shape[0]
    f32, bf16 = jnp.float32, jnp.bfloat16

    def mm(a_bf16, w):
        # bf16 MXU inputs, f32 accumulation.
        return jnp.dot(a_bf16, w, preferred_element_type=f32)

    def layer_norm(v, w, b):
        mu = jnp.mean(v, axis=-1, keepdims=True)
        c = v - mu
        var = jnp.mean(c * c, axis=-1, keepdims=True)
        return c * jax.lax.rsqrt(var + LN_EPS) * w + b

    # -1e30 for cross-feature-token (cross s-block) pairs, 0 inside a block.
    neg_mask = mask_ref[...]                                      # (S*B, S*B) f32

    # embedding + positional encoding; residual stream is 2-D (S*B, D) f32
    h = mm(x_ref[...], wemb_ref[...]) + bemb_ref[...] + pos_ref[...]

    for l in range(L):
        # ---- fused QKV projection: one lane-dense (S*B, D) @ (D, 3D) matmul --
        # (1/sqrt(Dh) already folded into the Q weight columns / bias host-side)
        qkv = mm(h.astype(bf16), wqkv_ref[l]) + bqkv_ref[l]       # (S*B, 3D) f32
        q = qkv[:, 0 * D:1 * D].astype(bf16)
        k = qkv[:, 1 * D:2 * D].astype(bf16)
        v = qkv[:, 2 * D:3 * D].astype(bf16)

        # ---- per-head attention with full (S*B, S*B) scores + block mask -----
        # attention runs over axis B (PyTorch dim 0, batch_first=False); the
        # mask keeps only same-feature-token key rows, so softmax over dense
        # 64-lane rows reproduces the per-(s, head) softmax over B keys exactly.
        ctx_parts = []
        for hh in range(H):
            qh = q[:, hh * Dh:(hh + 1) * Dh]                      # (S*B, Dh)
            kh = k[:, hh * Dh:(hh + 1) * Dh]
            vh = v[:, hh * Dh:(hh + 1) * Dh]
            sc = jax.lax.dot_general(qh, kh, (((1,), (1,)), ((), ())),
                                     preferred_element_type=f32)   # (S*B, S*B)
            sc = sc + neg_mask
            sc = sc - jnp.max(sc, axis=-1, keepdims=True)
            p = jnp.exp(sc)                                        # masked -> 0
            p = p * pl.reciprocal(jnp.sum(p, axis=-1, keepdims=True), approx=True)
            ctx_parts.append(mm(p.astype(bf16), vh))               # (S*B, Dh)
        ctx = jnp.concatenate(ctx_parts, axis=-1)                  # (S*B, D)

        attn = mm(ctx.astype(bf16), wo_ref[l]) + bo_ref[l]
        # dropout layers are identity in eval mode
        h = layer_norm(h + attn, n1w_ref[l], n1b_ref[l])

        # ---- position-wise feed-forward --------------------------------------
        ff = jnp.maximum(mm(h.astype(bf16), w1_ref[l]) + b1_ref[l], 0.0)   # ReLU
        ff = mm(ff.astype(bf16), w2_ref[l]) + b2_ref[l]
        h = layer_norm(h + ff, n2w_ref[l], n2b_ref[l])

    # mean over feature tokens folded into fcw (1/S), so a plain sum suffices
    pooled = jnp.sum(h.reshape(S, B, D), axis=0)                   # (B, D)
    out_ref[...] = mm(pooled.astype(bf16), fcw_ref[...]) + fcb_ref[...]   # (B, C_PAD)


# ----------------------- parameters (PyTorch layout) -------------------------
def init_params(key):
    kit = iter(jax.random.split(key, 8 + NUM_LAYERS * 12))

    def nrm(shape, scale=0.05):
        return scale * jax.random.normal(next(kit), shape, jnp.float32)

    P = {
        'emb_w': nrm((D_MODEL, INPUT_DIM)),
        'emb_b': nrm((D_MODEL,)),
        'pos':   jax.random.normal(next(kit), (1, INPUT_DIM, D_MODEL), jnp.float32),
        'fc_w':  nrm((NUM_CLASSES, D_MODEL)),
        'fc_b':  nrm((NUM_CLASSES,)),
        'layers': [],
    }
    for _ in range(NUM_LAYERS):
        P['layers'].append({
            'in_w':  nrm((3 * D_MODEL, D_MODEL)),
            'in_b':  nrm((3 * D_MODEL,)),
            'out_w': nrm((D_MODEL, D_MODEL)),
            'out_b': nrm((D_MODEL,)),
            'ln1_w': 1.0 + nrm((D_MODEL,), 0.02),
            'ln1_b': nrm((D_MODEL,), 0.02),
            'l1_w':  nrm((DIM_FF, D_MODEL)),
            'l1_b':  nrm((DIM_FF,)),
            'l2_w':  nrm((D_MODEL, DIM_FF)),
            'l2_b':  nrm((D_MODEL,)),
            'ln2_w': 1.0 + nrm((D_MODEL,), 0.02),
            'ln2_b': nrm((D_MODEL,), 0.02),
        })
    return P


# ------------- one-time weight preprocessing (hoisted out of the call) -------
def prepare_params(P):
    D, FF, S, B = D_MODEL, DIM_FF, INPUT_DIM, BATCH
    C = P['fc_w'].shape[0]
    layers = P['layers']
    bf16, f32 = jnp.bfloat16, jnp.float32

    def stack(fn):
        return jnp.stack([fn(lp) for lp in layers])

    # fold the attention scale into the Q columns of the fused QKV projection
    scale = 1.0 / (HEAD_DIM ** 0.5)
    col_scale = jnp.concatenate(
        [jnp.full((D,), scale, f32), jnp.ones((2 * D,), f32)])          # (3D,)

    # block-diagonal attention mask over the s-major row ordering
    idx = jnp.arange(S * B)
    neg_mask = jnp.where((idx[:, None] // B) == (idx[None, :] // B),
                         0.0, -1e30).astype(f32)                        # (SB, SB)

    prep = {
        'wemb': P['emb_w'].T.astype(bf16),                              # (F, D)
        'bemb': P['emb_b'].reshape(1, D).astype(f32),
        'pos':  jnp.broadcast_to(jnp.transpose(P['pos'], (1, 0, 2)),
                                 (S, B, D)).reshape(S * B, D).astype(f32),
        'mask': neg_mask,
        'wqkv': stack(lambda lp: lp['in_w'].T * col_scale[None, :]).astype(bf16),
        'bqkv': stack(lambda lp: (lp['in_b'] * col_scale).reshape(1, 3 * D)).astype(f32),
        'wo':   stack(lambda lp: lp['out_w'].T).astype(bf16),           # (L, D, D)
        'bo':   stack(lambda lp: lp['out_b'].reshape(1, D)).astype(f32),
        'n1w':  stack(lambda lp: lp['ln1_w'].reshape(1, D)).astype(f32),
        'n1b':  stack(lambda lp: lp['ln1_b'].reshape(1, D)).astype(f32),
        'n2w':  stack(lambda lp: lp['ln2_w'].reshape(1, D)).astype(f32),
        'n2b':  stack(lambda lp: lp['ln2_b'].reshape(1, D)).astype(f32),
        'w1':   stack(lambda lp: lp['l1_w'].T).astype(bf16),            # (L, D, FF)
        'b1':   stack(lambda lp: lp['l1_b'].reshape(1, FF)).astype(f32),
        'w2':   stack(lambda lp: lp['l2_w'].T).astype(bf16),            # (L, FF, D)
        'b2':   stack(lambda lp: lp['l2_b'].reshape(1, D)).astype(f32),
        # lane-padded classifier head with 1/S of the mean folded in
        'fcw':  (jnp.zeros((D, C_PAD), f32).at[:, :C]
                 .set(P['fc_w'].T / S)).astype(bf16),
        'fcb':  jnp.zeros((1, C_PAD), f32).at[:, :C].set(P['fc_b'].reshape(1, C)),
    }
    return prep


# --------------------------- per-call forward (jit) --------------------------
@jax.jit
def tabular_transformer_forward(x, prep):
    B, S, F = x.shape
    if (B, S, F) != (BATCH, INPUT_DIM, INPUT_DIM):
        raise ValueError(
            f"kernel compiled for x shape {(BATCH, INPUT_DIM, INPUT_DIM)}, got {(B, S, F)}")

    # canonical (S*B, F) row ordering (S-major) — only per-call data op
    x2d = jnp.transpose(x, (1, 0, 2)).reshape(S * B, F).astype(jnp.bfloat16)

    inputs = [x2d, prep['wemb'], prep['bemb'], prep['pos'], prep['mask'],
              prep['wqkv'], prep['bqkv'], prep['wo'], prep['bo'],
              prep['n1w'], prep['n1b'], prep['n2w'], prep['n2b'],
              prep['w1'], prep['b1'], prep['w2'], prep['b2'],
              prep['fcw'], prep['fcb']]

    out_padded = pl.pallas_call(
        _tabular_transformer_kernel,
        out_shape=jax.ShapeDtypeStruct((B, C_PAD), jnp.float32),
        in_specs=[pl.BlockSpec(memory_space=pltpu.MemorySpace.VMEM)] * len(inputs),
        out_specs=pl.BlockSpec(memory_space=pltpu.MemorySpace.VMEM),
    )(*inputs)
    return out_padded[:, :NUM_CLASSES]


# -------------------------- pure-JAX reference -------------------------------
def _ln_ref(v, w, b):
    mu = v.mean(axis=-1, keepdims=True)
    var = ((v - mu) ** 2).mean(axis=-1, keepdims=True)
    return (v - mu) / jnp.sqrt(var + LN_EPS) * w + b


def ref_forward(x, P):
    D, Dh = D_MODEL, HEAD_DIM
    h = x @ P['emb_w'].T + P['emb_b']          # (B, S, D)
    h = h + P['pos']                           # broadcast (1, S, D)
    Bn, Sn, _ = h.shape
    for lp in P['layers']:
        qkv = h @ lp['in_w'].T + lp['in_b']
        q, k, v = jnp.split(qkv, 3, axis=-1)

        def heads(t):
            return t.reshape(Bn, Sn, NHEAD, Dh).transpose(1, 2, 0, 3)  # (S,H,B,Dh)

        qh, kh, vh = heads(q), heads(k), heads(v)
        sc = jnp.einsum('shad,shbd->shab', qh, kh) / (Dh ** 0.5)
        at = jax.nn.softmax(sc, axis=-1)
        ctx = jnp.einsum('shab,shbd->shad', at, vh)
        ctx = ctx.transpose(2, 0, 1, 3).reshape(Bn, Sn, D)
        h = _ln_ref(h + ctx @ lp['out_w'].T + lp['out_b'], lp['ln1_w'], lp['ln1_b'])
        ff = jax.nn.relu(h @ lp['l1_w'].T + lp['l1_b']) @ lp['l2_w'].T + lp['l2_b']
        h = _ln_ref(h + ff, lp['ln2_w'], lp['ln2_b'])
    return h.mean(axis=1) @ P['fc_w'].T + P['fc_b']


# --------------------------------- main ---------------------------------------
if __name__ == "__main__":
    key = jax.random.PRNGKey(0)
    pkey, xkey = jax.random.split(key)
    params = init_params(pkey)
    prepared = prepare_params(params)   # one-time weight plumbing (not per-call)

    # x: (batch, input_dim, input_dim) — middle axis must equal input_dim so that
    # `x + pos_encoder` broadcasts exactly as in the PyTorch forward.
    x = jax.random.normal(xkey, (BATCH, INPUT_DIM, INPUT_DIM), jnp.float32)

    out = tabular_transformer_forward(x, prepared)
    out = jax.block_until_ready(out)
    assert out.shape == (BATCH, NUM_CLASSES), out.shape

    ref = ref_forward(x, params)
    err = float(jnp.max(jnp.abs(out - ref)))
    if not bool(jnp.allclose(out, ref, atol=2e-2, rtol=2e-2)):
        raise AssertionError(f"Pallas kernel mismatch vs reference, max abs err = {err}")
    print("KERNEL_OK")
</pallas_src>

<mosaic_0001>
module attributes {stable_mosaic.version = 11 : i64} {
  func.func @_tabular_transformer_kernel(%arg0: memref<64x8xbf16, #tpu.memory_space<vmem>>, %arg1: memref<8x64xbf16, #tpu.memory_space<vmem>>, %arg2: memref<1x64xf32, #tpu.memory_space<vmem>>, %arg3: memref<64x64xf32, #tpu.memory_space<vmem>>, %arg4: memref<64x64xf32, #tpu.memory_space<vmem>>, %arg5: memref<2x64x192xbf16, #tpu.memory_space<vmem>>, %arg6: memref<2x1x192xf32, #tpu.memory_space<vmem>>, %arg7: memref<2x64x64xbf16, #tpu.memory_space<vmem>>, %arg8: memref<2x1x64xf32, #tpu.memory_space<vmem>>, %arg9: memref<2x1x64xf32, #tpu.memory_space<vmem>>, %arg10: memref<2x1x64xf32, #tpu.memory_space<vmem>>, %arg11: memref<2x1x64xf32, #tpu.memory_space<vmem>>, %arg12: memref<2x1x64xf32, #tpu.memory_space<vmem>>, %arg13: memref<2x64x128xbf16, #tpu.memory_space<vmem>>, %arg14: memref<2x1x128xf32, #tpu.memory_space<vmem>>, %arg15: memref<2x128x64xbf16, #tpu.memory_space<vmem>>, %arg16: memref<2x1x64xf32, #tpu.memory_space<vmem>>, %arg17: memref<64x128xbf16, #tpu.memory_space<vmem>>, %arg18: memref<1x128xf32, #tpu.memory_space<vmem>>, %arg19: memref<8x128xf32, #tpu.memory_space<vmem>>) attributes {dimension_semantics = [], scalar_prefetch = 0 : i64, scratch_operands = 0 : i64, tpu.core_type = #tpu.core_type<tc>} {
    %c0 = arith.constant 0 : index
    %c0_0 = arith.constant 0 : index
    %0 = vector.load %arg4[%c0, %c0_0] : memref<64x64xf32, #tpu.memory_space<vmem>>, vector<64x64xf32>
    %c0_1 = arith.constant 0 : index
    %c0_2 = arith.constant 0 : index
    %1 = vector.load %arg0[%c0_1, %c0_2] : memref<64x8xbf16, #tpu.memory_space<vmem>>, vector<64x8xbf16>
    %c0_3 = arith.constant 0 : index
    %c0_4 = arith.constant 0 : index
    %2 = vector.load %arg1[%c0_3, %c0_4] : memref<8x64xbf16, #tpu.memory_space<vmem>>, vector<8x64xbf16>
    %cst = arith.constant dense<0.000000e+00> : vector<64x64xf32>
    %3 = tpu.matmul %1, %2, %cst {dimension_numbers = #tpu.dot_dimension_numbers<[1], [0], [0], [1], [0, 0, 1, 1], [], []>} : vector<64x8xbf16>, vector<8x64xbf16>, vector<64x64xf32> -> vector<64x64xf32>
    %c0_5 = arith.constant 0 : index
    %c0_6 = arith.constant 0 : index
    %4 = vector.load %arg2[%c0_5, %c0_6] : memref<1x64xf32, #tpu.memory_space<vmem>>, vector<1x64xf32>
    %5 = vector.broadcast %4 : vector<1x64xf32> to vector<64x64xf32>
    %6 = arith.addf %3, %5 : vector<64x64xf32>
    %c0_7 = arith.constant 0 : index
    %c0_8 = arith.constant 0 : index
    %7 = vector.load %arg3[%c0_7, %c0_8] : memref<64x64xf32, #tpu.memory_space<vmem>>, vector<64x64xf32>
    %8 = arith.addf %6, %7 : vector<64x64xf32>
    %9 = arith.truncf %8 : vector<64x64xf32> to vector<64x64xbf16>
    %c0_9 = arith.constant 0 : index
    %c0_10 = arith.constant 0 : index
    %c0_11 = arith.constant 0 : index
    %10 = vector.load %arg5[%c0_9, %c0_10, %c0_11] : memref<2x64x192xbf16, #tpu.memory_space<vmem>>, vector<1x64x192xbf16>
    %11 = vector.shape_cast %10 : vector<1x64x192xbf16> to vector<64x192xbf16>
    %cst_12 = arith.constant dense<0.000000e+00> : vector<64x192xf32>
    %12 = tpu.matmul %9, %11, %cst_12 {dimension_numbers = #tpu.dot_dimension_numbers<[1], [0], [0], [1], [0, 0, 1, 1], [], []>} : vector<64x64xbf16>, vector<64x192xbf16>, vector<64x192xf32> -> vector<64x192xf32>
    %c0_13 = arith.constant 0 : index
    %c0_14 = arith.constant 0 : index
    %c0_15 = arith.constant 0 : index
    %13 = vector.load %arg6[%c0_13, %c0_14, %c0_15] : memref<2x1x192xf32, #tpu.memory_space<vmem>>, vector<1x1x192xf32>
    %14 = vector.shape_cast %13 : vector<1x1x192xf32> to vector<1x192xf32>
    %15 = vector.broadcast %14 : vector<1x192xf32> to vector<64x192xf32>
    %16 = arith.addf %12, %15 : vector<64x192xf32>
    %17 = vector.extract_strided_slice %16 {offsets = [0, 0], sizes = [64, 64], strides = [1, 1]} : vector<64x192xf32> to vector<64x64xf32>
    %18 = arith.truncf %17 : vector<64x64xf32> to vector<64x64xbf16>
    %19 = vector.extract_strided_slice %16 {offsets = [0, 64], sizes = [64, 64], strides = [1, 1]} : vector<64x192xf32> to vector<64x64xf32>
    %20 = arith.truncf %19 : vector<64x64xf32> to vector<64x64xbf16>
    %21 = vector.extract_strided_slice %16 {offsets = [0, 128], sizes = [64, 64], strides = [1, 1]} : vector<64x192xf32> to vector<64x64xf32>
    %22 = arith.truncf %21 : vector<64x64xf32> to vector<64x64xbf16>
    %23 = vector.extract_strided_slice %18 {offsets = [0, 0], sizes = [64, 16], strides = [1, 1]} : vector<64x64xbf16> to vector<64x16xbf16>
    %24 = vector.extract_strided_slice %20 {offsets = [0, 0], sizes = [64, 16], strides = [1, 1]} : vector<64x64xbf16> to vector<64x16xbf16>
    %25 = vector.extract_strided_slice %22 {offsets = [0, 0], sizes = [64, 16], strides = [1, 1]} : vector<64x64xbf16> to vector<64x16xbf16>
    %cst_16 = arith.constant dense<0.000000e+00> : vector<64x64xf32>
    %26 = tpu.matmul %23, %24, %cst_16 {dimension_numbers = #tpu.dot_dimension_numbers<[1], [1], [0], [0], [0, 0, 1, 0], [], []>} : vector<64x16xbf16>, vector<64x16xbf16>, vector<64x64xf32> -> vector<64x64xf32>
    %27 = arith.addf %26, %0 : vector<64x64xf32>
    %cst_17 = arith.constant dense<0xFF800000> : vector<64xf32>
    %28 = vector.multi_reduction <maximumf>, %27, %cst_17 [1] : vector<64x64xf32> to vector<64xf32>
    %29 = vector.shape_cast %28 : vector<64xf32> to vector<64x1xf32>
    %30 = vector.broadcast %29 : vector<64x1xf32> to vector<64x64xf32>
    %31 = arith.subf %27, %30 : vector<64x64xf32>
    %32 = math.exp %31 : vector<64x64xf32>
    %cst_18 = arith.constant dense<0.000000e+00> : vector<64xf32>
    %33 = vector.multi_reduction <add>, %32, %cst_18 [1] : vector<64x64xf32> to vector<64xf32>
    %34 = vector.shape_cast %33 : vector<64xf32> to vector<64x1xf32>
    %35 = tpu.reciprocal %34 {approx = true} : vector<64x1xf32> -> vector<64x1xf32>
    %36 = vector.broadcast %35 : vector<64x1xf32> to vector<64x64xf32>
    %37 = arith.mulf %32, %36 : vector<64x64xf32>
    %38 = arith.truncf %37 : vector<64x64xf32> to vector<64x64xbf16>
    %cst_19 = arith.constant dense<0.000000e+00> : vector<64x16xf32>
    %39 = tpu.matmul %38, %25, %cst_19 {dimension_numbers = #tpu.dot_dimension_numbers<[1], [0], [0], [1], [0, 0, 1, 1], [], []>} : vector<64x64xbf16>, vector<64x16xbf16>, vector<64x16xf32> -> vector<64x16xf32>
    %40 = vector.extract_strided_slice %18 {offsets = [0, 16], sizes = [64, 16], strides = [1, 1]} : vector<64x64xbf16> to vector<64x16xbf16>
    %41 = vector.extract_strided_slice %20 {offsets = [0, 16], sizes = [64, 16], strides = [1, 1]} : vector<64x64xbf16> to vector<64x16xbf16>
    %42 = vector.extract_strided_slice %22 {offsets = [0, 16], sizes = [64, 16], strides = [1, 1]} : vector<64x64xbf16> to vector<64x16xbf16>
    %cst_20 = arith.constant dense<0.000000e+00> : vector<64x64xf32>
    %43 = tpu.matmul %40, %41, %cst_20 {dimension_numbers = #tpu.dot_dimension_numbers<[1], [1], [0], [0], [0, 0, 1, 0], [], []>} : vector<64x16xbf16>, vector<64x16xbf16>, vector<64x64xf32> -> vector<64x64xf32>
    %44 = arith.addf %43, %0 : vector<64x64xf32>
    %cst_21 = arith.constant dense<0xFF800000> : vector<64xf32>
    %45 = vector.multi_reduction <maximumf>, %44, %cst_21 [1] : vector<64x64xf32> to vector<64xf32>
    %46 = vector.shape_cast %45 : vector<64xf32> to vector<64x1xf32>
    %47 = vector.broadcast %46 : vector<64x1xf32> to vector<64x64xf32>
    %48 = arith.subf %44, %47 : vector<64x64xf32>
    %49 = math.exp %48 : vector<64x64xf32>
    %cst_22 = arith.constant dense<0.000000e+00> : vector<64xf32>
    %50 = vector.multi_reduction <add>, %49, %cst_22 [1] : vector<64x64xf32> to vector<64xf32>
    %51 = vector.shape_cast %50 : vector<64xf32> to vector<64x1xf32>
    %52 = tpu.reciprocal %51 {approx = true} : vector<64x1xf32> -> vector<64x1xf32>
    %53 = vector.broadcast %52 : vector<64x1xf32> to vector<64x64xf32>
    %54 = arith.mulf %49, %53 : vector<64x64xf32>
    %55 = arith.truncf %54 : vector<64x64xf32> to vector<64x64xbf16>
    %cst_23 = arith.constant dense<0.000000e+00> : vector<64x16xf32>
    %56 = tpu.matmul %55, %42, %cst_23 {dimension_numbers = #tpu.dot_dimension_numbers<[1], [0], [0], [1], [0, 0, 1, 1], [], []>} : vector<64x64xbf16>, vector<64x16xbf16>, vector<64x16xf32> -> vector<64x16xf32>
    %57 = vector.extract_strided_slice %18 {offsets = [0, 32], sizes = [64, 16], strides = [1, 1]} : vector<64x64xbf16> to vector<64x16xbf16>
    %58 = vector.extract_strided_slice %20 {offsets = [0, 32], sizes = [64, 16], strides = [1, 1]} : vector<64x64xbf16> to vector<64x16xbf16>
    %59 = vector.extract_strided_slice %22 {offsets = [0, 32], sizes = [64, 16], strides = [1, 1]} : vector<64x64xbf16> to vector<64x16xbf16>
    %cst_24 = arith.constant dense<0.000000e+00> : vector<64x64xf32>
    %60 = tpu.matmul %57, %58, %cst_24 {dimension_numbers = #tpu.dot_dimension_numbers<[1], [1], [0], [0], [0, 0, 1, 0], [], []>} : vector<64x16xbf16>, vector<64x16xbf16>, vector<64x64xf32> -> vector<64x64xf32>
    %61 = arith.addf %60, %0 : vector<64x64xf32>
    %cst_25 = arith.constant dense<0xFF800000> : vector<64xf32>
    %62 = vector.multi_reduction <maximumf>, %61, %cst_25 [1] : vector<64x64xf32> to vector<64xf32>
    %63 = vector.shape_cast %62 : vector<64xf32> to vector<64x1xf32>
    %64 = vector.broadcast %63 : vector<64x1xf32> to vector<64x64xf32>
    %65 = arith.subf %61, %64 : vector<64x64xf32>
    %66 = math.exp %65 : vector<64x64xf32>
    %cst_26 = arith.constant dense<0.000000e+00> : vector<64xf32>
    %67 = vector.multi_reduction <add>, %66, %cst_26 [1] : vector<64x64xf32> to vector<64xf32>
    %68 = vector.shape_cast %67 : vector<64xf32> to vector<64x1xf32>
    %69 = tpu.reciprocal %68 {approx = true} : vector<64x1xf32> -> vector<64x1xf32>
    %70 = vector.broadcast %69 : vector<64x1xf32> to vector<64x64xf32>
    %71 = arith.mulf %66, %70 : vector<64x64xf32>
    %72 = arith.truncf %71 : vector<64x64xf32> to vector<64x64xbf16>
    %cst_27 = arith.constant dense<0.000000e+00> : vector<64x16xf32>
    %73 = tpu.matmul %72, %59, %cst_27 {dimension_numbers = #tpu.dot_dimension_numbers<[1], [0], [0], [1], [0, 0, 1, 1], [], []>} : vector<64x64xbf16>, vector<64x16xbf16>, vector<64x16xf32> -> vector<64x16xf32>
    %74 = vector.extract_strided_slice %18 {offsets = [0, 48], sizes = [64, 16], strides = [1, 1]} : vector<64x64xbf16> to vector<64x16xbf16>
    %75 = vector.extract_strided_slice %20 {offsets = [0, 48], sizes = [64, 16], strides = [1, 1]} : vector<64x64xbf16> to vector<64x16xbf16>
    %76 = vector.extract_strided_slice %22 {offsets = [0, 48], sizes = [64, 16], strides = [1, 1]} : vector<64x64xbf16> to vector<64x16xbf16>
    %cst_28 = arith.constant dense<0.000000e+00> : vector<64x64xf32>
    %77 = tpu.matmul %74, %75, %cst_28 {dimension_numbers = #tpu.dot_dimension_numbers<[1], [1], [0], [0], [0, 0, 1, 0], [], []>} : vector<64x16xbf16>, vector<64x16xbf16>, vector<64x64xf32> -> vector<64x64xf32>
    %78 = arith.addf %77, %0 : vector<64x64xf32>
    %cst_29 = arith.constant dense<0xFF800000> : vector<64xf32>
    %79 = vector.multi_reduction <maximumf>, %78, %cst_29 [1] : vector<64x64xf32> to vector<64xf32>
    %80 = vector.shape_cast %79 : vector<64xf32> to vector<64x1xf32>
    %81 = vector.broadcast %80 : vector<64x1xf32> to vector<64x64xf32>
    %82 = arith.subf %78, %81 : vector<64x64xf32>
    %83 = math.exp %82 : vector<64x64xf32>
    %cst_30 = arith.constant dense<0.000000e+00> : vector<64xf32>
    %84 = vector.multi_reduction <add>, %83, %cst_30 [1] : vector<64x64xf32> to vector<64xf32>
    %85 = vector.shape_cast %84 : vector<64xf32> to vector<64x1xf32>
    %86 = tpu.reciprocal %85 {approx = true} : vector<64x1xf32> -> vector<64x1xf32>
    %87 = vector.broadcast %86 : vector<64x1xf32> to vector<64x64xf32>
    %88 = arith.mulf %83, %87 : vector<64x64xf32>
    %89 = arith.truncf %88 : vector<64x64xf32> to vector<64x64xbf16>
    %cst_31 = arith.constant dense<0.000000e+00> : vector<64x16xf32>
    %90 = tpu.matmul %89, %76, %cst_31 {dimension_numbers = #tpu.dot_dimension_numbers<[1], [0], [0], [1], [0, 0, 1, 1], [], []>} : vector<64x64xbf16>, vector<64x16xbf16>, vector<64x16xf32> -> vector<64x16xf32>
    %91 = tpu.concatenate %39, %56, %73, %90 in 1 : vector<64x16xf32>, vector<64x16xf32>, vector<64x16xf32>, vector<64x16xf32> -> vector<64x64xf32>
    %92 = arith.truncf %91 : vector<64x64xf32> to vector<64x64xbf16>
    %c0_32 = arith.constant 0 : index
    %c0_33 = arith.constant 0 : index
    %c0_34 = arith.constant 0 : index
    %93 = vector.load %arg7[%c0_32, %c0_33, %c0_34] : memref<2x64x64xbf16, #tpu.memory_space<vmem>>, vector<1x64x64xbf16>
    %94 = vector.shape_cast %93 : vector<1x64x64xbf16> to vector<64x64xbf16>
    %cst_35 = arith.constant dense<0.000000e+00> : vector<64x64xf32>
    %95 = tpu.matmul %92, %94, %cst_35 {dimension_numbers = #tpu.dot_dimension_numbers<[1], [0], [0], [1], [0, 0, 1, 1], [], []>} : vector<64x64xbf16>, vector<64x64xbf16>, vector<64x64xf32> -> vector<64x64xf32>
    %c0_36 = arith.constant 0 : index
    %c0_37 = arith.constant 0 : index
    %c0_38 = arith.constant 0 : index
    %96 = vector.load %arg8[%c0_36, %c0_37, %c0_38] : memref<2x1x64xf32, #tpu.memory_space<vmem>>, vector<1x1x64xf32>
    %97 = vector.shape_cast %96 : vector<1x1x64xf32> to vector<1x64xf32>
    %98 = vector.broadcast %97 : vector<1x64xf32> to vector<64x64xf32>
    %99 = arith.addf %95, %98 : vector<64x64xf32>
    %100 = arith.addf %8, %99 : vector<64x64xf32>
    %c0_39 = arith.constant 0 : index
    %c0_40 = arith.constant 0 : index
    %c0_41 = arith.constant 0 : index
    %101 = vector.load %arg9[%c0_39, %c0_40, %c0_41] : memref<2x1x64xf32, #tpu.memory_space<vmem>>, vector<1x1x64xf32>
    %102 = vector.shape_cast %101 : vector<1x1x64xf32> to vector<1x64xf32>
    %c0_42 = arith.constant 0 : index
    %c0_43 = arith.constant 0 : index
    %c0_44 = arith.constant 0 : index
    %103 = vector.load %arg10[%c0_42, %c0_43, %c0_44] : memref<2x1x64xf32, #tpu.memory_space<vmem>>, vector<1x1x64xf32>
    %104 = vector.shape_cast %103 : vector<1x1x64xf32> to vector<1x64xf32>
    %cst_45 = arith.constant dense<0.000000e+00> : vector<64xf32>
    %105 = vector.multi_reduction <add>, %100, %cst_45 [1] : vector<64x64xf32> to vector<64xf32>
    %106 = vector.shape_cast %105 : vector<64xf32> to vector<64x1xf32>
    %cst_46 = arith.constant 6.400000e+01 : f32
    %107 = vector.broadcast %cst_46 : f32 to vector<64x1xf32>
    %108 = arith.divf %106, %107 : vector<64x1xf32>
    %109 = vector.broadcast %108 : vector<64x1xf32> to vector<64x64xf32>
    %110 = arith.subf %100, %109 : vector<64x64xf32>
    %111 = arith.mulf %110, %110 : vector<64x64xf32>
    %cst_47 = arith.constant dense<0.000000e+00> : vector<64xf32>
    %112 = vector.multi_reduction <add>, %111, %cst_47 [1] : vector<64x64xf32> to vector<64xf32>
    %113 = vector.shape_cast %112 : vector<64xf32> to vector<64x1xf32>
    %cst_48 = arith.constant 6.400000e+01 : f32
    %114 = vector.broadcast %cst_48 : f32 to vector<64x1xf32>
    %115 = arith.divf %113, %114 : vector<64x1xf32>
    %cst_49 = arith.constant 9.99999974E-6 : f32
    %116 = vector.broadcast %cst_49 : f32 to vector<64x1xf32>
    %117 = arith.addf %115, %116 : vector<64x1xf32>
    %118 = math.rsqrt %117 : vector<64x1xf32>
    %119 = vector.broadcast %118 : vector<64x1xf32> to vector<64x64xf32>
    %120 = arith.mulf %110, %119 : vector<64x64xf32>
    %121 = vector.broadcast %102 : vector<1x64xf32> to vector<64x64xf32>
    %122 = arith.mulf %120, %121 : vector<64x64xf32>
    %123 = vector.broadcast %104 : vector<1x64xf32> to vector<64x64xf32>
    %124 = arith.addf %122, %123 : vector<64x64xf32>
    %125 = arith.truncf %124 : vector<64x64xf32> to vector<64x64xbf16>
    %c0_50 = arith.constant 0 : index
    %c0_51 = arith.constant 0 : index
    %c0_52 = arith.constant 0 : index
    %126 = vector.load %arg13[%c0_50, %c0_51, %c0_52] : memref<2x64x128xbf16, #tpu.memory_space<vmem>>, vector<1x64x128xbf16>
    %127 = vector.shape_cast %126 : vector<1x64x128xbf16> to vector<64x128xbf16>
    %cst_53 = arith.constant dense<0.000000e+00> : vector<64x128xf32>
    %128 = tpu.matmul %125, %127, %cst_53 {dimension_numbers = #tpu.dot_dimension_numbers<[1], [0], [0], [1], [0, 0, 1, 1], [], []>} : vector<64x64xbf16>, vector<64x128xbf16>, vector<64x128xf32> -> vector<64x128xf32>
    %c0_54 = arith.constant 0 : index
    %c0_55 = arith.constant 0 : index
    %c0_56 = arith.constant 0 : index
    %129 = vector.load %arg14[%c0_54, %c0_55, %c0_56] : memref<2x1x128xf32, #tpu.memory_space<vmem>>, vector<1x1x128xf32>
    %130 = vector.shape_cast %129 : vector<1x1x128xf32> to vector<1x128xf32>
    %131 = vector.broadcast %130 : vector<1x128xf32> to vector<64x128xf32>
    %132 = arith.addf %128, %131 : vector<64x128xf32>
    %cst_57 = arith.constant 0.000000e+00 : f32
    %133 = vector.broadcast %cst_57 : f32 to vector<64x128xf32>
    %134 = arith.maximumf %132, %133 : vector<64x128xf32>
    %135 = arith.truncf %134 : vector<64x128xf32> to vector<64x128xbf16>
    %c0_58 = arith.constant 0 : index
    %c0_59 = arith.constant 0 : index
    %c0_60 = arith.constant 0 : index
    %136 = vector.load %arg15[%c0_58, %c0_59, %c0_60] : memref<2x128x64xbf16, #tpu.memory_space<vmem>>, vector<1x128x64xbf16>
    %137 = vector.shape_cast %136 : vector<1x128x64xbf16> to vector<128x64xbf16>
    %cst_61 = arith.constant dense<0.000000e+00> : vector<64x64xf32>
    %138 = tpu.matmul %135, %137, %cst_61 {dimension_numbers = #tpu.dot_dimension_numbers<[1], [0], [0], [1], [0, 0, 1, 1], [], []>} : vector<64x128xbf16>, vector<128x64xbf16>, vector<64x64xf32> -> vector<64x64xf32>
    %c0_62 = arith.constant 0 : index
    %c0_63 = arith.constant 0 : index
    %c0_64 = arith.constant 0 : index
    %139 = vector.load %arg16[%c0_62, %c0_63, %c0_64] : memref<2x1x64xf32, #tpu.memory_space<vmem>>, vector<1x1x64xf32>
    %140 = vector.shape_cast %139 : vector<1x1x64xf32> to vector<1x64xf32>
    %141 = vector.broadcast %140 : vector<1x64xf32> to vector<64x64xf32>
    %142 = arith.addf %138, %141 : vector<64x64xf32>
    %143 = arith.addf %124, %142 : vector<64x64xf32>
    %c0_65 = arith.constant 0 : index
    %c0_66 = arith.constant 0 : index
    %c0_67 = arith.constant 0 : index
    %144 = vector.load %arg11[%c0_65, %c0_66, %c0_67] : memref<2x1x64xf32, #tpu.memory_space<vmem>>, vector<1x1x64xf32>
    %145 = vector.shape_cast %144 : vector<1x1x64xf32> to vector<1x64xf32>
    %c0_68 = arith.constant 0 : index
    %c0_69 = arith.constant 0 : index
    %c0_70 = arith.constant 0 : index
    %146 = vector.load %arg12[%c0_68, %c0_69, %c0_70] : memref<2x1x64xf32, #tpu.memory_space<vmem>>, vector<1x1x64xf32>
    %147 = vector.shape_cast %146 : vector<1x1x64xf32> to vector<1x64xf32>
    %cst_71 = arith.constant dense<0.000000e+00> : vector<64xf32>
    %148 = vector.multi_reduction <add>, %143, %cst_71 [1] : vector<64x64xf32> to vector<64xf32>
    %149 = vector.shape_cast %148 : vector<64xf32> to vector<64x1xf32>
    %cst_72 = arith.constant 6.400000e+01 : f32
    %150 = vector.broadcast %cst_72 : f32 to vector<64x1xf32>
    %151 = arith.divf %149, %150 : vector<64x1xf32>
    %152 = vector.broadcast %151 : vector<64x1xf32> to vector<64x64xf32>
    %153 = arith.subf %143, %152 : vector<64x64xf32>
    %154 = arith.mulf %153, %153 : vector<64x64xf32>
    %cst_73 = arith.constant dense<0.000000e+00> : vector<64xf32>
    %155 = vector.multi_reduction <add>, %154, %cst_73 [1] : vector<64x64xf32> to vector<64xf32>
    %156 = vector.shape_cast %155 : vector<64xf32> to vector<64x1xf32>
    %cst_74 = arith.constant 6.400000e+01 : f32
    %157 = vector.broadcast %cst_74 : f32 to vector<64x1xf32>
    %158 = arith.divf %156, %157 : vector<64x1xf32>
    %cst_75 = arith.constant 9.99999974E-6 : f32
    %159 = vector.broadcast %cst_75 : f32 to vector<64x1xf32>
    %160 = arith.addf %158, %159 : vector<64x1xf32>
    %161 = math.rsqrt %160 : vector<64x1xf32>
    %162 = vector.broadcast %161 : vector<64x1xf32> to vector<64x64xf32>
    %163 = arith.mulf %153, %162 : vector<64x64xf32>
    %164 = vector.broadcast %145 : vector<1x64xf32> to vector<64x64xf32>
    %165 = arith.mulf %163, %164 : vector<64x64xf32>
    %166 = vector.broadcast %147 : vector<1x64xf32> to vector<64x64xf32>
    %167 = arith.addf %165, %166 : vector<64x64xf32>
    %168 = arith.truncf %167 : vector<64x64xf32> to vector<64x64xbf16>
    %c1 = arith.constant 1 : index
    %c0_76 = arith.constant 0 : index
    %c0_77 = arith.constant 0 : index
    %169 = vector.load %arg5[%c1, %c0_76, %c0_77] : memref<2x64x192xbf16, #tpu.memory_space<vmem>>, vector<1x64x192xbf16>
    %170 = vector.shape_cast %169 : vector<1x64x192xbf16> to vector<64x192xbf16>
    %cst_78 = arith.constant dense<0.000000e+00> : vector<64x192xf32>
    %171 = tpu.matmul %168, %170, %cst_78 {dimension_numbers = #tpu.dot_dimension_numbers<[1], [0], [0], [1], [0, 0, 1, 1], [], []>} : vector<64x64xbf16>, vector<64x192xbf16>, vector<64x192xf32> -> vector<64x192xf32>
    %c1_79 = arith.constant 1 : index
    %c0_80 = arith.constant 0 : index
    %c0_81 = arith.constant 0 : index
    %172 = vector.load %arg6[%c1_79, %c0_80, %c0_81] : memref<2x1x192xf32, #tpu.memory_space<vmem>>, vector<1x1x192xf32>
    %173 = vector.shape_cast %172 : vector<1x1x192xf32> to vector<1x192xf32>
    %174 = vector.broadcast %173 : vector<1x192xf32> to vector<64x192xf32>
    %175 = arith.addf %171, %174 : vector<64x192xf32>
    %176 = vector.extract_strided_slice %175 {offsets = [0, 0], sizes = [64, 64], strides = [1, 1]} : vector<64x192xf32> to vector<64x64xf32>
    %177 = arith.truncf %176 : vector<64x64xf32> to vector<64x64xbf16>
    %178 = vector.extract_strided_slice %175 {offsets = [0, 64], sizes = [64, 64], strides = [1, 1]} : vector<64x192xf32> to vector<64x64xf32>
    %179 = arith.truncf %178 : vector<64x64xf32> to vector<64x64xbf16>
    %180 = vector.extract_strided_slice %175 {offsets = [0, 128], sizes = [64, 64], strides = [1, 1]} : vector<64x192xf32> to vector<64x64xf32>
    %181 = arith.truncf %180 : vector<64x64xf32> to vector<64x64xbf16>
    %182 = vector.extract_strided_slice %177 {offsets = [0, 0], sizes = [64, 16], strides = [1, 1]} : vector<64x64xbf16> to vector<64x16xbf16>
    %183 = vector.extract_strided_slice %179 {offsets = [0, 0], sizes = [64, 16], strides = [1, 1]} : vector<64x64xbf16> to vector<64x16xbf16>
    %184 = vector.extract_strided_slice %181 {offsets = [0, 0], sizes = [64, 16], strides = [1, 1]} : vector<64x64xbf16> to vector<64x16xbf16>
    %cst_82 = arith.constant dense<0.000000e+00> : vector<64x64xf32>
    %185 = tpu.matmul %182, %183, %cst_82 {dimension_numbers = #tpu.dot_dimension_numbers<[1], [1], [0], [0], [0, 0, 1, 0], [], []>} : vector<64x16xbf16>, vector<64x16xbf16>, vector<64x64xf32> -> vector<64x64xf32>
    %186 = arith.addf %185, %0 : vector<64x64xf32>
    %cst_83 = arith.constant dense<0xFF800000> : vector<64xf32>
    %187 = vector.multi_reduction <maximumf>, %186, %cst_83 [1] : vector<64x64xf32> to vector<64xf32>
    %188 = vector.shape_cast %187 : vector<64xf32> to vector<64x1xf32>
    %189 = vector.broadcast %188 : vector<64x1xf32> to vector<64x64xf32>
    %190 = arith.subf %186, %189 : vector<64x64xf32>
    %191 = math.exp %190 : vector<64x64xf32>
    %cst_84 = arith.constant dense<0.000000e+00> : vector<64xf32>
    %192 = vector.multi_reduction <add>, %191, %cst_84 [1] : vector<64x64xf32> to vector<64xf32>
    %193 = vector.shape_cast %192 : vector<64xf32> to vector<64x1xf32>
    %194 = tpu.reciprocal %193 {approx = true} : vector<64x1xf32> -> vector<64x1xf32>
    %195 = vector.broadcast %194 : vector<64x1xf32> to vector<64x64xf32>
    %196 = arith.mulf %191, %195 : vector<64x64xf32>
    %197 = arith.truncf %196 : vector<64x64xf32> to vector<64x64xbf16>
    %cst_85 = arith.constant dense<0.000000e+00> : vector<64x16xf32>
    %198 = tpu.matmul %197, %184, %cst_85 {dimension_numbers = #tpu.dot_dimension_numbers<[1], [0], [0], [1], [0, 0, 1, 1], [], []>} : vector<64x64xbf16>, vector<64x16xbf16>, vector<64x16xf32> -> vector<64x16xf32>
    %199 = vector.extract_strided_slice %177 {offsets = [0, 16], sizes = [64, 16], strides = [1, 1]} : vector<64x64xbf16> to vector<64x16xbf16>
    %200 = vector.extract_strided_slice %179 {offsets = [0, 16], sizes = [64, 16], strides = [1, 1]} : vector<64x64xbf16> to vector<64x16xbf16>
    %201 = vector.extract_strided_slice %181 {offsets = [0, 16], sizes = [64, 16], strides = [1, 1]} : vector<64x64xbf16> to vector<64x16xbf16>
    %cst_86 = arith.constant dense<0.000000e+00> : vector<64x64xf32>
    %202 = tpu.matmul %199, %200, %cst_86 {dimension_numbers = #tpu.dot_dimension_numbers<[1], [1], [0], [0], [0, 0, 1, 0], [], []>} : vector<64x16xbf16>, vector<64x16xbf16>, vector<64x64xf32> -> vector<64x64xf32>
    %203 = arith.addf %202, %0 : vector<64x64xf32>
    %cst_87 = arith.constant dense<0xFF800000> : vector<64xf32>
    %204 = vector.multi_reduction <maximumf>, %203, %cst_87 [1] : vector<64x64xf32> to vector<64xf32>
    %205 = vector.shape_cast %204 : vector<64xf32> to vector<64x1xf32>
    %206 = vector.broadcast %205 : vector<64x1xf32> to vector<64x64xf32>
    %207 = arith.subf %203, %206 : vector<64x64xf32>
    %208 = math.exp %207 : vector<64x64xf32>
    %cst_88 = arith.constant dense<0.000000e+00> : vector<64xf32>
    %209 = vector.multi_reduction <add>, %208, %cst_88 [1] : vector<64x64xf32> to vector<64xf32>
    %210 = vector.shape_cast %209 : vector<64xf32> to vector<64x1xf32>
    %211 = tpu.reciprocal %210 {approx = true} : vector<64x1xf32> -> vector<64x1xf32>
    %212 = vector.broadcast %211 : vector<64x1xf32> to vector<64x64xf32>
    %213 = arith.mulf %208, %212 : vector<64x64xf32>
    %214 = arith.truncf %213 : vector<64x64xf32> to vector<64x64xbf16>
    %cst_89 = arith.constant dense<0.000000e+00> : vector<64x16xf32>
    %215 = tpu.matmul %214, %201, %cst_89 {dimension_numbers = #tpu.dot_dimension_numbers<[1], [0], [0], [1], [0, 0, 1, 1], [], []>} : vector<64x64xbf16>, vector<64x16xbf16>, vector<64x16xf32> -> vector<64x16xf32>
    %216 = vector.extract_strided_slice %177 {offsets = [0, 32], sizes = [64, 16], strides = [1, 1]} : vector<64x64xbf16> to vector<64x16xbf16>
    %217 = vector.extract_strided_slice %179 {offsets = [0, 32], sizes = [64, 16], strides = [1, 1]} : vector<64x64xbf16> to vector<64x16xbf16>
    %218 = vector.extract_strided_slice %181 {offsets = [0, 32], sizes = [64, 16], strides = [1, 1]} : vector<64x64xbf16> to vector<64x16xbf16>
    %cst_90 = arith.constant dense<0.000000e+00> : vector<64x64xf32>
    %219 = tpu.matmul %216, %217, %cst_90 {dimension_numbers = #tpu.dot_dimension_numbers<[1], [1], [0], [0], [0, 0, 1, 0], [], []>} : vector<64x16xbf16>, vector<64x16xbf16>, vector<64x64xf32> -> vector<64x64xf32>
    %220 = arith.addf %219, %0 : vector<64x64xf32>
    %cst_91 = arith.constant dense<0xFF800000> : vector<64xf32>
    %221 = vector.multi_reduction <maximumf>, %220, %cst_91 [1] : vector<64x64xf32> to vector<64xf32>
    %222 = vector.shape_cast %221 : vector<64xf32> to vector<64x1xf32>
    %223 = vector.broadcast %222 : vector<64x1xf32> to vector<64x64xf32>
    %224 = arith.subf %220, %223 : vector<64x64xf32>
    %225 = math.exp %224 : vector<64x64xf32>
    %cst_92 = arith.constant dense<0.000000e+00> : vector<64xf32>
    %226 = vector.multi_reduction <add>, %225, %cst_92 [1] : vector<64x64xf32> to vector<64xf32>
    %227 = vector.shape_cast %226 : vector<64xf32> to vector<64x1xf32>
    %228 = tpu.reciprocal %227 {approx = true} : vector<64x1xf32> -> vector<64x1xf32>
    %229 = vector.broadcast %228 : vector<64x1xf32> to vector<64x64xf32>
    %230 = arith.mulf %225, %229 : vector<64x64xf32>
    %231 = arith.truncf %230 : vector<64x64xf32> to vector<64x64xbf16>
    %cst_93 = arith.constant dense<0.000000e+00> : vector<64x16xf32>
    %232 = tpu.matmul %231, %218, %cst_93 {dimension_numbers = #tpu.dot_dimension_numbers<[1], [0], [0], [1], [0, 0, 1, 1], [], []>} : vector<64x64xbf16>, vector<64x16xbf16>, vector<64x16xf32> -> vector<64x16xf32>
    %233 = vector.extract_strided_slice %177 {offsets = [0, 48], sizes = [64, 16], strides = [1, 1]} : vector<64x64xbf16> to vector<64x16xbf16>
    %234 = vector.extract_strided_slice %179 {offsets = [0, 48], sizes = [64, 16], strides = [1, 1]} : vector<64x64xbf16> to vector<64x16xbf16>
    %235 = vector.extract_strided_slice %181 {offsets = [0, 48], sizes = [64, 16], strides = [1, 1]} : vector<64x64xbf16> to vector<64x16xbf16>
    %cst_94 = arith.constant dense<0.000000e+00> : vector<64x64xf32>
    %236 = tpu.matmul %233, %234, %cst_94 {dimension_numbers = #tpu.dot_dimension_numbers<[1], [1], [0], [0], [0, 0, 1, 0], [], []>} : vector<64x16xbf16>, vector<64x16xbf16>, vector<64x64xf32> -> vector<64x64xf32>
    %237 = arith.addf %236, %0 : vector<64x64xf32>
    %cst_95 = arith.constant dense<0xFF800000> : vector<64xf32>
    %238 = vector.multi_reduction <maximumf>, %237, %cst_95 [1] : vector<64x64xf32> to vector<64xf32>
    %239 = vector.shape_cast %238 : vector<64xf32> to vector<64x1xf32>
    %240 = vector.broadcast %239 : vector<64x1xf32> to vector<64x64xf32>
    %241 = arith.subf %237, %240 : vector<64x64xf32>
    %242 = math.exp %241 : vector<64x64xf32>
    %cst_96 = arith.constant dense<0.000000e+00> : vector<64xf32>
    %243 = vector.multi_reduction <add>, %242, %cst_96 [1] : vector<64x64xf32> to vector<64xf32>
    %244 = vector.shape_cast %243 : vector<64xf32> to vector<64x1xf32>
    %245 = tpu.reciprocal %244 {approx = true} : vector<64x1xf32> -> vector<64x1xf32>
    %246 = vector.broadcast %245 : vector<64x1xf32> to vector<64x64xf32>
    %247 = arith.mulf %242, %246 : vector<64x64xf32>
    %248 = arith.truncf %247 : vector<64x64xf32> to vector<64x64xbf16>
    %cst_97 = arith.constant dense<0.000000e+00> : vector<64x16xf32>
    %249 = tpu.matmul %248, %235, %cst_97 {dimension_numbers = #tpu.dot_dimension_numbers<[1], [0], [0], [1], [0, 0, 1, 1], [], []>} : vector<64x64xbf16>, vector<64x16xbf16>, vector<64x16xf32> -> vector<64x16xf32>
    %250 = tpu.concatenate %198, %215, %232, %249 in 1 : vector<64x16xf32>, vector<64x16xf32>, vector<64x16xf32>, vector<64x16xf32> -> vector<64x64xf32>
    %251 = arith.truncf %250 : vector<64x64xf32> to vector<64x64xbf16>
    %c1_98 = arith.constant 1 : index
    %c0_99 = arith.constant 0 : index
    %c0_100 = arith.constant 0 : index
    %252 = vector.load %arg7[%c1_98, %c0_99, %c0_100] : memref<2x64x64xbf16, #tpu.memory_space<vmem>>, vector<1x64x64xbf16>
    %253 = vector.shape_cast %252 : vector<1x64x64xbf16> to vector<64x64xbf16>
    %cst_101 = arith.constant dense<0.000000e+00> : vector<64x64xf32>
    %254 = tpu.matmul %251, %253, %cst_101 {dimension_numbers = #tpu.dot_dimension_numbers<[1], [0], [0], [1], [0, 0, 1, 1], [], []>} : vector<64x64xbf16>, vector<64x64xbf16>, vector<64x64xf32> -> vector<64x64xf32>
    %c1_102 = arith.constant 1 : index
    %c0_103 = arith.constant 0 : index
    %c0_104 = arith.constant 0 : index
    %255 = vector.load %arg8[%c1_102, %c0_103, %c0_104] : memref<2x1x64xf32, #tpu.memory_space<vmem>>, vector<1x1x64xf32>
    %256 = vector.shape_cast %255 : vector<1x1x64xf32> to vector<1x64xf32>
    %257 = vector.broadcast %256 : vector<1x64xf32> to vector<64x64xf32>
    %258 = arith.addf %254, %257 : vector<64x64xf32>
    %259 = arith.addf %167, %258 : vector<64x64xf32>
    %c1_105 = arith.constant 1 : index
    %c0_106 = arith.constant 0 : index
    %c0_107 = arith.constant 0 : index
    %260 = vector.load %arg9[%c1_105, %c0_106, %c0_107] : memref<2x1x64xf32, #tpu.memory_space<vmem>>, vector<1x1x64xf32>
    %261 = vector.shape_cast %260 : vector<1x1x64xf32> to vector<1x64xf32>
    %c1_108 = arith.constant 1 : index
    %c0_109 = arith.constant 0 : index
    %c0_110 = arith.constant 0 : index
    %262 = vector.load %arg10[%c1_108, %c0_109, %c0_110] : memref<2x1x64xf32, #tpu.memory_space<vmem>>, vector<1x1x64xf32>
    %263 = vector.shape_cast %262 : vector<1x1x64xf32> to vector<1x64xf32>
    %cst_111 = arith.constant dense<0.000000e+00> : vector<64xf32>
    %264 = vector.multi_reduction <add>, %259, %cst_111 [1] : vector<64x64xf32> to vector<64xf32>
    %265 = vector.shape_cast %264 : vector<64xf32> to vector<64x1xf32>
    %cst_112 = arith.constant 6.400000e+01 : f32
    %266 = vector.broadcast %cst_112 : f32 to vector<64x1xf32>
    %267 = arith.divf %265, %266 : vector<64x1xf32>
    %268 = vector.broadcast %267 : vector<64x1xf32> to vector<64x64xf32>
    %269 = arith.subf %259, %268 : vector<64x64xf32>
    %270 = arith.mulf %269, %269 : vector<64x64xf32>
    %cst_113 = arith.constant dense<0.000000e+00> : vector<64xf32>
    %271 = vector.multi_reduction <add>, %270, %cst_113 [1] : vector<64x64xf32> to vector<64xf32>
    %272 = vector.shape_cast %271 : vector<64xf32> to vector<64x1xf32>
    %cst_114 = arith.constant 6.400000e+01 : f32
    %273 = vector.broadcast %cst_114 : f32 to vector<64x1xf32>
    %274 = arith.divf %272, %273 : vector<64x1xf32>
    %cst_115 = arith.constant 9.99999974E-6 : f32
    %275 = vector.broadcast %cst_115 : f32 to vector<64x1xf32>
    %276 = arith.addf %274, %275 : vector<64x1xf32>
    %277 = math.rsqrt %276 : vector<64x1xf32>
    %278 = vector.broadcast %277 : vector<64x1xf32> to vector<64x64xf32>
    %279 = arith.mulf %269, %278 : vector<64x64xf32>
    %280 = vector.broadcast %261 : vector<1x64xf32> to vector<64x64xf32>
    %281 = arith.mulf %279, %280 : vector<64x64xf32>
    %282 = vector.broadcast %263 : vector<1x64xf32> to vector<64x64xf32>
    %283 = arith.addf %281, %282 : vector<64x64xf32>
    %284 = arith.truncf %283 : vector<64x64xf32> to vector<64x64xbf16>
    %c1_116 = arith.constant 1 : index
    %c0_117 = arith.constant 0 : index
    %c0_118 = arith.constant 0 : index
    %285 = vector.load %arg13[%c1_116, %c0_117, %c0_118] : memref<2x64x128xbf16, #tpu.memory_space<vmem>>, vector<1x64x128xbf16>
    %286 = vector.shape_cast %285 : vector<1x64x128xbf16> to vector<64x128xbf16>
    %cst_119 = arith.constant dense<0.000000e+00> : vector<64x128xf32>
    %287 = tpu.matmul %284, %286, %cst_119 {dimension_numbers = #tpu.dot_dimension_numbers<[1], [0], [0], [1], [0, 0, 1, 1], [], []>} : vector<64x64xbf16>, vector<64x128xbf16>, vector<64x128xf32> -> vector<64x128xf32>
    %c1_120 = arith.constant 1 : index
    %c0_121 = arith.constant 0 : index
    %c0_122 = arith.constant 0 : index
    %288 = vector.load %arg14[%c1_120, %c0_121, %c0_122] : memref<2x1x128xf32, #tpu.memory_space<vmem>>, vector<1x1x128xf32>
    %289 = vector.shape_cast %288 : vector<1x1x128xf32> to vector<1x128xf32>
    %290 = vector.broadcast %289 : vector<1x128xf32> to vector<64x128xf32>
    %291 = arith.addf %287, %290 : vector<64x128xf32>
    %cst_123 = arith.constant 0.000000e+00 : f32
    %292 = vector.broadcast %cst_123 : f32 to vector<64x128xf32>
    %293 = arith.maximumf %291, %292 : vector<64x128xf32>
    %294 = arith.truncf %293 : vector<64x128xf32> to vector<64x128xbf16>
    %c1_124 = arith.constant 1 : index
    %c0_125 = arith.constant 0 : index
    %c0_126 = arith.constant 0 : index
    %295 = vector.load %arg15[%c1_124, %c0_125, %c0_126] : memref<2x128x64xbf16, #tpu.memory_space<vmem>>, vector<1x128x64xbf16>
    %296 = vector.shape_cast %295 : vector<1x128x64xbf16> to vector<128x64xbf16>
    %cst_127 = arith.constant dense<0.000000e+00> : vector<64x64xf32>
    %297 = tpu.matmul %294, %296, %cst_127 {dimension_numbers = #tpu.dot_dimension_numbers<[1], [0], [0], [1], [0, 0, 1, 1], [], []>} : vector<64x128xbf16>, vector<128x64xbf16>, vector<64x64xf32> -> vector<64x64xf32>
    %c1_128 = arith.constant 1 : index
    %c0_129 = arith.constant 0 : index
    %c0_130 = arith.constant 0 : index
    %298 = vector.load %arg16[%c1_128, %c0_129, %c0_130] : memref<2x1x64xf32, #tpu.memory_space<vmem>>, vector<1x1x64xf32>
    %299 = vector.shape_cast %298 : vector<1x1x64xf32> to vector<1x64xf32>
    %300 = vector.broadcast %299 : vector<1x64xf32> to vector<64x64xf32>
    %301 = arith.addf %297, %300 : vector<64x64xf32>
    %302 = arith.addf %283, %301 : vector<64x64xf32>
    %c1_131 = arith.constant 1 : index
    %c0_132 = arith.constant 0 : index
    %c0_133 = arith.constant 0 : index
    %303 = vector.load %arg11[%c1_131, %c0_132, %c0_133] : memref<2x1x64xf32, #tpu.memory_space<vmem>>, vector<1x1x64xf32>
    %304 = vector.shape_cast %303 : vector<1x1x64xf32> to vector<1x64xf32>
    %c1_134 = arith.constant 1 : index
    %c0_135 = arith.constant 0 : index
    %c0_136 = arith.constant 0 : index
    %305 = vector.load %arg12[%c1_134, %c0_135, %c0_136] : memref<2x1x64xf32, #tpu.memory_space<vmem>>, vector<1x1x64xf32>
    %306 = vector.shape_cast %305 : vector<1x1x64xf32> to vector<1x64xf32>
    %cst_137 = arith.constant dense<0.000000e+00> : vector<64xf32>
    %307 = vector.multi_reduction <add>, %302, %cst_137 [1] : vector<64x64xf32> to vector<64xf32>
    %308 = vector.shape_cast %307 : vector<64xf32> to vector<64x1xf32>
    %cst_138 = arith.constant 6.400000e+01 : f32
    %309 = vector.broadcast %cst_138 : f32 to vector<64x1xf32>
    %310 = arith.divf %308, %309 : vector<64x1xf32>
    %311 = vector.broadcast %310 : vector<64x1xf32> to vector<64x64xf32>
    %312 = arith.subf %302, %311 : vector<64x64xf32>
    %313 = arith.mulf %312, %312 : vector<64x64xf32>
    %cst_139 = arith.constant dense<0.000000e+00> : vector<64xf32>
    %314 = vector.multi_reduction <add>, %313, %cst_139 [1] : vector<64x64xf32> to vector<64xf32>
    %315 = vector.shape_cast %314 : vector<64xf32> to vector<64x1xf32>
    %cst_140 = arith.constant 6.400000e+01 : f32
    %316 = vector.broadcast %cst_140 : f32 to vector<64x1xf32>
    %317 = arith.divf %315, %316 : vector<64x1xf32>
    %cst_141 = arith.constant 9.99999974E-6 : f32
    %318 = vector.broadcast %cst_141 : f32 to vector<64x1xf32>
    %319 = arith.addf %317, %318 : vector<64x1xf32>
    %320 = math.rsqrt %319 : vector<64x1xf32>
    %321 = vector.broadcast %320 : vector<64x1xf32> to vector<64x64xf32>
    %322 = arith.mulf %312, %321 : vector<64x64xf32>
    %323 = vector.broadcast %304 : vector<1x64xf32> to vector<64x64xf32>
    %324 = arith.mulf %322, %323 : vector<64x64xf32>
    %325 = vector.broadcast %306 : vector<1x64xf32> to vector<64x64xf32>
    %326 = arith.addf %324, %325 : vector<64x64xf32>
    %327 = vector.shape_cast %326 : vector<64x64xf32> to vector<8x8x64xf32>
    %cst_142 = arith.constant dense<0.000000e+00> : vector<8x64xf32>
    %328 = vector.multi_reduction <add>, %327, %cst_142 [0] : vector<8x8x64xf32> to vector<8x64xf32>
    %329 = arith.truncf %328 : vector<8x64xf32> to vector<8x64xbf16>
    %c0_143 = arith.constant 0 : index
    %c0_144 = arith.constant 0 : index
    %330 = vector.load %arg17[%c0_143, %c0_144] : memref<64x128xbf16, #tpu.memory_space<vmem>>, vector<64x128xbf16>
    %cst_145 = arith.constant dense<0.000000e+00> : vector<8x128xf32>
    %331 = tpu.matmul %329, %330, %cst_145 {dimension_numbers = #tpu.dot_dimension_numbers<[1], [0], [0], [1], [0, 0, 1, 1], [], []>} : vector<8x64xbf16>, vector<64x128xbf16>, vector<8x128xf32> -> vector<8x128xf32>
    %c0_146 = arith.constant 0 : index
    %c0_147 = arith.constant 0 : index
    %332 = vector.load %arg18[%c0_146, %c0_147] : memref<1x128xf32, #tpu.memory_space<vmem>>, vector<1x128xf32>
    %333 = vector.broadcast %332 : vector<1x128xf32> to vector<8x128xf32>
    %334 = arith.addf %331, %333 : vector<8x128xf32>
    %c0_148 = arith.constant 0 : index
    %c0_149 = arith.constant 0 : index
    %335 = vector.load %arg19[%c0_148, %c0_149] : memref<8x128xf32, #tpu.memory_space<vmem>>, vector<8x128xf32>
    tpu.vector_store %arg19[%c0_148, %c0_149], %334 {strides = array<i32>} : memref<8x128xf32, #tpu.memory_space<vmem>>, vector<8x128xf32>,
    return
  }
}

</mosaic_0001>

<bundles_post_ra>
// kernel: tabular_transformer_forward.1
= control target key start
LH: loop header
LB: loop body
LE: loop exit
PB: predicated region body
PF: predicated region fallthrough
CT: control target
= control target key end

     0   :  { %s7498_s0 = inlined_call_operand.vmem [shape: bf16[64,8], index: 0, kind: input, shape index: {}]   ;;  %s7499_s1 = inlined_call_operand.vmem [shape: bf16[8,64], index: 1, kind: input, shape index: {}]   ;;  %s7500_s2 = inlined_call_operand.hbm [shape: f32[1,64], index: 2, kind: input, shape index: {}]   ;;  %s7501_s3 = inlined_call_operand.vmem [shape: f32[64,64], index: 3, kind: input, shape index: {}]   ;;  %s7502_s4 = inlined_call_operand.vmem [shape: f32[64,64], index: 4, kind: input, shape index: {}]   ;;  %s7503_s5 = inlined_call_operand.vmem [shape: bf16[2,64,192], index: 5, kind: input, shape index: {}]   ;;  %s7504_s6 = inlined_call_operand.hbm [shape: f32[2,1,192], index: 6, kind: input, shape index: {}]   ;;  %s7505_s7 = inlined_call_operand.hbm [shape: bf16[2,64,64], index: 7, kind: input, shape index: {}]   ;;  %s7506_s8 = inlined_call_operand.vmem [shape: f32[2,1,64], index: 8, kind: input, shape index: {}]   ;;  %s7507_s9 = inlined_call_operand.hbm [shape: f32[2,1,64], index: 9, kind: input, shape index: {}]   ;;  %s7508_s10 = inlined_call_operand.hbm [shape: f32[2,1,64], index: 10, kind: input, shape index: {}]   ;;  %s7509_s11 = inlined_call_operand.vmem [shape: f32[2,1,64], index: 11, kind: input, shape index: {}]   ;;  %s7510_s12 = inlined_call_operand.hbm [shape: f32[2,1,64], index: 12, kind: input, shape index: {}]   ;;  %s7511_s13 = inlined_call_operand.hbm [shape: bf16[2,64,128], index: 13, kind: input, shape index: {}]   ;;  %s7512_s14 = inlined_call_operand.hbm [shape: f32[2,1,128], index: 14, kind: input, shape index: {}]   ;;  %s7513_s15 = inlined_call_operand.vmem [shape: bf16[2,128,64], index: 15, kind: input, shape index: {}]   ;;  %s7514_s16 = inlined_call_operand.hbm [shape: f32[2,1,64], index: 16, kind: input, shape index: {}]   ;;  %s7515_s17 = inlined_call_operand.vmem [shape: bf16[64,128], index: 17, kind: input, shape index: {}]   ;;  %s7516_s18 = inlined_call_operand.vmem [shape: f32[1,128], index: 18, kind: input, shape index: {}]   ;;  %s7517_s19 = inlined_call_operand.vmem [shape: f32[8,128], index: 19, kind: output, shape index: {}]  }
   0x1   :  { %7520 = sst [smem:[#allocation21_spill]] %s7498_s0 }
   0x2   :  { %7521 = sst [smem:[#allocation22_spill]] %s7499_s1 }
   0x3   :  { %7522 = sst [smem:[#allocation23_spill]] %s7500_s2 }
   0x4   :  { %7523 = sst [smem:[#allocation24_spill]] %s7501_s3 }
   0x5   :  { %24 = vsyncpa [#allocation3], 0 }
   0x6   :  { %25 = vsyncpa [#allocation5], 0 }
   0x7   :  { %26 = vsyncpa [#allocation8], 0 }
   0x8   :  { %27 = vsyncpa [#allocation11], 0  ;;  %s54_s20 = sshll.u32 %s7504_s6, 4  ;;  %s55_s20 = int_to_ptr.hbm [resolvable:$true] %s54_s20 }
   0x9   :  { %28 = vsyncpa [#allocation14], 0  ;;  %s5190_s21 = smov [#allocation4]   ;;  %s82_s23 = sshll.u32 %s7507_s9, 4  ;;  %s83_s23 = int_to_ptr.hbm [resolvable:$true] %s82_s23 }
   0xa   :  { %s56_s1 = sshll.u32 %s5190_s21, 4  ;;  %s5191_s24 = smov 32   ;;  %s57_s1 = int_to_ptr.vmem [resolvable:$true] %s56_s1 }
   0xb   :  { %s5192_s25 = smov 2   ;;  %s5193_s3 = smov [#allocation7]  }
   0xc   :  { %62 = dma.hbm_to_vmem [thread:$0]  %s55_s20, 64, %s57_s1, [#allocation5], %s5191_s24, %s5191_s24, %s5192_s25  }
   0xd   :  { %s84_s26 = sshll.u32 %s5193_s3, 4  ;;  %s5194_s27 = smov 16   ;;  %s85_s26 = int_to_ptr.vmem [resolvable:$true] %s84_s26 }
   0xe   :  { %s5195_s6 = smov 1   ;;  %s110_s0 = sshll.u32 %s7510_s12, 4  ;;  %s111_s0 = int_to_ptr.hbm [resolvable:$true] %s110_s0 }
   0xf   :  { %90 = dma.hbm_to_vmem [thread:$0]  %s83_s23, 32, %s85_s26, [#allocation8], %s5194_s27, %s5194_s27, %s5195_s6  }
  0x10   :  { %s5196_s9 = smov [#allocation10]   ;;  %s136_s1 = sshll.u32 %s7512_s14, 4  ;;  %s137_s1 = int_to_ptr.hbm [resolvable:$true] %s136_s1 }
  0x11   :  { %s112_s30 = sshll.u32 %s5196_s9, 4  ;;  %s5197_s22 = smov [#allocation13]   ;;  %s113_s30 = int_to_ptr.vmem [resolvable:$true] %s112_s30 }
  0x12   :  { %118 = dma.hbm_to_vmem [thread:$0]  %s111_s0, 32, %s113_s30, [#allocation11], %s5194_s27, %s5194_s27, %s5195_s6  }
  0x13   :  { %s138_s2 = sshll.u32 %s5197_s22, 4  ;;  %s7524_s3 = sld [smem:[#allocation23_spill]]  ;;  %s139_s2 = int_to_ptr.vmem [resolvable:$true] %s138_s2 }
  0x14   :  { %144 = dma.hbm_to_vmem [thread:$0]  %s137_s1, 32, %s139_s2, [#allocation14], %s5194_s27, %s5194_s27, %s5195_s6  }
  0x15   :  { %s67_s14 = sshll.u32 %s7505_s7, 4  ;;  %s5198_s29 = smov [#allocation2]   ;;  %s68_s14 = int_to_ptr.hbm [resolvable:$true] %s67_s14 }
  0x16   :  { %s40_s9 = sshll.u32 %s5198_s29, 4  ;;  %s5199_s0 = smov [#allocation6]   ;;  %s41_s9 = int_to_ptr.vmem [resolvable:$true] %s40_s9 }
  0x17   :  { %s69_s30 = sshll.u32 %s5199_s0, 4  ;;  %s5200_s21 = smov 64   ;;  %s70_s30 = int_to_ptr.vmem [resolvable:$true] %s69_s30 }
  0x18   :  { %s5201_s20 = smov 4   ;;  %s95_s1 = sshll.u32 %s7508_s10, 4  ;;  %s96_s1 = int_to_ptr.hbm [resolvable:$true] %s95_s1 }
  0x19   :  { %s38_s26 = sshll.u32 %s7524_s3, 4  ;;  %s5202_s2 = smov [#allocation9]   ;;  %s39_s26 = int_to_ptr.hbm [resolvable:$true] %s38_s26 }
  0x1a   :  { %43 = dma.hbm_to_vmem [thread:$0]  %s39_s26, 16, %s41_s9, [#allocation3]  }
  0x1b   :  { %75 = dma.hbm_to_vmem [thread:$0]  %s68_s14, 1024, %s70_s30, [#allocation5], %s5200_s21, %s5200_s21, %s5201_s20  }
  0x1c   :  { %s97_s7 = sshll.u32 %s5202_s2, 4  ;;  %s123_s26 = sshll.u32 %s7511_s13, 4  ;;  %s98_s7 = int_to_ptr.vmem [resolvable:$true] %s97_s7  ;;  %s124_s26 = int_to_ptr.hbm [resolvable:$true] %s123_s26 }
  0x1d   :  { %103 = dma.hbm_to_vmem [thread:$0]  %s96_s1, 32, %s98_s7, [#allocation8], %s5194_s27, %s5194_s27, %s5195_s6  }
  0x1e   :  { %s5203_s12 = smov [#allocation12]   ;;  %s151_s9 = sshll.u32 %s7514_s16, 4  ;;  %s152_s9 = int_to_ptr.hbm [resolvable:$true] %s151_s9 }
  0x1f   :  { %s125_s28 = sshll.u32 %s5203_s12, 4  ;;  %s5204_s10 = smov [#allocation15]   ;;  %s126_s28 = int_to_ptr.vmem [resolvable:$true] %s125_s28 }
  0x20   :  { %131 = dma.hbm_to_vmem [thread:$0]  %s124_s26, 1024, %s126_s28, [#allocation11], %s5200_s21, %s5200_s21, %s5201_s20  }
  0x21   :  { %s153_s0 = sshll.u32 %s5204_s10, 4  ;;  %s154_s0 = int_to_ptr.vmem [resolvable:$true] %s153_s0 }
  0x22   :  { %159 = dma.hbm_to_vmem [thread:$0]  %s152_s9, 32, %s154_s0, [#allocation14], %s5194_s27, %s5194_s27, %s5195_s6  }
  0x23   :  { %5180 = dma.done.wait [#allocation3], 16  }
  0x24   :  { %5181 = vsyncadd [#allocation3], 4294967280 }
  0x25   :  { %5182 = dma.done.wait [#allocation5], 1088  }
  0x26   :  { %5183 = vsyncadd [#allocation5], 4294966208 }
  0x27   :  { %5184 = dma.done.wait [#allocation8], 64  }
  0x28   :  { %5185 = vsyncadd [#allocation8], 4294967232 }
  0x29   :  { %5186 = dma.done.wait [#allocation11], 1056  }
  0x2a   :  { %5187 = vsyncadd [#allocation11], 4294966240 }
  0x2b   :  { %5188 = dma.done.wait [#allocation14], 64  }
  0x2c   :  { %5189 = vsyncadd [#allocation14], 4294967232  ;;  %vm255_vm0 = vcmask 1043456   ;;  %s7525_s30 = sld [smem:[#allocation22_spill]]  ;;  %vm242_vm1 = vcmask 64512   ;;  %vm362_vm2 = vcmask 523264  }
  0x2d   :  { %s7526_s6 = sld [smem:[#allocation21_spill]]  ;;  %v4113_v6 = vld [vmem:[%s7503_s5 + $0x30] sm:$0xf]  ;;  %v4429_v7 = vld [vmem:[%s7503_s5 + $0x34] sm:$0xf0]  ;;  %s5205_s16 = smov 48  }
  0x2e   :  { %v4428_v8 = vld [vmem:[%s7503_s5 + $0x34] sm:$0xf]  ;;  %v4114_v9 = vor.u32 %v4429_v7, %v4113_v6  ;;  %v4115_v10 = vld [vmem:[%s7503_s5 + $0x38] sm:$0xf0]  ;;  %v4105_v12 = vld [vmem:[%s7503_s5 + $0x20] sm:$0xf] }
  0x2f   :  { %v4118_v11 = vor.u32 %v4428_v8, %v4115_v10  ;;  %v4427_v13 = vld [vmem:[%s7503_s5 + $0x24] sm:$0xf0]  ;;  %v4426_v15 = vld [vmem:[%s7503_s5 + $0x24] sm:$0xf]  ;;  %v4107_v16 = vld [vmem:[%s7503_s5 + $0x28] sm:$0xf0] }
  0x30   :  { %379 = vmatpush.bf16.msra.mxu1 %v4114_v9  ;;  %4474 = vmatpush.bf16.msra.mxu3 %v4114_v9  ;;  %v4106_v14 = vor.u32 %v4427_v13, %v4105_v12  ;;  %v4110_v17 = vor.u32 %v4426_v15, %v4107_v16  ;;  %v4097_v18 = vld [vmem:[%s7503_s5 + $0x10] sm:$0xf]  ;;  %v4425_v19 = vld [vmem:[%s7503_s5 + $0x14] sm:$0xf0]  ;;  %v4424_v20 = vld [vmem:[%s7503_s5 + $0x14] sm:$0xf] }
  0x31   :  { %408 = vmatpush.bf16.msra.mxu2 %v4118_v11  ;;  %v4098_v21 = vor.u32 %v4425_v19, %v4097_v18  ;;  %v4099_v22 = vld [vmem:[%s7503_s5 + $0x18] sm:$0xf0]  ;;  %v4089_v24 = vld [vmem:[%s7503_s5] sm:$0xf]  ;;  %v4423_v25 = vld [vmem:[%s7503_s5 + $0x4] sm:$0xf0] }
  0x32   :  { %v217_v0 = vld [vmem:[%s7525_s30] sm:$0xf]  ;;  %v4102_v23 = vor.u32 %v4424_v20, %v4099_v22  ;;  %v4090_v26 = vor.u32 %v4423_v25, %v4089_v24  ;;  %v4422_v27 = vld [vmem:[%s7503_s5 + $0x4] sm:$0xf]  ;;  %v4091_v28 = vld [vmem:[%s7503_s5 + $0x8] sm:$0xf0] }
  0x33   :  { %v257_v1 = vsel %vm255_vm0, %v217_v0, 0  ;;  %v4418_v2 = vld [vmem:[%s7526_s6] sm:$0xff]  ;;  %v4419_v3 = vld [vmem:[%s7526_s6 + $0x8] sm:$0xff]  ;;  %v4420_v4 = vld [vmem:[%s7526_s6 + $0x10] sm:$0xff]  ;;  %v4094_v29 = vor.u32 %v4422_v27, %v4091_v28  ;;  %s7527_s23 = sld [smem:[#allocation24_spill]]  ;;  %s5206_s30 = smov 112  }
  0x34   :  { %266 = vmatpush.bf16.msra.mxu0 %v257_v1  ;;  %v4421_v5 = vld [vmem:[%s7526_s6 + $0x18] sm:$0xff]  ;;  %380 = vmatpush.bf16.msra.mxu1 %v4106_v14  ;;  %v4618_v31 = vld [vmem:[#allocation2] ss:$0 sm:$0xff]  ;;  %v316_v7 = vld [vmem:[#allocation4] sm:$0x3]  ;;  %s5207_s20 = smov 96  }
  0x35   :  { %4475 = vmatpush.bf16.msra.mxu3 %v4106_v14  ;;  %409 = vmatpush.bf16.msra.mxu2 %v4110_v17  ;;  %v318_v9 = vperm.slane %v316_v7, 0  ;;  %s5208_s22 = smov 80   ;;  %vm477_vm3 = vcmask 130048   ;;  %vm1434_vm4 = vcmask 261120   ;;  %vm1443_vm5 = vcmask 392192  }
  0x37   :  { %4083 = vmatmul.msk.bf16.vlgmr.msra.gmra.mxu0 %vm242_vm1, %v4418_v2 }
  0x38   :  { %381 = vmatpush.bf16.msra.mxu1 %v4098_v21 }
  0x39   :  { %4476 = vmatpush.bf16.msra.mxu3 %v4098_v21  ;;  %410 = vmatpush.bf16.msra.mxu2 %v4102_v23  ;;  %v288_v33 = vld [vmem:[%s7527_s23] sm:$0xff]  ;;  %v289_v35 = vld [vmem:[%s7527_s23 + $0x8] sm:$0xff]  ;;  %v290_v42 = vld [vmem:[%s7527_s23 + $0x10] sm:$0xff] }
  0x3a   :  { %v291_v44 = vld [vmem:[%s7527_s23 + $0x18] sm:$0xff]  ;;  %v292_v51 = vld [vmem:[%s7527_s23 + $0x20] sm:$0xff]  ;;  %v293_v53 = vld [vmem:[%s7527_s23 + $0x28] sm:$0xff] }
  0x3b   :  { %v294_v60 = vld [vmem:[%s7527_s23 + $0x30] sm:$0xff]  ;;  %v295_v62 = vld [vmem:[%s7527_s23 + $0x38] sm:$0xff] }
  0x3c   :  { %382 = vmatpush.bf16.msra.mxu1 %v4090_v26 }
  0x3d   :  { %4477 = vmatpush.bf16.msra.mxu3 %v4090_v26  ;;  %411 = vmatpush.bf16.msra.mxu2 %v4094_v29 }
  0x47   :  { %4084 = vmatmul.msk.bf16.gmra.mxu0 %vm242_vm1, %v4419_v3 }
  0x57   :  { %4085 = vmatmul.msk.bf16.gmra.mxu0 %vm242_vm1, %v4420_v4 }
  0x67   :  { %4086 = vmatmul.msk.bf16.gmra.mxu0 %vm242_vm1, %v4421_v5 }
  0xb4   :  { %v268_v30 = vpop.f32.mrf.mxu0 }
  0xb5   :  { %v269_v32 = vadd.f32 %v4618_v31, %v268_v30 }
  0xb7   :  { %v5427_v37 = vadd.f32 %v288_v33, %v269_v32 }
  0xbc   :  { %v270_v34 = vpop.f32.mrf.mxu0 }
  0xbd   :  { %v271_v36 = vadd.f32 %v4618_v31, %v270_v34 }
  0xbf   :  { %v5429_v38 = vadd.f32 %v289_v35, %v271_v36 }
  0xc1   :  { %v304_v39 = vpack.c.bf16 %v5429_v38, %v5427_v37 }
  0xc3   :  { %4119 = vmatmul.msk.bf16.vlgmr.msra.gmra.mxu1 %vm362_vm2, %v304_v39  ;;  %4123 = vmatmul.msk.bf16.vlgmr.msra.gmra.mxu2 %vm362_vm2, %v304_v39 }
  0xc4   :  { %v273_v40 = vpop.f32.mrf.mxu0 }
  0xc5   :  { %v274_v41 = vadd.f32 %v4618_v31, %v273_v40 }
  0xc7   :  { %v5441_v46 = vadd.f32 %v290_v42, %v274_v41  ;;  %v319_v42 = vperm.slane %v316_v7, 1 }
  0xcc   :  { %v275_v43 = vpop.f32.mrf.mxu0 }
  0xcd   :  { %v276_v45 = vadd.f32 %v4618_v31, %v275_v43 }
  0xcf   :  { %v5443_v47 = vadd.f32 %v291_v44, %v276_v45 }
  0xd1   :  { %v305_v48 = vpack.c.bf16 %v5443_v47, %v5441_v46 }
  0xd3   :  { %4120 = vmatmul.msk.bf16.gmra.mxu1 %vm362_vm2, %v305_v48  ;;  %4124 = vmatmul.msk.bf16.gmra.mxu2 %vm362_vm2, %v305_v48 }
  0xd4   :  { %v278_v49 = vpop.f32.mrf.mxu0 }
  0xd5   :  { %v279_v50 = vadd.f32 %v4618_v31, %v278_v49 }
  0xd7   :  { %v5455_v55 = vadd.f32 %v292_v51, %v279_v50 }
  0xdc   :  { %v280_v52 = vpop.f32.mrf.mxu0 }
  0xdd   :  { %v281_v54 = vadd.f32 %v4618_v31, %v280_v52 }
  0xdf   :  { %v5457_v56 = vadd.f32 %v293_v53, %v281_v54 }
  0xe1   :  { %v306_v57 = vpack.c.bf16 %v5457_v56, %v5455_v55 }
  0xe3   :  { %4121 = vmatmul.msk.bf16.vlgmr.msra.gmra.mxu3 %vm362_vm2, %v306_v57  ;;  %4125 = vmatmul.msk.bf16.gmra.mxu2 %vm362_vm2, %v306_v57 }
  0xe4   :  { %v283_v58 = vpop.f32.mrf.mxu0 }
  0xe5   :  { %v284_v59 = vadd.f32 %v4618_v31, %v283_v58 }
  0xe7   :  { %v5469_v0 = vadd.f32 %v294_v60, %v284_v59 }
  0xec   :  { %v285_v61 = vpop.f32.mrf.mxu0 }
  0xed   :  { %v286_v63 = vadd.f32 %v4618_v31, %v285_v61 }
  0xef   :  { %v5471_v1 = vadd.f32 %v295_v62, %v286_v63 }
  0xf1   :  { %v307_v2 = vpack.c.bf16 %v5471_v1, %v5469_v0 }
  0xf3   :  { %4122 = vmatmul.msk.bf16.gmra.mxu3 %vm362_vm2, %v307_v2  ;;  %4126 = vmatmul.msk.bf16.gmra.mxu2 %vm362_vm2, %v307_v2 }
 0x140   :  { %v384_v3 = vpop.f32.mrf.mxu1 }
 0x141   :  { %v385_v21 = vadd.f32 %v384_v3, %v318_v9 }
 0x143   :  { %v433_v25 = vpack.c.bf16 %v385_v21, %v385_v21 }
 0x145   :  { %v457_v28 = vunpack.c.l.b16 %v433_v25 }
 0x146   :  { %v5477_v4 = vpop.f32.mrf.mxu2 }
 0x148   :  { %v386_v5 = vpop.f32.mrf.mxu1 }
 0x149   :  { %v387_v20 = vadd.f32 %v386_v5, %v318_v9 }
 0x14b   :  { %v434_v24 = vpack.c.bf16 %v387_v20, %v387_v20 }
 0x14d   :  { %v458_v26 = vunpack.c.l.b16 %v434_v24 }
 0x14e   :  { %v5479_v6 = vpop.f32.mrf.mxu2 }
 0x14f   :  { %v5487_v31 = vpack.c.b16 %v458_v26, %v457_v28  ;;  %v416_v7 = vadd.f32 %v5479_v6, %v319_v42 }
 0x150   :  { %v389_v8 = vpop.f32.mrf.mxu1 }
 0x151   :  { %v390_v10 = vadd.f32 %v389_v8, %v318_v9 }
 0x153   :  { %v435_v13 = vpack.c.bf16 %v390_v10, %v390_v10 }
 0x155   :  { %v459_v16 = vunpack.c.l.b16 %v435_v13  ;;  %v414_v13 = vadd.f32 %v5477_v4, %v319_v42 }
 0x156   :  { %v418_v11 = vpop.f32.mrf.mxu2 }
 0x157   :  { %v419_v61 = vadd.f32 %v418_v11, %v319_v42  ;;  %v442_v11 = vpack.c.bf16 %v416_v7, %v416_v7 }
 0x158   :  { %v391_v12 = vpop.f32.mrf.mxu1 }
 0x159   :  { %v392_v14 = vadd.f32 %v391_v12, %v318_v9  ;;  %v632_v4 = vunpack.c.l.b16 %v442_v11 }
 0x15b   :  { %v436_v15 = vpack.c.bf16 %v392_v14, %v392_v14  ;;  %v443_v14 = vpack.c.bf16 %v419_v61, %v419_v61 }
 0x15d   :  { %v460_v17 = vunpack.c.l.b16 %v436_v15 }
 0x15e   :  { %v420_v18 = vpop.f32.mrf.mxu2 }
 0x15f   :  { %v5481_v19 = vpack.c.b16 %v460_v17, %v459_v16  ;;  %v421_v57 = vadd.f32 %v420_v18, %v319_v42  ;;  %v441_v17 = vpack.c.bf16 %v414_v13, %v414_v13  ;;  %v633_v18 = vunpack.c.l.b16 %v443_v14 }
 0x161   :  { %471 = vrot.lane.b32.xlu2 %v5481_v19, %s5200_s21  ;;  %v444_v8 = vpack.c.bf16 %v421_v57, %v421_v57  ;;  %v631_v21 = vunpack.c.l.b16 %v441_v17 }
 0x163   :  { %v634_v6 = vunpack.c.l.b16 %v444_v8 }
 0x165   :  { %v5517_v20 = vpack.c.b16 %v634_v6, %v633_v18 }
 0x166   :  { %v394_v22 = vpop.f32.mrf.mxu3  ;;  %v423_v23 = vpop.f32.mrf.mxu2 }
 0x167   :  { %v395_v27 = vadd.f32 %v394_v22, %v318_v9  ;;  %v424_v48 = vadd.f32 %v423_v23, %v319_v42  ;;  %v5524_v22 = vpack.c.b16 %v632_v4, %v631_v21 }
 0x169   :  { %698 = vrot.lane.b32.xlu2 %v5481_v19, %s5205_s16  ;;  %v437_v32 = vpack.c.bf16 %v395_v27, %v395_v27  ;;  %v445_v62 = vpack.c.bf16 %v424_v48, %v424_v48 }
 0x16b   :  { %v461_v35 = vunpack.c.l.b16 %v437_v32  ;;  %v635_v15 = vunpack.c.l.b16 %v445_v62 }
 0x16e   :  { %v396_v29 = vpop.f32.mrf.mxu3  ;;  %v425_v30 = vpop.f32.mrf.mxu2 }
 0x16f   :  { %v397_v33 = vadd.f32 %v396_v29, %v318_v9  ;;  %v426_v45 = vadd.f32 %v425_v30, %v319_v42 }
 0x171   :  { %v438_v34 = vpack.c.bf16 %v397_v33, %v397_v33  ;;  %688 = vrot.lane.b32.xlu2 %v5487_v31, %s5206_s30  ;;  %v446_v58 = vpack.c.bf16 %v426_v45, %v426_v45 }
 0x173   :  { %v462_v36 = vunpack.c.l.b16 %v438_v34 }
 0x175   :  { %v5491_v39 = vpack.c.b16 %v462_v36, %v461_v35 }
 0x176   :  { %v399_v40 = vpop.f32.mrf.mxu3  ;;  %v428_v41 = vpop.f32.mrf.mxu2 }
 0x177   :  { %473 = vrot.lane.b32.xlu1 %v5491_v39, %s5200_s21  ;;  %v400_v43 = vadd.f32 %v399_v40, %v318_v9  ;;  %v429_v44 = vadd.f32 %v428_v41, %v319_v42 }
 0x179   :  { %692 = vrot.lane.b32.xlu2 %v5491_v39, %s5206_s30  ;;  %v439_v51 = vpack.c.bf16 %v400_v43, %v400_v43  ;;  %v447_v52 = vpack.c.bf16 %v429_v44, %v429_v44 }
 0x17b   :  { %v463_v63 = vunpack.c.l.b16 %v439_v51  ;;  %v637_v2 = vunpack.c.l.b16 %v447_v52 }
 0x17e   :  { %v401_v49 = vpop.f32.mrf.mxu3  ;;  %v430_v50 = vpop.f32.mrf.mxu2 }
 0x17f   :  { %v402_v53 = vadd.f32 %v401_v49, %v318_v9  ;;  %v431_v54 = vadd.f32 %v430_v50, %v319_v42  ;;  %700 = vrot.lane.b32.xlu1 %v5491_v39, %s5205_s16  ;;  %v636_v9 = vunpack.c.l.b16 %v446_v58 }
 0x181   :  { %v440_v59 = vpack.c.bf16 %v402_v53, %v402_v53  ;;  %v448_v60 = vpack.c.bf16 %v431_v54, %v431_v54  ;;  %1128 = vrot.lane.b32.xlu2 %v5491_v39, %s5194_s27  ;;  %v5512_v16 = vpack.c.b16 %v636_v9, %v635_v15 }
 0x183   :  { %v464_v3 = vunpack.c.l.b16 %v440_v59  ;;  %v638_v5 = vunpack.c.l.b16 %v448_v60 }
 0x185   :  { %v5502_v10 = vpack.c.b16 %v464_v3, %v463_v63  ;;  %v5504_v12 = vpack.c.b16 %v638_v5, %v637_v2 }
 0x187   :  { %475 = vrot.lane.b32.xlu0 %v5502_v10, %s5200_s21  ;;  %663 = vmatpush.bf16.msrb.mxu0 %v5504_v12 }
 0x188   :  { %696 = vrot.lane.b32.xlu1 %v5487_v31, %s5205_s16 }
 0x189   :  { %1126 = vrot.lane.b32.xlu2 %v5481_v19, %s5194_s27 }
 0x18b   :  { %664 = vmatpush.bf16.msrb.mxu0 %v5512_v16 }
 0x18f   :  { %702 = vrot.lane.b32.xlu0 %v5502_v10, %s5205_s16  ;;  %665 = vmatpush.bf16.msrb.mxu0 %v5517_v20 }
 0x190   :  { %916 = vrot.lane.b32.xlu1 %v5502_v10, %s5191_s24 }
 0x191   :  { %902 = vrot.lane.b32.xlu2 %v5487_v31, %s5207_s20 }
 0x193   :  { %666 = vmatpush.bf16.msrb.mxu0 %v5524_v22 }
 0x197   :  { %469 = vrot.lane.b32.xlu0 %v5487_v31, %s5200_s21 }
 0x198   :  { %914 = vrot.lane.b32.xlu1 %v5491_v39, %s5191_s24 }
 0x199   :  { %1118 = vrot.lane.b32.xlu2 %v5481_v19, %s5208_s22 }
 0x19f   :  { %690 = vrot.lane.b32.xlu0 %v5481_v19, %s5206_s30 }
 0x1a0   :  { %1124 = vrot.lane.b32.xlu1 %v5487_v31, %s5194_s27 }
 0x1a1   :  { %1281 = vrot.lane.b32.xlu2 %v5512_v16, %s5208_s22 }
 0x1a7   :  { %1130 = vrot.lane.b32.xlu0 %v5502_v10, %s5194_s27 }
 0x1a8   :  { %904 = vrot.lane.b32.xlu1 %v5481_v19, %s5207_s20 }
 0x1a9   :  { %908 = vrot.lane.b32.xlu2 %v5502_v10, %s5207_s20 }
 0x1af   :  { %912 = vrot.lane.b32.xlu0 %v5481_v19, %s5191_s24 }
 0x1b0   :  { %1120 = vrot.lane.b32.xlu1 %v5491_v39, %s5208_s22 }
 0x1b1   :  { %855 = vrot.lane.b32.xlu2 %v5504_v12, %s5206_s30 }
 0x1b7   :  { %910 = vrot.lane.b32.xlu0 %v5487_v31, %s5191_s24 }
 0x1b8   :  { %851 = vrot.lane.b32.xlu1 %v5517_v20, %s5206_s30 }
 0x1bb   :  { %v472_v23 = vpop.permute.xlu2 %471 }
 0x1bc   :  { %v494_v48 = vsel %vm477_vm3, %v472_v23, 0 }
 0x1bf   :  { %1116 = vrot.lane.b32.xlu0 %v5487_v31, %s5208_s22 }
 0x1c0   :  { %694 = vrot.lane.b32.xlu1 %v5502_v10, %s5206_s30 }
 0x1c3   :  { %v699_v24 = vpop.permute.xlu2 %698 }
 0x1c4   :  { %v720_v54 = vsel %vm477_vm3, %v699_v24, 0 }
 0x1c7   :  { %906 = vrot.lane.b32.xlu0 %v5491_v39, %s5207_s20 }
 0x1cb   :  { %v689_v25 = vpop.permute.xlu2 %688 }
 0x1cf   :  { %853 = vrot.lane.b32.xlu0 %v5512_v16, %s5206_s30 }
 0x1d3   :  { %v5565_v26 = vpop.permute.xlu2 %692 }
 0x1d7   :  { %849 = vrot.lane.b32.xlu0 %v5524_v22, %s5206_s30 }
 0x1db   :  { %v1129_v27 = vpop.permute.xlu2 %1128 }
 0x1dc   :  { %v1151_v3 = vsel %vm477_vm3, %v1129_v27, 0 }
 0x1df   :  { %1122 = vrot.lane.b32.xlu0 %v5502_v10, %s5208_s22 }
 0x1e3   :  { %v1127_v28 = vpop.permute.xlu2 %1126 }
 0x1e4   :  { %v1148_v8 = vsel %vm477_vm3, %v1127_v28, 0 }
 0x1e7   :  { %1283 = vrot.lane.b32.xlu0 %v5504_v12, %s5208_s22 }
 0x1e9   :  { %v474_v30 = vpop.permute.xlu1 %473 }
 0x1ea   :  { %v497_v41 = vsel %vm477_vm3, %v474_v30, 0 }
 0x1eb   :  { %v5573_v29 = vpop.permute.xlu2 %902 }
 0x1f1   :  { %v701_v34 = vpop.permute.xlu1 %700 }
 0x1f2   :  { %v723_v49 = vsel %vm477_vm3, %v701_v34, 0  ;;  %v5650_v34 = vld [vmem:[%s7502_s4 + $0x10] sm:$0xff] }
 0x1f3   :  { %v5575_v32 = vpop.permute.xlu2 %1118 }
 0x1f9   :  { %v476_v33 = vpop.permute.xlu0 %475 }
 0x1fa   :  { %v500_v35 = vsel %vm477_vm3, %v476_v33, 0  ;;  %v697_v44 = vpop.permute.xlu1 %696 }
 0x1fb   :  { %506 = vmatpush.bf16.xpose.msrb.mxu3 %v500_v35  ;;  %v5578_v36 = vpop.permute.xlu2 %1281  ;;  %v717_v61 = vsel %vm477_vm3, %v697_v44, 0 }
 0x201   :  { %v703_v40 = vpop.permute.xlu0 %702 }
 0x202   :  { %v726_v42 = vsel %vm477_vm3, %v703_v40, 0  ;;  %v917_v51 = vpop.permute.xlu1 %916 }
 0x203   :  { %507 = vmatpush.bf16.xpose.msrb.mxu3 %v497_v41  ;;  %732 = vmatpush.bf16.xpose.msrb.mxu1 %v726_v42  ;;  %v5582_v43 = vpop.permute.xlu2 %908  ;;  %v940_v57 = vsel %vm477_vm3, %v917_v51, 0 }
 0x209   :  { %v470_v45 = vpop.permute.xlu0 %469 }
 0x20a   :  { %v491_v53 = vsel %vm477_vm3, %v470_v45, 0  ;;  %v915_v58 = vpop.permute.xlu1 %914 }
 0x20b   :  { %508 = vmatpush.bf16.xpose.msrb.mxu3 %v494_v48  ;;  %733 = vmatpush.bf16.xpose.msrb.mxu1 %v723_v49  ;;  %v856_v50 = vpop.permute.xlu2 %855  ;;  %v937_v62 = vsel %vm477_vm3, %v915_v58, 0  ;;  %v5670_v48 = vld [vmem:[%s7502_s4 + $0x18] sm:$0xff] }
 0x20c   :  { %877 = vmatpush.bf16.msrb.mxu2 %v856_v50 }
 0x211   :  { %v691_v52 = vpop.permute.xlu0 %690 }
 0x212   :  { %v1125_v5 = vpop.permute.xlu1 %1124 }
 0x213   :  { %509 = vmatpush.bf16.xpose.msrb.mxu3 %v491_v53  ;;  %734 = vmatpush.bf16.xpose.msrb.mxu1 %v720_v54  ;;  %v1145_v14 = vsel %vm477_vm3, %v1125_v5, 0 }
 0x219   :  { %v1131_v59 = vpop.permute.xlu0 %1130 }
 0x21a   :  { %v1154_v60 = vsel %vm477_vm3, %v1131_v59, 0  ;;  %4127 = vmatmul.msk.bf16.vlgmr.msrb.gmra.mxu3 %vm477_vm3, %v5487_v31  ;;  %v905_v9 = vpop.permute.xlu1 %904 }
 0x21b   :  { %946 = vmatpush.bf16.xpose.msra.mxu3 %v940_v57  ;;  %735 = vmatpush.bf16.xpose.msrb.mxu1 %v717_v61  ;;  %v5685_v57 = vld [vmem:[%s7502_s4 + $0x20] sm:$0xff] }
 0x221   :  { %v913_v63 = vpop.permute.xlu0 %912 }
 0x222   :  { %4135 = vmatmul.msk.bf16.vlgmr.msrb.gmra.mxu1 %vm477_vm3, %v689_v25  ;;  %v934_v2 = vsel %vm477_vm3, %v913_v63, 0  ;;  %v1121_v11 = vpop.permute.xlu1 %1120 }
 0x223   :  { %947 = vmatpush.bf16.xpose.msra.mxu3 %v937_v62  ;;  %1160 = vmatpush.bf16.xpose.msra.mxu1 %v1154_v60 }
 0x229   :  { %v911_v7 = vpop.permute.xlu0 %910 }
 0x22a   :  { %4128 = vmatmul.msk.bf16.gmra.mxu3 %vm477_vm3, %v5481_v19  ;;  %v931_v31 = vsel %vm477_vm3, %v911_v7, 0  ;;  %v852_v19 = vpop.permute.xlu1 %851 }
 0x22b   :  { %948 = vmatpush.bf16.xpose.msra.mxu3 %v934_v2  ;;  %1161 = vmatpush.bf16.xpose.msra.mxu1 %v1151_v3  ;;  %v5700_v2 = vld [vmem:[%s7502_s4 + $0x28] sm:$0xff] }
 0x231   :  { %v1117_v13 = vpop.permute.xlu0 %1116 }
 0x232   :  { %4136 = vmatmul.msk.bf16.gmra.mxu1 %vm477_vm3, %v691_v52  ;;  %v695_v18 = vpop.permute.xlu1 %694 }
 0x233   :  { %949 = vmatpush.bf16.xpose.msra.mxu3 %v931_v31  ;;  %1162 = vmatpush.bf16.xpose.msra.mxu1 %v1148_v8 }
 0x239   :  { %v907_v15 = vpop.permute.xlu0 %906 }
 0x23a   :  { %4129 = vmatmul.msk.bf16.gmra.mxu3 %vm477_vm3, %v5491_v39  ;;  %v5625_v39 = vld [vmem:[%s7502_s4] sm:$0xff] }
 0x23b   :  { %1163 = vmatpush.bf16.xpose.msra.mxu1 %v1145_v14  ;;  %v5715_v14 = vld [vmem:[%s7502_s4 + $0x30] sm:$0xff] }
 0x241   :  { %v854_v6 = vpop.permute.xlu0 %853 }
 0x242   :  { %4137 = vmatmul.msk.bf16.gmra.mxu1 %vm477_vm3, %v5565_v26  ;;  %878 = vmatpush.bf16.msrb.mxu2 %v854_v6 }
 0x246   :  { %879 = vmatpush.bf16.msrb.mxu2 %v852_v19 }
 0x249   :  { %v850_v17 = vpop.permute.xlu0 %849 }
 0x24a   :  { %4130 = vmatmul.msk.bf16.gmra.mxu3 %vm477_vm3, %v5502_v10  ;;  %880 = vmatpush.bf16.msrb.mxu2 %v850_v17 }
 0x251   :  { %v1123_v4 = vpop.permute.xlu0 %1122 }
 0x252   :  { %4138 = vmatmul.msk.bf16.gmra.mxu1 %vm477_vm3, %v695_v18  ;;  %v5728_v18 = vld [vmem:[%s7502_s4 + $0x38] sm:$0xff] }
 0x259   :  { %v1284_v21 = vpop.permute.xlu0 %1283 }
 0x25a   :  { %4143 = vmatmul.msk.bf16.vlgmr.msra.gmra.mxu3 %vm477_vm3, %v5573_v29  ;;  %1305 = vmatpush.bf16.msra.mxu2 %v1284_v21  ;;  %v5640_v29 = vld [vmem:[%s7502_s4 + $0x8] sm:$0xff] }
 0x25e   :  { %1306 = vmatpush.bf16.msra.mxu2 %v5578_v36 }
 0x262   :  { %4151 = vmatmul.msk.bf16.vlgmr.msra.gmra.mxu1 %vm477_vm3, %v1117_v13 }
 0x26a   :  { %4144 = vmatmul.msk.bf16.gmra.mxu3 %vm477_vm3, %v905_v9 }
 0x272   :  { %4152 = vmatmul.msk.bf16.gmra.mxu1 %vm477_vm3, %v5575_v32 }
 0x27a   :  { %4145 = vmatmul.msk.bf16.gmra.mxu3 %vm477_vm3, %v907_v15 }
 0x282   :  { %4153 = vmatmul.msk.bf16.gmra.mxu1 %vm477_vm3, %v1121_v11 }
 0x28a   :  { %4146 = vmatmul.msk.bf16.gmra.mxu3 %vm477_vm3, %v5582_v43 }
 0x292   :  { %4154 = vmatmul.msk.bf16.gmra.mxu1 %vm477_vm3, %v1123_v4 }
 0x29d   :  { %v511_v10 = vpop.f32.mrf.mxu3 }
 0x29e   :  { %v5628_v23 = vadd.f32 %v511_v10, %v5625_v39 }
 0x29f   :  { %v737_v24 = vpop.f32.mrf.mxu1 }
 0x2a0   :  { %v5631_v25 = vadd.f32 %v737_v24, %v5625_v39  ;;  %v531_v26 = vsel %vm362_vm2, %v5628_v23, -inf }
 0x2a1   :  { %532 = vmax.xlane.f32.xlu0 %v531_v26 }
 0x2a2   :  { %v757_v27 = vsel %vm362_vm2, %v5631_v25, -inf }
 0x2a3   :  { %758 = vmax.xlane.f32.xlu1 %v757_v27 }
 0x2a5   :  { %v513_v28 = vpop.f32.mrf.mxu3 }
 0x2a6   :  { %v5653_v36 = vadd.f32 %v513_v28, %v5640_v29 }
 0x2a7   :  { %v739_v30 = vpop.f32.mrf.mxu1 }
 0x2a8   :  { %v5643_v32 = vadd.f32 %v739_v30, %v5640_v29  ;;  %v534_v44 = vsel %vm362_vm2, %v5653_v36, -inf }
 0x2aa   :  { %v760_v33 = vsel %vm362_vm2, %v5643_v32, -inf }
 0x2ab   :  { %761 = vmax.xlane.f32.xlu2 %v760_v33 }
 0x2ad   :  { %v516_v35 = vpop.f32.mrf.mxu3 }
 0x2ae   :  { %v5656_v40 = vadd.f32 %v516_v35, %v5650_v34 }
 0x2af   :  { %v742_v41 = vpop.f32.mrf.mxu1 }
 0x2b0   :  { %v5659_v42 = vadd.f32 %v742_v41, %v5650_v34  ;;  %v537_v43 = vsel %vm362_vm2, %v5656_v40, -inf }
 0x2b1   :  { %538 = vmax.xlane.f32.xlu0 %v537_v43 }
 0x2b2   :  { %v763_v45 = vsel %vm362_vm2, %v5659_v42, -inf }
 0x2b3   :  { %535 = vmax.xlane.f32.xlu2 %v534_v44  ;;  %764 = vmax.xlane.f32.xlu1 %v763_v45 }
 0x2b5   :  { %v518_v49 = vpop.f32.mrf.mxu3 }
 0x2b6   :  { %v5673_v50 = vadd.f32 %v518_v49, %v5670_v48 }
 0x2b7   :  { %v744_v51 = vpop.f32.mrf.mxu1 }
 0x2b8   :  { %v5676_v52 = vadd.f32 %v744_v51, %v5670_v48  ;;  %v540_v54 = vsel %vm362_vm2, %v5673_v50, -inf }
 0x2ba   :  { %v766_v53 = vsel %vm362_vm2, %v5676_v52, -inf }
 0x2bb   :  { %767 = vmax.xlane.f32.xlu2 %v766_v53  ;;  %541 = vmax.xlane.f32.xlu1 %v540_v54 }
 0x2bd   :  { %v521_v58 = vpop.f32.mrf.mxu3 }
 0x2be   :  { %v5688_v59 = vadd.f32 %v521_v58, %v5685_v57 }
 0x2bf   :  { %v747_v60 = vpop.f32.mrf.mxu1 }
 0x2c0   :  { %v5691_v61 = vadd.f32 %v747_v60, %v5685_v57  ;;  %v543_v63 = vsel %vm362_vm2, %v5688_v59, -inf }
 0x2c2   :  { %v769_v62 = vsel %vm362_vm2, %v5691_v61, -inf }
 0x2c3   :  { %770 = vmax.xlane.f32.xlu2 %v769_v62  ;;  %544 = vmax.xlane.f32.xlu1 %v543_v63 }
 0x2c5   :  { %v523_v3 = vpop.f32.mrf.mxu3 }
 0x2c6   :  { %v5703_v5 = vadd.f32 %v523_v3, %v5700_v2 }
 0x2c7   :  { %v749_v7 = vpop.f32.mrf.mxu1 }
 0x2c8   :  { %v5706_v31 = vadd.f32 %v749_v7, %v5700_v2  ;;  %v546_v8 = vsel %vm362_vm2, %v5703_v5, -inf }
 0x2ca   :  { %v772_v9 = vsel %vm362_vm2, %v5706_v31, -inf }
 0x2cb   :  { %547 = vmax.xlane.f32.xlu2 %v546_v8  ;;  %773 = vmax.xlane.f32.xlu0 %v772_v9 }
 0x2cd   :  { %v526_v13 = vpop.f32.mrf.mxu3 }
 0x2ce   :  { %v5723_v17 = vadd.f32 %v526_v13, %v5715_v14 }
 0x2cf   :  { %v752_v15 = vpop.f32.mrf.mxu1 }
 0x2d0   :  { %v5718_v11 = vadd.f32 %v752_v15, %v5715_v14  ;;  %v549_v24 = vsel %vm362_vm2, %v5723_v17, -inf }
 0x2d2   :  { %v775_v6 = vsel %vm362_vm2, %v5718_v11, -inf }
 0x2d3   :  { %776 = vmax.xlane.f32.xlu0 %v775_v6 }
 0x2d5   :  { %v528_v19 = vpop.f32.mrf.mxu3 }
 0x2d6   :  { %v5738_v27 = vadd.f32 %v528_v19, %v5728_v18 }
 0x2d7   :  { %v754_v4 = vpop.f32.mrf.mxu1 }
 0x2d8   :  { %v5731_v21 = vadd.f32 %v754_v4, %v5728_v18  ;;  %v552_v41 = vsel %vm362_vm2, %v5738_v27, -inf }
 0x2da   :  { %v778_v10 = vsel %vm362_vm2, %v5731_v21, -inf }
 0x2db   :  { %779 = vmax.xlane.f32.xlu1 %v778_v10  ;;  %550 = vmax.xlane.f32.xlu0 %v549_v24 }
 0x2dd   :  { %v951_v26 = vpop.f32.mrf.mxu3 }
 0x2de   :  { %v5741_v28 = vadd.f32 %v951_v26, %v5625_v39 }
 0x2df   :  { %v1165_v30 = vpop.f32.mrf.mxu1 }
 0x2e0   :  { %v5744_v33 = vadd.f32 %v1165_v30, %v5625_v39  ;;  %v971_v35 = vsel %vm362_vm2, %v5741_v28, -inf }
 0x2e1   :  { %972 = vmax.xlane.f32.xlu2 %v971_v35 }
 0x2e2   :  { %v1185_v43 = vsel %vm362_vm2, %v5744_v33, -inf }
 0x2e3   :  { %553 = vmax.xlane.f32.xlu1 %v552_v41  ;;  %1186 = vmax.xlane.f32.xlu0 %v1185_v43 }
 0x2e5   :  { %v953_v44 = vpop.f32.mrf.mxu3 }
 0x2e6   :  { %v5753_v45 = vadd.f32 %v953_v44, %v5640_v29 }
 0x2e7   :  { %v1167_v49 = vpop.f32.mrf.mxu1 }
 0x2e8   :  { %v5756_v39 = vadd.f32 %v1167_v49, %v5640_v29  ;;  %v974_v53 = vsel %vm362_vm2, %v5753_v45, -inf }
 0x2ea   :  { %v1188_v51 = vsel %vm362_vm2, %v5756_v39, -inf }
 0x2eb   :  { %1189 = vmax.xlane.f32.xlu1 %v1188_v51  ;;  %975 = vmax.xlane.f32.xlu0 %v974_v53 }
 0x2ed   :  { %v956_v54 = vpop.f32.mrf.mxu3 }
 0x2ee   :  { %v5763_v58 = vadd.f32 %v956_v54, %v5650_v34 }
 0x2ef   :  { %v1170_v60 = vpop.f32.mrf.mxu1 }
 0x2f0   :  { %v5766_v62 = vadd.f32 %v1170_v60, %v5650_v34  ;;  %v977_v29 = vsel %vm362_vm2, %v5763_v58, -inf }
 0x2f1   :  { %978 = vmax.xlane.f32.xlu2 %v977_v29 }
 0x2f2   :  { %v1191_v63 = vsel %vm362_vm2, %v5766_v62, -inf }
 0x2f3   :  { %1192 = vmax.xlane.f32.xlu0 %v1191_v63 }
 0x2f5   :  { %v958_v3 = vpop.f32.mrf.mxu3 }
 0x2f6   :  { %v5773_v7 = vadd.f32 %v958_v3, %v5670_v48 }
 0x2f7   :  { %v1172_v8 = vpop.f32.mrf.mxu1 }
 0x2f8   :  { %v5776_v9 = vadd.f32 %v1172_v8, %v5670_v48  ;;  %v980_v34 = vsel %vm362_vm2, %v5773_v7, -inf }
 0x2f9   :  { %981 = vmax.xlane.f32.xlu1 %v980_v34 }
 0x2fa   :  { %v1194_v13 = vsel %vm362_vm2, %v5776_v9, -inf }
 0x2fb   :  { %1195 = vmax.xlane.f32.xlu2 %v1194_v13 }
 0x2fd   :  { %v961_v15 = vpop.f32.mrf.mxu3 }
 0x2fe   :  { %v5783_v6 = vadd.f32 %v961_v15, %v5685_v57 }
 0x2ff   :  { %v1175_v19 = vpop.f32.mrf.mxu1 }
 0x300   :  { %v5786_v4 = vadd.f32 %v1175_v19, %v5685_v57  ;;  %v983_v48 = vsel %vm362_vm2, %v5783_v6, -inf }
 0x301   :  { %984 = vmax.xlane.f32.xlu0 %v983_v48 }
 0x302   :  { %v1197_v10 = vsel %vm362_vm2, %v5786_v4, -inf }
 0x303   :  { %1198 = vmax.xlane.f32.xlu1 %v1197_v10 }
 0x305   :  { %v963_v24 = vpop.f32.mrf.mxu3 }
 0x306   :  { %v5793_v26 = vadd.f32 %v963_v24, %v5700_v2 }
 0x307   :  { %v1177_v30 = vpop.f32.mrf.mxu1 }
 0x308   :  { %v5796_v35 = vadd.f32 %v1177_v30, %v5700_v2  ;;  %v986_v57 = vsel %vm362_vm2, %v5793_v26, -inf }
 0x309   :  { %987 = vmax.xlane.f32.xlu2 %v986_v57 }
 0x30a   :  { %v1200_v41 = vsel %vm362_vm2, %v5796_v35, -inf }
 0x30b   :  { %1201 = vmax.xlane.f32.xlu0 %v1200_v41 }
 0x30d   :  { %v966_v49 = vpop.f32.mrf.mxu3 }
 0x30e   :  { %v5808_v2 = vadd.f32 %v966_v49, %v5715_v14 }
 0x30f   :  { %v1180_v43 = vpop.f32.mrf.mxu1 }
 0x310   :  { %v5803_v44 = vadd.f32 %v1180_v43, %v5715_v14  ;;  %v989_v34 = vsel %vm362_vm2, %v5808_v2, -inf }
 0x312   :  { %v1203_v51 = vsel %vm362_vm2, %v5803_v44, -inf }
 0x313   :  { %1204 = vmax.xlane.f32.xlu2 %v1203_v51 }
 0x314   :  { %v533_v53 = vpop.xlane.xlu0 %532 }
 0x315   :  { %v555_v3 = vsub.f32 %v5628_v23, %v533_v53  ;;  %v968_v15 = vpop.f32.mrf.mxu3 }
 0x316   :  { %v759_v54 = vpop.xlane.xlu1 %758 }
 0x317   :  { %v781_v60 = vsub.f32 %v5631_v25, %v759_v54  ;;  %v1182_v29 = vpop.f32.mrf.mxu1  ;;  %v563_v14 = vmul.f32 1.442695, %v555_v3  ;;  %v5820_v25 = vadd.f32 %v968_v15, %v5728_v18 }
 0x318   :  { %v5812_v63 = vadd.f32 %v1182_v29, %v5728_v18 }
 0x319   :  { %v789_v8 = vmul.f32 1.442695, %v781_v60  ;;  %v992_v10 = vsel %vm362_vm2, %v5820_v25, -inf }
 0x31a   :  { %v1206_v13 = vsel %vm362_vm2, %v5812_v63, -inf }
 0x31b   :  { %4634 = vpow2.f32 %v789_v8  ;;  %990 = vmax.xlane.f32.xlu2 %v989_v34  ;;  %1207 = vmax.xlane.f32.xlu1 %v1206_v13 }
 0x31c   :  { %4636 = vpow2.f32 %v563_v14 }
 0x31e   :  { %v762_v19 = vpop.xlane.xlu2 %761 }
 0x31f   :  { %v782_v23 = vsub.f32 %v5643_v32, %v762_v19 }
 0x321   :  { %v5822_v48 = vpop.eup %4634  ;;  %v791_v30 = vmul.f32 1.442695, %v782_v23 }
 0x322   :  { %v805_v24 = vsel %vm362_vm2, %v5822_v48, 0.0  ;;  %v5829_v43 = vpop.eup %4636 }
 0x323   :  { %993 = vmax.xlane.f32.xlu1 %v992_v10  ;;  %806 = vadd.xlane.f32.xlu0 %v805_v24  ;;  %4638 = vpow2.f32 %v791_v30  ;;  %v579_v32 = vsel %vm362_vm2, %v5829_v43, 0.0 }
 0x324   :  { %v539_v53 = vpop.xlane.xlu0 %538 }
 0x326   :  { %v536_v57 = vpop.xlane.xlu2 %535  ;;  %v765_v41 = vpop.xlane.xlu1 %764 }
 0x327   :  { %v556_v18 = vsub.f32 %v5653_v36, %v536_v57  ;;  %v783_v51 = vsub.f32 %v5659_v42, %v765_v41  ;;  %v557_v36 = vsub.f32 %v5656_v40, %v539_v53 }
 0x329   :  { %v565_v49 = vmul.f32 1.442695, %v556_v18  ;;  %v793_v54 = vmul.f32 1.442695, %v783_v51  ;;  %v5835_v3 = vpop.eup %4638  ;;  %v567_v14 = vmul.f32 1.442695, %v557_v36 }
 0x32a   :  { %v808_v15 = vsel %vm362_vm2, %v5835_v3, 0.0 }
 0x32b   :  { %4640 = vpow2.f32 %v565_v49  ;;  %580 = vadd.xlane.f32.xlu1 %v579_v32 }
 0x32c   :  { %4642 = vpow2.f32 %v793_v54 }
 0x32e   :  { %v768_v60 = vpop.xlane.xlu2 %767  ;;  %v542_v29 = vpop.xlane.xlu1 %541 }
 0x32f   :  { %v558_v8 = vsub.f32 %v5673_v50, %v542_v29  ;;  %v784_v24 = vsub.f32 %v5676_v52, %v768_v60 }
 0x331   :  { %v5838_v34 = vpop.eup %4640  ;;  %v569_v13 = vmul.f32 1.442695, %v558_v8 }
 0x332   :  { %v582_v42 = vsel %vm362_vm2, %v5838_v34, 0.0  ;;  %v5845_v10 = vpop.eup %4642 }
 0x333   :  { %583 = vadd.xlane.f32.xlu2 %v582_v42  ;;  %809 = vadd.xlane.f32.xlu1 %v808_v15  ;;  %4644 = vpow2.f32 %v569_v13  ;;  %v811_v18 = vsel %vm362_vm2, %v5845_v10, 0.0 }
 0x334   :  { %4646 = vpow2.f32 %v567_v14 }
 0x336   :  { %v771_v19 = vpop.xlane.xlu2 %770  ;;  %v545_v23 = vpop.xlane.xlu1 %544 }
 0x337   :  { %v785_v50 = vsub.f32 %v5691_v61, %v771_v19  ;;  %v559_v40 = vsub.f32 %v5688_v59, %v545_v23  ;;  %v795_v61 = vmul.f32 1.442695, %v784_v24 }
 0x339   :  { %v797_v30 = vmul.f32 1.442695, %v785_v50  ;;  %v571_v57 = vmul.f32 1.442695, %v559_v40  ;;  %v5850_v41 = vpop.eup %4644 }
 0x33a   :  { %v588_v49 = vsel %vm362_vm2, %v5850_v41, 0.0  ;;  %v5856_v59 = vpop.eup %4646 }
 0x33b   :  { %4648 = vpow2.f32 %v797_v30  ;;  %812 = vadd.xlane.f32.xlu2 %v811_v18  ;;  %589 = vadd.xlane.f32.xlu1 %v588_v49  ;;  %v585_v29 = vsel %vm362_vm2, %v5856_v59, 0.0 }
 0x33c   :  { %4650 = vpow2.f32 %v571_v57 }
 0x33d   :  { %4652 = vpow2.f32 %v795_v61 }
 0x33e   :  { %v774_v51 = vpop.xlane.xlu0 %773  ;;  %v548_v23 = vpop.xlane.xlu2 %547 }
 0x33f   :  { %v786_v52 = vsub.f32 %v5706_v31, %v774_v51 }
 0x341   :  { %v5859_v32 = vpop.eup %4648  ;;  %v799_v53 = vmul.f32 1.442695, %v786_v52 }
 0x342   :  { %v5861_v54 = vpop.eup %4650  ;;  %v817_v60 = vsel %vm362_vm2, %v5859_v32, 0.0 }
 0x343   :  { %v591_v8 = vsel %vm362_vm2, %v5861_v54, 0.0  ;;  %586 = vadd.xlane.f32.xlu2 %v585_v29  ;;  %4654 = vpow2.f32 %v799_v53  ;;  %818 = vadd.xlane.f32.xlu1 %v817_v60  ;;  %v5869_v31 = vpop.eup %4652  ;;  %v560_v29 = vsub.f32 %v5703_v5, %v548_v23 }
 0x344   :  { %592 = vadd.xlane.f32.xlu0 %v591_v8  ;;  %v814_v13 = vsel %vm362_vm2, %v5869_v31, 0.0 }
 0x346   :  { %v777_v15 = vpop.xlane.xlu0 %776 }
 0x349   :  { %v5871_v36 = vpop.eup %4654 }
 0x34a   :  { %v820_v42 = vsel %vm362_vm2, %v5871_v36, 0.0 }
 0x34b   :  { %815 = vadd.xlane.f32.xlu2 %v814_v13 }
 0x34c   :  { %821 = vadd.xlane.f32.xlu0 %v820_v42 }
 0x34e   :  { %v780_v14 = vpop.xlane.xlu1 %779  ;;  %v551_v19 = vpop.xlane.xlu0 %550 }
 0x34f   :  { %v561_v30 = vsub.f32 %v5723_v17, %v551_v19  ;;  %v788_v51 = vsub.f32 %v5731_v21, %v780_v14  ;;  %v573_v21 = vmul.f32 1.442695, %v560_v29 }
 0x351   :  { %v575_v49 = vmul.f32 1.442695, %v561_v30  ;;  %v803_v60 = vmul.f32 1.442695, %v788_v51 }
 0x353   :  { %4656 = vpow2.f32 %v575_v49 }
 0x354   :  { %v973_v24 = vpop.xlane.xlu2 %972 }
 0x356   :  { %v554_v50 = vpop.xlane.xlu1 %553  ;;  %v1187_v40 = vpop.xlane.xlu0 %1186 }
 0x357   :  { %v562_v18 = vsub.f32 %v5738_v27, %v554_v50  ;;  %v995_v27 = vsub.f32 %v5741_v28, %v973_v24  ;;  %v787_v28 = vsub.f32 %v5718_v11, %v777_v15 }
 0x359   :  { %v577_v61 = vmul.f32 1.442695, %v562_v18  ;;  %v5890_v8 = vpop.eup %4656  ;;  %v1003_v5 = vmul.f32 1.442695, %v995_v27 }
 0x35a   :  { %v597_v19 = vsel %vm362_vm2, %v5890_v8, 0.0 }
 0x35b   :  { %4658 = vpow2.f32 %v577_v61 }
 0x35c   :  { %1279 = vrot.lane.b32.xlu1 %v5517_v20, %s5208_s22  ;;  %4660 = vpow2.f32 %v803_v60 }
 0x35e   :  { %v1190_v57 = vpop.xlane.xlu1 %1189 }
 0x35f   :  { %v1210_v49 = vsub.f32 %v5756_v39, %v1190_v57  ;;  %v1209_v39 = vsub.f32 %v5744_v33, %v1187_v40 }
 0x360   :  { %1069 = vrot.lane.b32.xlu0 %v5504_v12, %s5207_s20 }
 0x361   :  { %v5895_v42 = vpop.eup %4658  ;;  %v1219_v15 = vmul.f32 1.442695, %v1210_v49 }
 0x362   :  { %v600_v50 = vsel %vm362_vm2, %v5895_v42, 0.0  ;;  %v5905_v24 = vpop.eup %4660 }
 0x363   :  { %1067 = vrot.lane.b32.xlu2 %v5512_v16, %s5207_s20  ;;  %v976_v16 = vpop.xlane.xlu0 %975  ;;  %v826_v51 = vsel %vm362_vm2, %v5905_v24, 0.0 }
 0x364   :  { %v979_v12 = vpop.xlane.xlu2 %978  ;;  %v996_v53 = vsub.f32 %v5753_v45, %v976_v16 }
 0x365   :  { %v997_v45 = vsub.f32 %v5763_v58, %v979_v12  ;;  %v801_v58 = vmul.f32 1.442695, %v787_v28 }
 0x366   :  { %v1005_v17 = vmul.f32 1.442695, %v996_v53 }
 0x367   :  { %v1007_v30 = vmul.f32 1.442695, %v997_v45 }
 0x368   :  { %4662 = vpow2.f32 %v1005_v17 }
 0x369   :  { %4664 = vpow2.f32 %v573_v21 }
 0x36a   :  { %4666 = vpow2.f32 %v1003_v5 }
 0x36b   :  { %1277 = vrot.lane.b32.xlu2 %v5524_v22, %s5208_s22  ;;  %v5900_v23 = vpop.xlane.xlu0 %1192  ;;  %4668 = vpow2.f32 %v1007_v30 }
 0x36c   :  { %v982_v52 = vpop.xlane.xlu1 %981  ;;  %4670 = vpow2.f32 %v801_v58 }
 0x36d   :  { %v998_v11 = vsub.f32 %v5773_v7, %v982_v52  ;;  %4672 = vpow2.f32 %v1219_v15  ;;  %v1217_v52 = vmul.f32 1.442695, %v1209_v39 }
 0x36e   :  { %v5892_v13 = vpop.xlane.xlu2 %1195  ;;  %v5910_v61 = vpop.eup %4662 }
 0x36f   :  { %v5916_v16 = vpop.eup %4664  ;;  %v1022_v60 = vsel %vm362_vm2, %v5910_v61, 0.0  ;;  %v1009_v17 = vmul.f32 1.442695, %v998_v11 }
 0x370   :  { %v5922_v57 = vpop.eup %4666  ;;  %v594_v29 = vsel %vm362_vm2, %v5916_v16, 0.0 }
 0x371   :  { %v5928_v7 = vpop.eup %4668  ;;  %4674 = vpow2.f32 %v1009_v17 }
 0x372   :  { %v5934_v33 = vpop.eup %4670  ;;  %v1025_v5 = vsel %vm362_vm2, %v5928_v7, 0.0  ;;  %4676 = vpow2.f32 %v1217_v52 }
 0x373   :  { %v823_v28 = vsel %vm362_vm2, %v5934_v33, 0.0 }
 0x374   :  { %v985_v53 = vpop.xlane.xlu0 %984 }
 0x376   :  { %v1199_v14 = vpop.xlane.xlu1 %1198 }
 0x377   :  { %v1213_v40 = vsub.f32 %v5786_v4, %v1199_v14 }
 0x379   :  { %v1225_v30 = vmul.f32 1.442695, %v1213_v40 }
 0x37b   :  { %4678 = vpow2.f32 %v1225_v30 }
 0x37c   :  { %v5907_v18 = vpop.xlane.xlu2 %987 }
 0x37e   :  { %v1202_v45 = vpop.xlane.xlu0 %1201 }
 0x37f   :  { %v1214_v49 = vsub.f32 %v5796_v35, %v1202_v45 }
 0x381   :  { %v1227_v15 = vmul.f32 1.442695, %v1214_v49 }
 0x383   :  { %4680 = vpow2.f32 %v1227_v15 }
 0x386   :  { %598 = vadd.xlane.f32.xlu1 %v597_v19  ;;  %v5926_v27 = vpop.xlane.xlu2 %1204  ;;  %v1019_v19 = vsel %vm362_vm2, %v5922_v57, 0.0 }
 0x38a   :  { %601 = vadd.xlane.f32.xlu0 %v600_v50  ;;  %v5939_v50 = vpop.eup %4672 }
 0x38b   :  { %v5944_v58 = vpop.eup %4674  ;;  %v1236_v14 = vsel %vm362_vm2, %v5939_v50, 0.0 }
 0x38c   :  { %v5950_v11 = vpop.eup %4676 }
 0x38d   :  { %v1233_v35 = vsel %vm362_vm2, %v5950_v11, 0.0 }
 0x38e   :  { %v5912_v12 = vpop.xlane.xlu1 %1207  ;;  %827 = vadd.xlane.f32.xlu1 %v826_v51  ;;  %v5946_v51 = vpop.xlane.xlu2 %990 }
 0x392   :  { %1023 = vadd.xlane.f32.xlu0 %v1022_v60  ;;  %v1028_v60 = vsel %vm362_vm2, %v5944_v58, 0.0 }
 0x394   :  { %595 = vadd.xlane.f32.xlu2 %v594_v29  ;;  %v5956_v29 = vpop.eup %4678 }
 0x395   :  { %v1245_v40 = vsel %vm362_vm2, %v5956_v29, 0.0  ;;  %v5961_v45 = vpop.eup %4680 }
 0x396   :  { %v5930_v21 = vpop.xlane.xlu1 %993  ;;  %1020 = vadd.xlane.f32.xlu1 %v1019_v19  ;;  %v807_v39 = vpop.xlane.xlu0 %806  ;;  %v999_v19 = vsub.f32 %v5783_v6, %v985_v53  ;;  %v1216_v53 = vsub.f32 %v5812_v63, %v5912_v12 }
 0x398   :  { %v1011_v30 = vmul.f32 1.442695, %v999_v19 }
 0x39a   :  { %1026 = vadd.xlane.f32.xlu0 %v1025_v5 }
 0x39c   :  { %824 = vadd.xlane.f32.xlu2 %v823_v28 }
 0x39e   :  { %v581_v4 = vpop.xlane.xlu1 %580  ;;  %1237 = vadd.xlane.f32.xlu1 %v1236_v14 }
 0x39f   :  { %4682 = vrcp.f32 %v581_v4 }
 0x3a0   :  { %4684 = vrcp.f32 %v807_v39 }
 0x3a2   :  { %1029 = vadd.xlane.f32.xlu0 %v1028_v60 }
 0x3a4   :  { %1234 = vadd.xlane.f32.xlu2 %v1233_v35 }
 0x3a5   :  { %v4683_v5 = vpop.eup %4682 }
 0x3a6   :  { %v584_v17 = vpop.xlane.xlu2 %583  ;;  %v810_v52 = vpop.xlane.xlu1 %809  ;;  %v611_v14 = vmul.f32 %v4683_v5, %v5829_v43  ;;  %v1231_v43 = vmul.f32 1.442695, %v1216_v53 }
 0x3a7   :  { %4686 = vrcp.f32 %v584_v17  ;;  %v4685_v28 = vpop.eup %4684  ;;  %v1248_v17 = vsel %vm362_vm2, %v5961_v45, 0.0 }
 0x3a8   :  { %4688 = vrcp.f32 %v810_v52  ;;  %v837_v39 = vmul.f32 %v4685_v28, %v5822_v48 }
 0x3a9   :  { %4690 = vpow2.f32 %v1011_v30 }
 0x3aa   :  { %1246 = vadd.xlane.f32.xlu0 %v1245_v40 }
 0x3ad   :  { %v4687_v49 = vpop.eup %4686 }
 0x3ae   :  { %v4689_v4 = vpop.eup %4688  ;;  %v612_v15 = vmul.f32 %v4687_v49, %v5838_v34  ;;  %v813_v60 = vpop.xlane.xlu2 %812 }
 0x3af   :  { %v838_v6 = vmul.f32 %v4689_v4, %v5835_v3  ;;  %v590_v19 = vpop.xlane.xlu1 %589  ;;  %v5973_v48 = vpop.eup %4690 }
 0x3b0   :  { %v619_v35 = vpack.c.bf16 %v612_v15, %v611_v14  ;;  %4692 = vrcp.f32 %v590_v19  ;;  %v1031_v63 = vsel %vm362_vm2, %v5973_v48, 0.0 }
 0x3b1   :  { %v845_v52 = vpack.c.bf16 %v838_v6, %v837_v39 }
 0x3b2   :  { %1249 = vadd.xlane.f32.xlu0 %v1248_v17  ;;  %4131 = vmatmul.msk.bf16.vlgmr.msrb.gmra.mxu0 %vm362_vm2, %v619_v35  ;;  %v1211_v35 = vsub.f32 %v5766_v62, %v5900_v23  ;;  %v1000_v62 = vsub.f32 %v5793_v26, %v5907_v18  ;;  %v1002_v18 = vsub.f32 %v5820_v25, %v5930_v21 }
 0x3b3   :  { %4139 = vmatmul.msk.bf16.vlgmr.msrb.gmra.mxu2 %vm362_vm2, %v845_v52 }
 0x3b6   :  { %v587_v3 = vpop.xlane.xlu2 %586  ;;  %v4693_v34 = vpop.eup %4692 }
 0x3b7   :  { %4694 = vrcp.f32 %v587_v3  ;;  %1065 = vrot.lane.b32.xlu1 %v5517_v20, %s5207_s20  ;;  %v5983_v5 = vpop.xlane.xlu0 %592  ;;  %v614_v49 = vmul.f32 %v4693_v34, %v5850_v41  ;;  %v819_v39 = vpop.xlane.xlu1 %818 }
 0x3b8   :  { %4696 = vpow2.f32 %v1231_v43  ;;  %v1221_v43 = vmul.f32 1.442695, %v1211_v35 }
 0x3b9   :  { %4698 = vrcp.f32 %v813_v60 }
 0x3ba   :  { %1032 = vadd.xlane.f32.xlu0 %v1031_v63 }
 0x3bc   :  { %1063 = vrot.lane.b32.xlu2 %v5524_v22, %s5207_s20 }
 0x3bd   :  { %v4695_v12 = vpop.eup %4694 }
 0x3be   :  { %v5981_v40 = vpop.eup %4696  ;;  %v816_v28 = vpop.xlane.xlu2 %815  ;;  %v613_v30 = vmul.f32 %v4695_v12, %v5856_v59 }
 0x3bf   :  { %4700 = vrcp.f32 %v816_v28  ;;  %v1254_v4 = vsel %vm362_vm2, %v5981_v40, 0.0  ;;  %v4699_v22 = vpop.eup %4698  ;;  %v822_v6 = vpop.xlane.xlu0 %821 }
 0x3c0   :  { %v620_v20 = vpack.c.bf16 %v614_v49, %v613_v30  ;;  %v839_v15 = vmul.f32 %v4699_v22, %v5845_v10  ;;  %4702 = vrcp.f32 %v822_v6  ;;  %v1212_v10 = vsub.f32 %v5776_v9, %v5892_v13 }
 0x3c1   :  { %4704 = vrcp.f32 %v819_v39  ;;  %v1215_v9 = vsub.f32 %v5803_v44, %v5926_v27  ;;  %v1013_v13 = vmul.f32 1.442695, %v1000_v62  ;;  %v1017_v49 = vmul.f32 1.442695, %v1002_v18 }
 0x3c2   :  { %1255 = vadd.xlane.f32.xlu0 %v1254_v4  ;;  %4132 = vmatmul.msk.bf16.gmra.mxu0 %vm362_vm2, %v620_v20  ;;  %v1223_v34 = vmul.f32 1.442695, %v1212_v10  ;;  %4706 = vpow2.f32 %v1221_v43 }
 0x3c3   :  { %v1229_v28 = vmul.f32 1.442695, %v1215_v9 }
 0x3c4   :  { %4708 = vpow2.f32 %v1223_v34 }
 0x3c5   :  { %v4701_v14 = vpop.eup %4700  ;;  %4710 = vpow2.f32 %v1013_v13 }
 0x3c6   :  { %v840_v60 = vmul.f32 %v4701_v14, %v5869_v31  ;;  %v1068_v59 = vpop.permute.xlu2 %1067  ;;  %v4703_v17 = vpop.eup %4702  ;;  %4712 = vpow2.f32 %v1229_v28 }
 0x3c7   :  { %v4705_v19 = vpop.eup %4704  ;;  %v842_v3 = vmul.f32 %v4703_v17, %v5871_v36 }
 0x3c8   :  { %v846_v53 = vpack.c.bf16 %v840_v60, %v839_v15  ;;  %v841_v63 = vmul.f32 %v4705_v19, %v5859_v32  ;;  %v6004_v12 = vpop.eup %4706  ;;  %v1001_v32 = vsub.f32 %v5808_v2, %v5946_v51 }
 0x3c9   :  { %v1239_v26 = vsel %vm362_vm2, %v6004_v12, 0.0 }
 0x3ca   :  { %4140 = vmatmul.msk.bf16.gmra.mxu2 %vm362_vm2, %v846_v53  ;;  %v847_v23 = vpack.c.bf16 %v842_v3, %v841_v63  ;;  %v6008_v36 = vpop.eup %4708  ;;  %v1015_v30 = vmul.f32 1.442695, %v1001_v32 }
 0x3cb   :  { %v1242_v44 = vsel %vm362_vm2, %v6008_v36, 0.0  ;;  %v6016_v27 = vpop.eup %4710 }
 0x3cc   :  { %4714 = vpow2.f32 %v1015_v30  ;;  %v6018_v2 = vpop.eup %4712  ;;  %v1034_v51 = vsel %vm362_vm2, %v6016_v27, 0.0 }
 0x3cd   :  { %4716 = vpow2.f32 %v1017_v49  ;;  %v1251_v20 = vsel %vm362_vm2, %v6018_v2, 0.0 }
 0x3ce   :  { %v1280_v41 = vpop.permute.xlu1 %1279  ;;  %v1278_v31 = vpop.permute.xlu2 %1277  ;;  %4718 = vrcp.f32 %v5983_v5 }
 0x3cf   :  { %1307 = vmatpush.bf16.msra.mxu2 %v1280_v41 }
 0x3d2   :  { %v1070_v52 = vpop.permute.xlu0 %1069  ;;  %v6024_v25 = vpop.eup %4714 }
 0x3d3   :  { %1091 = vmatpush.bf16.msra.mxu0 %v1070_v52  ;;  %1308 = vmatpush.bf16.msra.mxu2 %v1278_v31  ;;  %v6026_v21 = vpop.eup %4716  ;;  %v1037_v4 = vsel %vm362_vm2, %v6024_v25, 0.0 }
 0x3d4   :  { %v1040_v22 = vsel %vm362_vm2, %v6026_v21, 0.0  ;;  %v4719_v39 = vpop.eup %4718 }
 0x3d7   :  { %1092 = vmatpush.bf16.msra.mxu0 %v1068_v59  ;;  %v615_v59 = vmul.f32 %v4719_v39, %v5861_v54 }
 0x3da   :  { %4141 = vmatmul.msk.bf16.gmra.mxu2 %vm362_vm2, %v847_v23 }
 0x3e1   :  { %1240 = vadd.xlane.f32.xlu1 %v1239_v26 }
 0x3e5   :  { %1243 = vadd.xlane.f32.xlu2 %v1242_v44 }
 0x3e9   :  { %1035 = vadd.xlane.f32.xlu1 %v1034_v51 }
 0x3ed   :  { %1252 = vadd.xlane.f32.xlu2 %v1251_v20 }
 0x3f1   :  { %1038 = vadd.xlane.f32.xlu1 %v1037_v4 }
 0x3f5   :  { %1041 = vadd.xlane.f32.xlu2 %v1040_v22 }
 0x3f9   :  { %v599_v14 = vpop.xlane.xlu1 %598 }
 0x3fd   :  { %v602_v35 = vpop.xlane.xlu0 %601 }
 0x401   :  { %v828_v15 = vpop.xlane.xlu1 %827 }
 0x405   :  { %v1024_v34 = vpop.xlane.xlu0 %1023 }
 0x407   :  { %v596_v60 = vpop.xlane.xlu2 %595 }
 0x408   :  { %4720 = vrcp.f32 %v596_v60 }
 0x409   :  { %4722 = vrcp.f32 %v828_v15  ;;  %v1021_v17 = vpop.xlane.xlu1 %1020 }
 0x40d   :  { %v1027_v28 = vpop.xlane.xlu0 %1026 }
 0x40e   :  { %v4721_v6 = vpop.eup %4720 }
 0x40f   :  { %v825_v53 = vpop.xlane.xlu2 %824  ;;  %v616_v41 = vmul.f32 %v4721_v6, %v5916_v16  ;;  %v4723_v19 = vpop.eup %4722 }
 0x410   :  { %4724 = vrcp.f32 %v825_v53  ;;  %v844_v31 = vmul.f32 %v4723_v19, %v5905_v24 }
 0x411   :  { %v621_v52 = vpack.c.bf16 %v616_v41, %v615_v59  ;;  %4726 = vrcp.f32 %v602_v35  ;;  %v1238_v54 = vpop.xlane.xlu1 %1237 }
 0x412   :  { %4728 = vrcp.f32 %v599_v14 }
 0x413   :  { %4133 = vmatmul.msk.bf16.gmra.mxu0 %vm362_vm2, %v621_v52 }
 0x415   :  { %v1030_v20 = vpop.xlane.xlu0 %1029 }
 0x416   :  { %v4725_v5 = vpop.eup %4724 }
 0x417   :  { %v843_v10 = vmul.f32 %v4725_v5, %v5934_v33  ;;  %v1235_v43 = vpop.xlane.xlu2 %1234  ;;  %v4727_v63 = vpop.eup %4726 }
 0x418   :  { %v4729_v16 = vpop.eup %4728  ;;  %4730 = vrcp.f32 %v1235_v43  ;;  %v618_v62 = vmul.f32 %v4727_v63, %v5895_v42 }
 0x419   :  { %v848_v3 = vpack.c.bf16 %v844_v31, %v843_v10  ;;  %4732 = vrcp.f32 %v1238_v54  ;;  %v617_v23 = vmul.f32 %v4729_v16, %v5890_v8 }
 0x41a   :  { %4734 = vrcp.f32 %v1021_v17 }
 0x41b   :  { %4142 = vmatmul.msk.bf16.gmra.mxu2 %vm362_vm2, %v848_v3  ;;  %v622_v9 = vpack.c.bf16 %v618_v62, %v617_v23  ;;  %4736 = vrcp.f32 %v1024_v34 }
 0x41c   :  { %4738 = vrcp.f32 %v1030_v20 }
 0x41d   :  { %4740 = vrcp.f32 %v1027_v28 }
 0x41e   :  { %v4731_v13 = vpop.eup %4730 }
 0x41f   :  { %v4733_v33 = vpop.eup %4732  ;;  %v1265_v24 = vmul.f32 %v4731_v13, %v5950_v11  ;;  %v1064_v44 = vpop.permute.xlu2 %1063 }
 0x420   :  { %v1266_v32 = vmul.f32 %v4733_v33, %v5939_v50  ;;  %v4735_v18 = vpop.eup %4734 }
 0x421   :  { %v4737_v42 = vpop.eup %4736  ;;  %v1051_v8 = vmul.f32 %v4735_v18, %v5922_v57 }
 0x422   :  { %v1273_v26 = vpack.c.bf16 %v1266_v32, %v1265_v24  ;;  %v1052_v49 = vmul.f32 %v4737_v42, %v5910_v61  ;;  %v4739_v11 = vpop.eup %4738  ;;  %v1247_v61 = vpop.xlane.xlu0 %1246 }
 0x423   :  { %4134 = vmatmul.msk.bf16.gmra.mxu0 %vm362_vm2, %v622_v9  ;;  %v4741_v4 = vpop.eup %4740  ;;  %v1054_v22 = vmul.f32 %v4739_v11, %v5944_v58 }
 0x424   :  { %v1059_v51 = vpack.c.bf16 %v1052_v49, %v1051_v8  ;;  %v1053_v60 = vmul.f32 %v4741_v4, %v5928_v7 }
 0x426   :  { %v1060_v57 = vpack.c.bf16 %v1054_v22, %v1053_v60 }
 0x429   :  { %v1066_v30 = vpop.permute.xlu1 %1065 }
 0x42a   :  { %1093 = vmatpush.bf16.msra.mxu0 %v1066_v30  ;;  %v1250_v6 = vpop.xlane.xlu0 %1249 }
 0x42b   :  { %4155 = vmatmul.msk.bf16.vlgmr.msra.gmra.mxu2 %vm362_vm2, %v1273_v26 }
 0x42e   :  { %1094 = vmatpush.bf16.msra.mxu0 %v1064_v44 }
 0x42f   :  { %v6059_v23 = vpop.f32.mrf.mxu0 }
 0x432   :  { %v1033_v58 = vpop.xlane.xlu0 %1032 }
 0x433   :  { %4147 = vmatmul.msk.bf16.vlgmr.msra.gmra.mxu0 %vm362_vm2, %v1059_v51 }
 0x436   :  { %v882_v50 = vpop.f32.mrf.mxu2 }
 0x437   :  { %v6064_v32 = vpop.f32.mrf.mxu0 }
 0x43a   :  { %v1256_v28 = vpop.xlane.xlu0 %1255 }
 0x43e   :  { %v884_v14 = vpop.f32.mrf.mxu2 }
 0x43f   :  { %v4498_v15 = vpack.i.bf16 %v884_v14, %v882_v50  ;;  %v6069_v42 = vpop.f32.mrf.mxu0 }
 0x441   :  { %4499 = vrot.lane.b32.xlu0 %v4498_v15, %s5194_s27 }
 0x443   :  { %4148 = vmatmul.msk.bf16.gmra.mxu0 %vm362_vm2, %v1060_v57 }
 0x447   :  { %v6074_v44 = vpop.f32.mrf.mxu0 }
 0x44d   :  { %v887_v39 = vpop.f32.mrf.mxu2 }
 0x454   :  { %v1241_v53 = vpop.xlane.xlu1 %1240 }
 0x455   :  { %v889_v59 = vpop.f32.mrf.mxu2  ;;  %4742 = vrcp.f32 %v1241_v53 }
 0x456   :  { %v4513_v41 = vpack.i.bf16 %v889_v59, %v887_v39 }
 0x458   :  { %v1244_v35 = vpop.xlane.xlu2 %1243  ;;  %4514 = vrot.lane.b32.xlu0 %v4513_v41, %s5194_s27 }
 0x459   :  { %4744 = vrcp.f32 %v1244_v35 }
 0x45a   :  { %4746 = vrcp.f32 %v1033_v58 }
 0x45b   :  { %v4743_v17 = vpop.eup %4742 }
 0x45c   :  { %v1036_v7 = vpop.xlane.xlu1 %1035  ;;  %v1267_v5 = vmul.f32 %v4743_v17, %v6004_v12 }
 0x45d   :  { %4748 = vrcp.f32 %v1036_v7  ;;  %v892_v49 = vpop.f32.mrf.mxu2 }
 0x45e   :  { %4750 = vrcp.f32 %v1250_v6 }
 0x45f   :  { %v4745_v52 = vpop.eup %4744  ;;  %4752 = vrcp.f32 %v1247_v61 }
 0x460   :  { %v1253_v19 = vpop.xlane.xlu2 %1252  ;;  %v1268_v10 = vmul.f32 %v4745_v52, %v6008_v36  ;;  %v4747_v31 = vpop.eup %4746 }
 0x461   :  { %v1055_v63 = vmul.f32 %v4747_v31, %v5973_v48 }
 0x462   :  { %v1274_v43 = vpack.c.bf16 %v1268_v10, %v1267_v5 }
 0x463   :  { %v4749_v3 = vpop.eup %4748 }
 0x464   :  { %4156 = vmatmul.msk.bf16.gmra.mxu2 %vm362_vm2, %v1274_v43  ;;  %v1056_v54 = vmul.f32 %v4749_v3, %v6016_v27  ;;  %v1039_v62 = vpop.xlane.xlu1 %1038  ;;  %v4751_v12 = vpop.eup %4750 }
 0x465   :  { %v4753_v36 = vpop.eup %4752  ;;  %v1270_v9 = vmul.f32 %v4751_v12, %v5961_v45 }
 0x466   :  { %v1061_v16 = vpack.c.bf16 %v1056_v54, %v1055_v63  ;;  %v1269_v33 = vmul.f32 %v4753_v36, %v5956_v29  ;;  %v4432_v54 = vld [vmem:[#allocation6 + $0x10] sm:$0xff]  ;;  %v4430_v36 = vld [vmem:[#allocation6] sm:$0xff] }
 0x468   :  { %v1042_v34 = vpop.xlane.xlu2 %1041  ;;  %4149 = vmatmul.msk.bf16.gmra.mxu0 %vm362_vm2, %v1061_v16  ;;  %v1275_v24 = vpack.c.bf16 %v1270_v9, %v1269_v33 }
 0x469   :  { %4754 = vrcp.f32 %v1042_v34  ;;  %v4431_v34 = vld [vmem:[#allocation6 + $0x8] sm:$0xff] }
 0x46a   :  { %4756 = vrcp.f32 %v1039_v62 }
 0x46b   :  { %4758 = vrcp.f32 %v1253_v19  ;;  %v4433_v19 = vld [vmem:[#allocation6 + $0x18] sm:$0xff] }
 0x46c   :  { %4760 = vrcp.f32 %v1256_v28  ;;  %1508 = vmatpush.bf16.msrb.mxu3 %v4433_v19 }
 0x46f   :  { %v4755_v13 = vpop.eup %4754 }
 0x470   :  { %v4757_v48 = vpop.eup %4756  ;;  %v1058_v27 = vmul.f32 %v4755_v13, %v6026_v21  ;;  %1509 = vmatpush.bf16.msrb.mxu3 %v4432_v54 }
 0x471   :  { %v1057_v26 = vmul.f32 %v4757_v48, %v6024_v25  ;;  %v4759_v45 = vpop.eup %4758  ;;  %v894_v25 = vpop.f32.mrf.mxu2 }
 0x472   :  { %v4761_v30 = vpop.eup %4760  ;;  %v1271_v29 = vmul.f32 %v4759_v45, %v6018_v2  ;;  %v4528_v61 = vpack.i.bf16 %v894_v25, %v892_v49 }
 0x473   :  { %v1062_v18 = vpack.c.bf16 %v1058_v27, %v1057_v26  ;;  %v1272_v21 = vmul.f32 %v4761_v30, %v5981_v40 }
 0x474   :  { %4157 = vmatmul.msk.bf16.gmra.mxu2 %vm362_vm2, %v1275_v24  ;;  %1510 = vmatpush.bf16.msrb.mxu3 %v4431_v34 }
 0x475   :  { %v1276_v8 = vpack.c.bf16 %v1272_v21, %v1271_v29 }
 0x478   :  { %4150 = vmatmul.msk.bf16.gmra.mxu0 %vm362_vm2, %v1062_v18  ;;  %1511 = vmatpush.bf16.msrb.mxu3 %v4430_v36 }
 0x484   :  { %4158 = vmatmul.msk.bf16.gmra.mxu2 %vm362_vm2, %v1276_v8 }
 0x490   :  { %v6076_v51 = vpop.f32.mrf.mxu0 }
 0x498   :  { %v6078_v20 = vpop.f32.mrf.mxu0 }
 0x49e   :  { %v897_v50 = vpop.f32.mrf.mxu2 }
 0x4a0   :  { %v6080_v11 = vpop.f32.mrf.mxu0 }
 0x4a6   :  { %v899_v4 = vpop.f32.mrf.mxu2 }
 0x4a7   :  { %v4543_v6 = vpack.i.bf16 %v899_v4, %v897_v50 }
 0x4a8   :  { %v6082_v22 = vpop.f32.mrf.mxu0 }
 0x4ae   :  { %v1310_v2 = vpop.f32.mrf.mxu2 }
 0x4b0   :  { %v1096_v14 = vpop.f32.mrf.mxu0 }
 0x4b3   :  { %v4500_v9 = vpop.permute.xlu0 %4499 }
 0x4b4   :  { %v4502_v13 = vunpack.i.h.bf16 %v4500_v9  ;;  %v4501_v33 = vunpack.i.l.bf16 %v4500_v9 }
 0x4b6   :  { %v1312_v40 = vpop.f32.mrf.mxu2  ;;  %v1427_v26 = vsel %vm477_vm3, %v6064_v32, %v4502_v13  ;;  %v1426_v18 = vsel %vm477_vm3, %v6059_v23, %v4501_v33 }
 0x4b7   :  { %v4508_v15 = vpack.i.bf16 %v1312_v40, %v1310_v2 }
 0x4b8   :  { %v1098_v60 = vpop.f32.mrf.mxu0 }
 0x4b9   :  { %4509 = vrot.lane.b32.xlu2 %v4508_v15, %s5205_s16  ;;  %v4503_v57 = vpack.i.bf16 %v1098_v60, %v1096_v14 }
 0x4bb   :  { %4504 = vrot.lane.b32.xlu1 %v4503_v57, %s5191_s24 }
 0x4c0   :  { %v1101_v39 = vpop.f32.mrf.mxu0 }
 0x4c1   :  { %4529 = vrot.lane.b32.xlu2 %v4528_v61, %s5194_s27 }
 0x4c8   :  { %v1103_v53 = vpop.f32.mrf.mxu0 }
 0x4c9   :  { %4544 = vrot.lane.b32.xlu2 %v4543_v6, %s5194_s27  ;;  %v4518_v59 = vpack.i.bf16 %v1103_v53, %v1101_v39 }
 0x4ca   :  { %v4515_v50 = vpop.permute.xlu0 %4514 }
 0x4cb   :  { %4519 = vrot.lane.b32.xlu1 %v4518_v59, %s5191_s24  ;;  %v4517_v2 = vunpack.i.h.bf16 %v4515_v50  ;;  %v4516_v32 = vunpack.i.l.bf16 %v4515_v50 }
 0x4cd   :  { %v1429_v15 = vsel %vm477_vm3, %v6074_v44, %v4517_v2  ;;  %v1428_v60 = vsel %vm477_vm3, %v6069_v42, %v4516_v32 }
 0x4e5   :  { %v1106_v41 = vpop.f32.mrf.mxu0 }
 0x4e7   :  { %v1315_v35 = vpop.f32.mrf.mxu2 }
 0x4ed   :  { %v1108_v58 = vpop.f32.mrf.mxu0 }
 0x4ee   :  { %v4533_v7 = vpack.i.bf16 %v1108_v58, %v1106_v41 }
 0x4ef   :  { %v1317_v17 = vpop.f32.mrf.mxu2 }
 0x4f0   :  { %v4523_v52 = vpack.i.bf16 %v1317_v17, %v1315_v35  ;;  %4534 = vrot.lane.b32.xlu1 %v4533_v7, %s5191_s24 }
 0x4f2   :  { %4524 = vrot.lane.b32.xlu0 %v4523_v52, %s5205_s16 }
 0x4f5   :  { %v1111_v5 = vpop.f32.mrf.mxu0 }
 0x4f7   :  { %v1320_v10 = vpop.f32.mrf.mxu2 }
 0x4fd   :  { %v1113_v31 = vpop.f32.mrf.mxu0 }
 0x4fe   :  { %v4548_v3 = vpack.i.bf16 %v1113_v31, %v1111_v5 }
 0x4ff   :  { %v1322_v43 = vpop.f32.mrf.mxu2 }
 0x500   :  { %v4538_v63 = vpack.i.bf16 %v1322_v43, %v1320_v10  ;;  %4549 = vrot.lane.b32.xlu1 %v4548_v3, %s5191_s24 }
 0x502   :  { %4539 = vrot.lane.b32.xlu0 %v4538_v63, %s5205_s16 }
 0x507   :  { %v1325_v16 = vpop.f32.mrf.mxu2 }
 0x50f   :  { %v1327_v62 = vpop.f32.mrf.mxu2 }
 0x510   :  { %v4553_v12 = vpack.i.bf16 %v1327_v62, %v1325_v16 }
 0x512   :  { %4554 = vrot.lane.b32.xlu0 %v4553_v12, %s5205_s16 }
 0x513   :  { %v4510_v48 = vpop.permute.xlu2 %4509 }
 0x514   :  { %v4512_v45 = vunpack.i.h.bf16 %v4510_v48  ;;  %v4511_v30 = vunpack.i.l.bf16 %v4510_v48 }
 0x51b   :  { %v4530_v35 = vpop.permute.xlu2 %4529 }
 0x51c   :  { %v4532_v17 = vunpack.i.h.bf16 %v4530_v35  ;;  %v4531_v44 = vunpack.i.l.bf16 %v4530_v35 }
 0x51e   :  { %v1431_v19 = vsel %vm477_vm3, %v6078_v20, %v4532_v17  ;;  %v1430_v5 = vsel %vm477_vm3, %v6076_v51, %v4531_v44 }
 0x523   :  { %v4545_v34 = vpop.permute.xlu2 %4544 }
 0x524   :  { %v4547_v12 = vunpack.i.h.bf16 %v4545_v34  ;;  %v4546_v20 = vunpack.i.l.bf16 %v4545_v34 }
 0x526   :  { %v1432_v13 = vsel %vm477_vm3, %v6080_v11, %v4546_v20  ;;  %v1433_v33 = vsel %vm477_vm3, %v6082_v22, %v4547_v12  ;;  %v4619_v11 = vld [vmem:[%s7506_s8] ss:$0 sm:$0xff] }
 0x52d   :  { %v4505_v24 = vpop.permute.xlu1 %4504 }
 0x52e   :  { %v4507_v27 = vunpack.i.h.bf16 %v4505_v24  ;;  %v4506_v28 = vunpack.i.l.bf16 %v4505_v24 }
 0x530   :  { %v1435_v29 = vsel %vm1434_vm4, %v1426_v18, %v4506_v28  ;;  %v1436_v21 = vsel %vm1434_vm4, %v1427_v26, %v4507_v27 }
 0x531   :  { %v1444_v8 = vsel %vm1443_vm5, %v1435_v29, %v4511_v30  ;;  %v1445_v49 = vsel %vm1443_vm5, %v1436_v21, %v4512_v45 }
 0x532   :  { %v1452_v25 = vpack.c.bf16 %v1445_v49, %v1444_v8 }
 0x534   :  { %4175 = vmatmul.msk.bf16.vlgmr.msrb.gmra.mxu3 %vm362_vm2, %v1452_v25 }
 0x53d   :  { %v4520_v4 = vpop.permute.xlu1 %4519 }
 0x53e   :  { %v4522_v14 = vunpack.i.h.bf16 %v4520_v4  ;;  %v4521_v40 = vunpack.i.l.bf16 %v4520_v4 }
 0x540   :  { %v1437_v39 = vsel %vm1434_vm4, %v1428_v60, %v4521_v40  ;;  %v1438_v6 = vsel %vm1434_vm4, %v1429_v15, %v4522_v14 }
 0x562   :  { %v4535_v58 = vpop.permute.xlu1 %4534 }
 0x563   :  { %v4537_v7 = vunpack.i.h.bf16 %v4535_v58  ;;  %v4536_v52 = vunpack.i.l.bf16 %v4535_v58  ;;  %v5209_v58 = vmov 64.0  }
 0x564   :  { %v4525_v23 = vpop.permute.xlu0 %4524  ;;  %4762 = vrcp.f32 %v5209_v58 }
 0x565   :  { %v4527_v57 = vunpack.i.h.bf16 %v4525_v23  ;;  %v4526_v61 = vunpack.i.l.bf16 %v4525_v23  ;;  %v1440_v43 = vsel %vm1434_vm4, %v1431_v19, %v4537_v7  ;;  %v1439_v3 = vsel %vm1434_vm4, %v1430_v5, %v4536_v52 }
 0x567   :  { %v1446_v53 = vsel %vm1443_vm5, %v1437_v39, %v4526_v61  ;;  %v1447_v59 = vsel %vm1443_vm5, %v1438_v6, %v4527_v57 }
 0x568   :  { %v1453_v41 = vpack.c.bf16 %v1447_v59, %v1446_v53 }
 0x56a   :  { %4176 = vmatmul.msk.bf16.gmra.mxu3 %vm362_vm2, %v1453_v41 }
 0x572   :  { %v4550_v62 = vpop.permute.xlu1 %4549 }
 0x573   :  { %v4552_v36 = vunpack.i.h.bf16 %v4550_v62  ;;  %v4551_v9 = vunpack.i.l.bf16 %v4550_v62 }
 0x574   :  { %v4540_v42 = vpop.permute.xlu0 %4539 }
 0x575   :  { %v4542_v10 = vunpack.i.h.bf16 %v4540_v42  ;;  %v4541_v31 = vunpack.i.l.bf16 %v4540_v42  ;;  %v1442_v27 = vsel %vm1434_vm4, %v1433_v33, %v4552_v36  ;;  %v1441_v28 = vsel %vm1434_vm4, %v1432_v13, %v4551_v9 }
 0x577   :  { %v1449_v63 = vsel %vm1443_vm5, %v1440_v43, %v4542_v10  ;;  %v1448_v54 = vsel %vm1443_vm5, %v1439_v3, %v4541_v31 }
 0x578   :  { %v1454_v16 = vpack.c.bf16 %v1449_v63, %v1448_v54 }
 0x57a   :  { %4177 = vmatmul.msk.bf16.gmra.mxu3 %vm362_vm2, %v1454_v16 }
 0x584   :  { %v4555_v51 = vpop.permute.xlu0 %4554 }
 0x585   :  { %v4557_v48 = vunpack.i.h.bf16 %v4555_v51  ;;  %v4556_v24 = vunpack.i.l.bf16 %v4555_v51 }
 0x587   :  { %v1451_v26 = vsel %vm1443_vm5, %v1442_v27, %v4557_v48  ;;  %v1450_v18 = vsel %vm1443_vm5, %v1441_v28, %v4556_v24 }
 0x588   :  { %v1455_v45 = vpack.c.bf16 %v1451_v26, %v1450_v18 }
 0x58a   :  { %4178 = vmatmul.msk.bf16.gmra.mxu3 %vm362_vm2, %v1455_v45 }
 0x5b7   :  { %v1513_v30 = vpop.f32.mrf.mxu3 }
 0x5b8   :  { %v1514_v29 = vadd.f32 %v4619_v11, %v1513_v30 }
 0x5ba   :  { %v1533_v22 = vadd.f32 %v1514_v29, %v5427_v37 }
 0x5bc   :  { %v1543_v21 = vsel %vm362_vm2, %v1533_v22, 0.0 }
 0x5bd   :  { %1544 = vadd.xlane.f32.xlu2 %v1543_v21 }
 0x5bf   :  { %v1515_v8 = vpop.f32.mrf.mxu3 }
 0x5c0   :  { %v1516_v49 = vadd.f32 %v4619_v11, %v1515_v8 }
 0x5c2   :  { %v1534_v25 = vadd.f32 %v1516_v49, %v5429_v38 }
 0x5c4   :  { %v1546_v50 = vsel %vm362_vm2, %v1534_v25, 0.0 }
 0x5c5   :  { %1547 = vadd.xlane.f32.xlu1 %v1546_v50 }
 0x5ed   :  { %v1518_v4 = vpop.f32.mrf.mxu3 }
 0x5ee   :  { %v1519_v2 = vadd.f32 %v4619_v11, %v1518_v4 }
 0x5f0   :  { %v1535_v32 = vadd.f32 %v1519_v2, %v5441_v46 }
 0x5f2   :  { %v1549_v14 = vsel %vm362_vm2, %v1535_v32, 0.0 }
 0x5f3   :  { %1550 = vadd.xlane.f32.xlu0 %v1549_v14  ;;  %v4436_v14 = vld [vmem:[#allocation12 + $0x10] sm:$0xff] }
 0x5f5   :  { %v1520_v40 = vpop.f32.mrf.mxu3 }
 0x5f6   :  { %v1521_v23 = vadd.f32 %v4619_v11, %v1520_v40 }
 0x5f8   :  { %v1536_v37 = vadd.f32 %v1521_v23, %v5443_v47  ;;  %v4435_v23 = vld [vmem:[#allocation12 + $0x8] sm:$0xff] }
 0x5fa   :  { %v1552_v15 = vsel %vm362_vm2, %v1536_v37, 0.0 }
 0x5fb   :  { %1553 = vadd.xlane.f32.xlu2 %v1552_v15 }
 0x5fd   :  { %v1523_v60 = vpop.f32.mrf.mxu3 }
 0x5fe   :  { %v1524_v57 = vadd.f32 %v4619_v11, %v1523_v60  ;;  %v4434_v60 = vld [vmem:[#allocation12] sm:$0xff] }
 0x600   :  { %v1537_v38 = vadd.f32 %v1524_v57, %v5455_v55  ;;  %v4763_v55 = vpop.eup %4762 }
 0x601   :  { %v1568_v17 = vmul.f32 64.0, %v4763_v55  ;;  %vm1572_vm6 = vweird.f32 %v4763_v55 }
 0x602   :  { %v1555_v61 = vsel %vm362_vm2, %v1537_v38, 0.0 }
 0x603   :  { %1556 = vadd.xlane.f32.xlu1 %v1555_v61  ;;  %v1569_v44 = vsub.f32 1.0, %v1568_v17 }
 0x605   :  { %v1525_v39 = vpop.f32.mrf.mxu3  ;;  %v1570_v7 = vmul.f32 %v4763_v55, %v1569_v44 }
 0x606   :  { %v1526_v6 = vadd.f32 %v4619_v11, %v1525_v39 }
 0x607   :  { %v1571_v52 = vadd.f32 %v4763_v55, %v1570_v7 }
 0x608   :  { %v1538_v46 = vadd.f32 %v1526_v6, %v5457_v56 }
 0x609   :  { %v6147_v42 = vsel %vm1572_vm6, %v4763_v55, %v1571_v52 }
 0x60a   :  { %v1558_v53 = vsel %vm362_vm2, %v1538_v46, 0.0 }
 0x60b   :  { %1559 = vadd.xlane.f32.xlu0 %v1558_v53 }
 0x60d   :  { %v1528_v59 = vpop.f32.mrf.mxu3 }
 0x60e   :  { %v1529_v41 = vadd.f32 %v4619_v11, %v1528_v59 }
 0x610   :  { %v1539_v47 = vadd.f32 %v1529_v41, %v5469_v0 }
 0x612   :  { %v1561_v35 = vsel %vm362_vm2, %v1539_v47, 0.0 }
 0x613   :  { %1562 = vadd.xlane.f32.xlu0 %v1561_v35 }
 0x615   :  { %v1530_v10 = vpop.f32.mrf.mxu3 }
 0x616   :  { %v1531_v31 = vadd.f32 %v4619_v11, %v1530_v10 }
 0x618   :  { %v1540_v16 = vadd.f32 %v1531_v31, %v5471_v1 }
 0x61a   :  { %v1564_v12 = vsel %vm362_vm2, %v1540_v16, 0.0 }
 0x630   :  { %v1545_v56 = vpop.xlane.xlu2 %1544 }
 0x631   :  { %v1574_v19 = vmul.f32 %v6147_v42, %v1545_v56 }
 0x633   :  { %v6150_v5 = vsub.f32 %v1533_v22, %v1574_v19 }
 0x635   :  { %v1590_v0 = vmul.f32 %v6150_v5, %v6150_v5 }
 0x637   :  { %v1598_v43 = vsel %vm362_vm2, %v1590_v0, 0.0  ;;  %v6201_v0 = vld [vmem:[#allocation7] ss:$0 sm:$0xff] }
 0x638   :  { %v1548_v3 = vpop.xlane.xlu1 %1547  ;;  %1599 = vadd.xlane.f32.xlu2 %v1598_v43 }
 0x639   :  { %v1575_v63 = vmul.f32 %v6147_v42, %v1548_v3 }
 0x63b   :  { %v6156_v54 = vsub.f32 %v1534_v25, %v1575_v63  ;;  %v6204_v63 = vld [vmem:[#allocation9] ss:$0 sm:$0xff] }
 0x63d   :  { %v1591_v34 = vmul.f32 %v6156_v54, %v6156_v54 }
 0x63f   :  { %v1601_v62 = vsel %vm362_vm2, %v1591_v34, 0.0 }
 0x640   :  { %1602 = vadd.xlane.f32.xlu1 %v1601_v62  ;;  %1565 = vadd.xlane.f32.xlu2 %v1564_v12 }
 0x666   :  { %v1551_v20 = vpop.xlane.xlu0 %1550 }
 0x667   :  { %v1576_v36 = vmul.f32 %v6147_v42, %v1551_v20 }
 0x669   :  { %v6164_v9 = vsub.f32 %v1535_v32, %v1576_v36  ;;  %v4437_v32 = vld [vmem:[#allocation12 + $0x18] sm:$0xff] }
 0x66a   :  { %1804 = vmatpush.bf16.msrb.mxu0 %v4437_v32 }
 0x66b   :  { %v1592_v51 = vmul.f32 %v6164_v9, %v6164_v9 }
 0x66d   :  { %v1604_v13 = vsel %vm362_vm2, %v1592_v51, 0.0 }
 0x66e   :  { %1605 = vadd.xlane.f32.xlu1 %v1604_v13  ;;  %v1554_v1 = vpop.xlane.xlu2 %1553  ;;  %1805 = vmatpush.bf16.msrb.mxu0 %v4436_v14 }
 0x66f   :  { %v1577_v33 = vmul.f32 %v6147_v42, %v1554_v1 }
 0x671   :  { %v6170_v48 = vsub.f32 %v1536_v37, %v1577_v33 }
 0x672   :  { %1806 = vmatpush.bf16.msrb.mxu0 %v4435_v23 }
 0x673   :  { %v1593_v24 = vmul.f32 %v6170_v48, %v6170_v48 }
 0x675   :  { %v1607_v27 = vsel %vm362_vm2, %v1593_v24, 0.0 }
 0x676   :  { %v1557_v28 = vpop.xlane.xlu1 %1556  ;;  %1608 = vadd.xlane.f32.xlu0 %v1607_v27  ;;  %1807 = vmatpush.bf16.msrb.mxu0 %v4434_v60 }
 0x677   :  { %v1578_v26 = vmul.f32 %v6147_v42, %v1557_v28 }
 0x679   :  { %v6176_v18 = vsub.f32 %v1537_v38, %v1578_v26 }
 0x67b   :  { %v1594_v45 = vmul.f32 %v6176_v18, %v6176_v18 }
 0x67d   :  { %v1610_v11 = vsel %vm362_vm2, %v1594_v45, 0.0 }
 0x67e   :  { %v1560_v30 = vpop.xlane.xlu0 %1559  ;;  %1611 = vadd.xlane.f32.xlu2 %v1610_v11 }
 0x67f   :  { %v1579_v29 = vmul.f32 %v6147_v42, %v1560_v30 }
 0x681   :  { %v6182_v22 = vsub.f32 %v1538_v46, %v1579_v29 }
 0x683   :  { %v1595_v21 = vmul.f32 %v6182_v22, %v6182_v22 }
 0x685   :  { %v1613_v8 = vsel %vm362_vm2, %v1595_v21, 0.0 }
 0x686   :  { %v1563_v49 = vpop.xlane.xlu0 %1562  ;;  %1614 = vadd.xlane.f32.xlu1 %v1613_v8 }
 0x687   :  { %v1580_v25 = vmul.f32 %v6147_v42, %v1563_v49 }
 0x689   :  { %v6188_v50 = vsub.f32 %v1539_v47, %v1580_v25 }
 0x68b   :  { %v1596_v4 = vmul.f32 %v6188_v50, %v6188_v50 }
 0x68d   :  { %v1616_v2 = vsel %vm362_vm2, %v1596_v4, 0.0 }
 0x68e   :  { %1617 = vadd.xlane.f32.xlu0 %v1616_v2 }
 0x6ab   :  { %v1600_v40 = vpop.xlane.xlu2 %1599 }
 0x6ac   :  { %v1622_v37 = vmul.f32 %v1600_v40, %v6147_v42 }
 0x6ae   :  { %v1630_v15 = vadd.f32 1e-05, %v1622_v37 }
 0x6b0   :  { %4764 = vrsqrt.f32 %v1630_v15  ;;  %vm1644_vm8 = vweird.f32 %v1630_v15 }
 0x6b3   :  { %v1603_v57 = vpop.xlane.xlu1 %1602  ;;  %v1566_v38 = vpop.xlane.xlu2 %1565 }
 0x6b4   :  { %v1623_v61 = vmul.f32 %v1603_v57, %v6147_v42  ;;  %v1581_v39 = vmul.f32 %v6147_v42, %v1566_v38 }
 0x6b6   :  { %v4765_v6 = vpop.eup %4764  ;;  %v1631_v46 = vadd.f32 1e-05, %v1623_v61  ;;  %v6196_v53 = vsub.f32 %v1540_v16, %v1581_v39 }
 0x6b7   :  { %v1639_v59 = vmul.f32 %v4765_v6, %v1630_v15  ;;  %vm1645_vm7 = vweird.f32 %v4765_v6 }
 0x6b8   :  { %4766 = vrsqrt.f32 %v1631_v46  ;;  %v1597_v41 = vmul.f32 %v6196_v53, %v6196_v53  ;;  %vm1646_vm9 = vmor %vm1644_vm8, %vm1645_vm7  ;;  %vm1654_vm11 = vweird.f32 %v1631_v46 }
 0x6b9   :  { %v1640_v47 = vmul.f32 %v4765_v6, %v1639_v59 }
 0x6ba   :  { %v1619_v35 = vsel %vm362_vm2, %v1597_v41, 0.0 }
 0x6bb   :  { %v1641_v58 = vmul.f32 0.5, %v1640_v47  ;;  %1620 = vadd.xlane.f32.xlu2 %v1619_v35 }
 0x6bd   :  { %v1642_v55 = vsub.f32 1.5, %v1641_v58 }
 0x6be   :  { %v4767_v17 = vpop.eup %4766 }
 0x6bf   :  { %v1643_v44 = vmul.f32 %v4765_v6, %v1642_v55  ;;  %v1649_v7 = vmul.f32 %v4767_v17, %v1631_v46  ;;  %vm1655_vm10 = vweird.f32 %v4767_v17 }
 0x6c0   :  { %vm1656_vm12 = vmor %vm1654_vm11, %vm1655_vm10 }
 0x6c1   :  { %v1650_v52 = vmul.f32 %v4767_v17, %v1649_v7  ;;  %v1647_v56 = vsel %vm1646_vm9, %v4765_v6, %v1643_v44 }
 0x6c2   :  { %v1718_v31 = vmul.f32 %v1647_v56, %v6150_v5 }
 0x6c3   :  { %v1651_v19 = vmul.f32 0.5, %v1650_v52 }
 0x6c4   :  { %v1729_v16 = vmul.f32 %v6201_v0, %v1718_v31 }
 0x6c5   :  { %v1652_v10 = vsub.f32 1.5, %v1651_v19 }
 0x6c6   :  { %v6210_v12 = vadd.f32 %v6204_v63, %v1729_v16 }
 0x6c7   :  { %v1653_v43 = vmul.f32 %v4767_v17, %v1652_v10 }
 0x6c9   :  { %v1657_v3 = vsel %vm1656_vm12, %v4767_v17, %v1653_v43 }
 0x6ca   :  { %v1719_v34 = vmul.f32 %v1657_v3, %v6156_v54 }
 0x6cc   :  { %v1730_v62 = vmul.f32 %v6201_v0, %v1719_v34 }
 0x6ce   :  { %v6213_v20 = vadd.f32 %v6204_v63, %v1730_v62 }
 0x6d0   :  { %v1748_v5 = vpack.c.bf16 %v6213_v20, %v6210_v12 }
 0x6d2   :  { %4195 = vmatmul.msk.bf16.vlgmr.msrb.gmra.mxu0 %vm362_vm2, %v1748_v5 }
 0x6e1   :  { %v1606_v36 = vpop.xlane.xlu1 %1605 }
 0x6e2   :  { %v1624_v51 = vmul.f32 %v1606_v36, %v6147_v42 }
 0x6e4   :  { %v1632_v13 = vadd.f32 1e-05, %v1624_v51  ;;  %v4444_v51 = vld [vmem:[%s7513_s15 + $0x30] sm:$0xff] }
 0x6e6   :  { %4768 = vrsqrt.f32 %v1632_v13  ;;  %vm1664_vm14 = vweird.f32 %v1632_v13 }
 0x6e9   :  { %v1609_v1 = vpop.xlane.xlu0 %1608 }
 0x6ea   :  { %v1625_v54 = vmul.f32 %v1609_v1, %v6147_v42 }
 0x6ec   :  { %v4769_v33 = vpop.eup %4768  ;;  %v1633_v24 = vadd.f32 1e-05, %v1625_v54  ;;  %v4442_v54 = vld [vmem:[%s7513_s15 + $0x20] sm:$0xff] }
 0x6ed   :  { %v1659_v27 = vmul.f32 %v4769_v33, %v1632_v13  ;;  %vm1665_vm13 = vweird.f32 %v4769_v33  ;;  %v4443_v13 = vld [vmem:[%s7513_s15 + $0x28] sm:$0xff] }
 0x6ee   :  { %4770 = vrsqrt.f32 %v1633_v24  ;;  %vm1666_vm15 = vmor %vm1664_vm14, %vm1665_vm13  ;;  %vm1674_vm1 = vweird.f32 %v1633_v24 }
 0x6ef   :  { %v1660_v28 = vmul.f32 %v4769_v33, %v1659_v27 }
 0x6f1   :  { %v1661_v26 = vmul.f32 0.5, %v1660_v28  ;;  %v1612_v45 = vpop.xlane.xlu2 %1611 }
 0x6f2   :  { %v1626_v11 = vmul.f32 %v1612_v45, %v6147_v42 }
 0x6f3   :  { %v1662_v30 = vsub.f32 1.5, %v1661_v26  ;;  %v4441_v26 = vld [vmem:[%s7513_s15 + $0x18] sm:$0xff] }
 0x6f4   :  { %v4771_v29 = vpop.eup %4770  ;;  %v1634_v21 = vadd.f32 1e-05, %v1626_v11 }
 0x6f5   :  { %v1663_v8 = vmul.f32 %v4769_v33, %v1662_v30  ;;  %v1669_v49 = vmul.f32 %v4771_v29, %v1633_v24  ;;  %vm1675_vm0 = vweird.f32 %v4771_v29  ;;  %v4440_v30 = vld [vmem:[%s7513_s15 + $0x10] sm:$0xff] }
 0x6f6   :  { %4772 = vrsqrt.f32 %v1634_v21  ;;  %vm1676_vm6 = vmor %vm1674_vm1, %vm1675_vm0  ;;  %vm1684_vm8 = vweird.f32 %v1634_v21 }
 0x6f7   :  { %v1670_v25 = vmul.f32 %v4771_v29, %v1669_v49  ;;  %v1667_v4 = vsel %vm1666_vm15, %v4769_v33, %v1663_v8 }
 0x6f8   :  { %v1720_v37 = vmul.f32 %v1667_v4, %v6164_v9  ;;  %v4438_v4 = vld [vmem:[%s7513_s15] sm:$0xff] }
 0x6f9   :  { %v1671_v2 = vmul.f32 0.5, %v1670_v25  ;;  %v1615_v32 = vpop.xlane.xlu1 %1614 }
 0x6fa   :  { %v1627_v14 = vmul.f32 %v1615_v32, %v6147_v42  ;;  %v1731_v6 = vmul.f32 %v6201_v0, %v1720_v37 }
 0x6fb   :  { %v1672_v40 = vsub.f32 1.5, %v1671_v2 }
 0x6fc   :  { %v4773_v23 = vpop.eup %4772  ;;  %v1635_v15 = vadd.f32 1e-05, %v1627_v14  ;;  %v6227_v35 = vadd.f32 %v6204_v63, %v1731_v6 }
 0x6fd   :  { %v1673_v60 = vmul.f32 %v4771_v29, %v1672_v40  ;;  %v1679_v57 = vmul.f32 %v4773_v23, %v1634_v21  ;;  %vm1685_vm7 = vweird.f32 %v4773_v23  ;;  %v4439_v21 = vld [vmem:[%s7513_s15 + $0x8] sm:$0xff] }
 0x6fe   :  { %4774 = vrsqrt.f32 %v1635_v15  ;;  %vm1686_vm9 = vmor %vm1684_vm8, %vm1685_vm7  ;;  %vm1694_vm11 = vweird.f32 %v1635_v15 }
 0x6ff   :  { %v1677_v38 = vsel %vm1676_vm6, %v4771_v29, %v1673_v60  ;;  %v1680_v61 = vmul.f32 %v4773_v23, %v1679_v57 }
 0x700   :  { %v1721_v39 = vmul.f32 %v1677_v38, %v6170_v48 }
 0x701   :  { %v1681_v46 = vmul.f32 0.5, %v1680_v61  ;;  %v1618_v62 = vpop.xlane.xlu0 %1617 }
 0x702   :  { %v1732_v59 = vmul.f32 %v6201_v0, %v1721_v39  ;;  %v1628_v5 = vmul.f32 %v1618_v62, %v6147_v42 }
 0x703   :  { %v1682_v41 = vsub.f32 1.5, %v1681_v46  ;;  %v4622_v46 = vld [vmem:[#allocation13] ss:$0 sm:$0xff] }
 0x704   :  { %v4775_v47 = vpop.eup %4774  ;;  %v6230_v9 = vadd.f32 %v6204_v63, %v1732_v59  ;;  %v1636_v36 = vadd.f32 1e-05, %v1628_v5 }
 0x705   :  { %v1683_v58 = vmul.f32 %v4773_v23, %v1682_v41  ;;  %v1689_v55 = vmul.f32 %v4775_v47, %v1635_v15  ;;  %vm1695_vm10 = vweird.f32 %v4775_v47 }
 0x706   :  { %v1749_v17 = vpack.c.bf16 %v6230_v9, %v6227_v35  ;;  %vm1696_vm12 = vmor %vm1694_vm11, %vm1695_vm10  ;;  %4776 = vrsqrt.f32 %v1636_v36  ;;  %vm1704_vm14 = vweird.f32 %v1636_v36 }
 0x707   :  { %v1690_v48 = vmul.f32 %v4775_v47, %v1689_v55  ;;  %v1687_v44 = vsel %vm1686_vm9, %v4773_v23, %v1683_v58 }
 0x708   :  { %4196 = vmatmul.msk.bf16.gmra.mxu0 %vm362_vm2, %v1749_v17  ;;  %v1722_v56 = vmul.f32 %v1687_v44, %v6176_v18 }
 0x709   :  { %v1691_v7 = vmul.f32 0.5, %v1690_v48 }
 0x70a   :  { %v1733_v43 = vmul.f32 %v6201_v0, %v1722_v56 }
 0x70b   :  { %v1692_v52 = vsub.f32 1.5, %v1691_v7 }
 0x70c   :  { %v6240_v16 = vadd.f32 %v6204_v63, %v1733_v43  ;;  %v4777_v1 = vpop.eup %4776 }
 0x70d   :  { %v1693_v19 = vmul.f32 %v4775_v47, %v1692_v52  ;;  %v1699_v33 = vmul.f32 %v4777_v1, %v1636_v36  ;;  %vm1705_vm13 = vweird.f32 %v4777_v1 }
 0x70e   :  { %vm1706_vm15 = vmor %vm1704_vm14, %vm1705_vm13 }
 0x70f   :  { %v1697_v10 = vsel %vm1696_vm12, %v4775_v47, %v1693_v19  ;;  %v1700_v24 = vmul.f32 %v4777_v1, %v1699_v33 }
 0x710   :  { %v1723_v31 = vmul.f32 %v1697_v10, %v6182_v22  ;;  %v4445_v22 = vld [vmem:[%s7513_s15 + $0x38] sm:$0xff] }
 0x711   :  { %1909 = vmatpush.bf16.msrb.mxu1 %v4445_v22  ;;  %v1701_v11 = vmul.f32 0.5, %v1700_v24 }
 0x712   :  { %v1734_v3 = vmul.f32 %v6201_v0, %v1723_v31 }
 0x713   :  { %v1702_v29 = vsub.f32 1.5, %v1701_v11 }
 0x714   :  { %v6243_v34 = vadd.f32 %v6204_v63, %v1734_v3 }
 0x715   :  { %1910 = vmatpush.bf16.msrb.mxu1 %v4444_v51  ;;  %v1703_v49 = vmul.f32 %v4777_v1, %v1702_v29 }
 0x716   :  { %v1750_v18 = vpack.c.bf16 %v6243_v34, %v6240_v16 }
 0x717   :  { %v1707_v32 = vsel %vm1706_vm15, %v4777_v1, %v1703_v49 }
 0x718   :  { %4197 = vmatmul.msk.bf16.gmra.mxu0 %vm362_vm2, %v1750_v18  ;;  %v1724_v23 = vmul.f32 %v1707_v32, %v6188_v50 }
 0x719   :  { %1911 = vmatpush.bf16.msrb.mxu1 %v4443_v13 }
 0x71a   :  { %v1735_v57 = vmul.f32 %v6201_v0, %v1724_v23 }
 0x71c   :  { %v6279_v61 = vadd.f32 %v6204_v63, %v1735_v57 }
 0x71d   :  { %1912 = vmatpush.bf16.msrb.mxu1 %v4442_v54  ;;  %v4623_v54 = vld [vmem:[#allocation15] ss:$0 sm:$0xff] }
 0x721   :  { %1913 = vmatpush.bf16.msrb.mxu1 %v4441_v26 }
 0x725   :  { %1914 = vmatpush.bf16.msrb.mxu1 %v4440_v30 }
 0x729   :  { %1915 = vmatpush.bf16.msrb.mxu1 %v4439_v21 }
 0x72d   :  { %1916 = vmatpush.bf16.msrb.mxu1 %v4438_v4 }
 0x72e   :  { %v1621_v27 = vpop.xlane.xlu2 %1620 }
 0x72f   :  { %v1629_v28 = vmul.f32 %v1621_v27, %v6147_v42 }
 0x731   :  { %v1637_v45 = vadd.f32 1e-05, %v1629_v28 }
 0x733   :  { %4778 = vrsqrt.f32 %v1637_v45  ;;  %vm1714_vm1 = vweird.f32 %v1637_v45 }
 0x739   :  { %v4779_v8 = vpop.eup %4778 }
 0x73a   :  { %v1709_v25 = vmul.f32 %v4779_v8, %v1637_v45  ;;  %vm1715_vm0 = vweird.f32 %v4779_v8 }
 0x73b   :  { %vm1716_vm6 = vmor %vm1714_vm1, %vm1715_vm0 }
 0x73c   :  { %v1710_v2 = vmul.f32 %v4779_v8, %v1709_v25 }
 0x73e   :  { %v1711_v14 = vmul.f32 0.5, %v1710_v2 }
 0x740   :  { %v1712_v40 = vsub.f32 1.5, %v1711_v14 }
 0x742   :  { %v1713_v37 = vmul.f32 %v4779_v8, %v1712_v40 }
 0x744   :  { %v1717_v15 = vsel %vm1716_vm6, %v4779_v8, %v1713_v37 }
 0x745   :  { %v1725_v60 = vmul.f32 %v1717_v15, %v6196_v53 }
 0x747   :  { %v1736_v38 = vmul.f32 %v6201_v0, %v1725_v60 }
 0x749   :  { %v6282_v39 = vadd.f32 %v6204_v63, %v1736_v38 }
 0x74b   :  { %v1751_v6 = vpack.c.bf16 %v6282_v39, %v6279_v61 }
 0x74d   :  { %4198 = vmatmul.msk.bf16.gmra.mxu0 %vm362_vm2, %v1751_v6 }
 0x74f   :  { %v1809_v50 = vpop.f32.mrf.mxu0 }
 0x750   :  { %v1810_v59 = vadd.f32 %v4622_v46, %v1809_v50 }
 0x752   :  { %v1829_v47 = vmax.f32 %v1810_v59, 0.0 }
 0x757   :  { %v1811_v41 = vpop.f32.mrf.mxu0 }
 0x758   :  { %v1812_v53 = vadd.f32 %v4622_v46, %v1811_v41 }
 0x75a   :  { %v1830_v58 = vmax.f32 %v1812_v53, 0.0 }
 0x75c   :  { %v1837_v55 = vpack.c.bf16 %v1830_v58, %v1829_v47 }
 0x75e   :  { %1917 = vmatmul.bf16.vlgmr.msrb.gmra.mxu1 %v1837_v55 }
 0x785   :  { %v1814_v0 = vpop.f32.mrf.mxu0 }
 0x786   :  { %v1815_v17 = vadd.f32 %v4622_v46, %v1814_v0 }
 0x788   :  { %v1831_v63 = vmax.f32 %v1815_v17, 0.0 }
 0x78d   :  { %v1816_v48 = vpop.f32.mrf.mxu0 }
 0x78e   :  { %v1817_v44 = vadd.f32 %v4622_v46, %v1816_v48 }
 0x790   :  { %v1832_v7 = vmax.f32 %v1817_v44, 0.0 }
 0x792   :  { %v1838_v52 = vpack.c.bf16 %v1832_v7, %v1831_v63 }
 0x794   :  { %1922 = vmatmul.bf16.gmra.mxu1 %v1838_v52 }
 0x795   :  { %v1819_v56 = vpop.f32.mrf.mxu0 }
 0x796   :  { %v1820_v19 = vadd.f32 %v4622_v46, %v1819_v56 }
 0x798   :  { %v1833_v43 = vmax.f32 %v1820_v19, 0.0 }
 0x79d   :  { %v1821_v10 = vpop.f32.mrf.mxu0 }
 0x79e   :  { %v1822_v31 = vadd.f32 %v4622_v46, %v1821_v10 }
 0x7a0   :  { %v1834_v3 = vmax.f32 %v1822_v31, 0.0 }
 0x7a2   :  { %v1839_v62 = vpack.c.bf16 %v1834_v3, %v1833_v43 }
 0x7a4   :  { %1927 = vmatmul.bf16.gmra.mxu1 %v1839_v62 }
 0x7ca   :  { %v1824_v18 = vpop.f32.mrf.mxu0 }
 0x7cb   :  { %v1825_v5 = vadd.f32 %v4622_v46, %v1824_v18 }
 0x7cd   :  { %v1835_v51 = vmax.f32 %v1825_v5, 0.0 }
 0x7d2   :  { %v1826_v36 = vpop.f32.mrf.mxu0 }
 0x7d3   :  { %v1827_v22 = vadd.f32 %v4622_v46, %v1826_v36 }
 0x7d5   :  { %v1836_v13 = vmax.f32 %v1827_v22, 0.0 }
 0x7d7   :  { %v1840_v1 = vpack.c.bf16 %v1836_v13, %v1835_v51 }
 0x7d9   :  { %1932 = vmatmul.bf16.gmra.mxu1 %v1840_v1 }
 0x7db   :  { %v1918_v33 = vpop.f32.mrf.mxu1 }
 0x7dc   :  { %v1919_v24 = vadd.f32 %v4623_v54, %v1918_v33  ;;  %v4453_v33 = vld [vmem:[%s7503_s5 + $0x74] sm:$0xf0] }
 0x7de   :  { %v1938_v27 = vadd.f32 %v1919_v24, %v6210_v12  ;;  %v4452_v24 = vld [vmem:[%s7503_s5 + $0x74] sm:$0xf] }
 0x7e0   :  { %v1948_v28 = vsel %vm362_vm2, %v1938_v27, 0.0 }
 0x7e1   :  { %1949 = vadd.xlane.f32.xlu1 %v1948_v28  ;;  %v4267_v28 = vld [vmem:[%s7503_s5 + $0x78] sm:$0xf0] }
 0x7e3   :  { %v1920_v26 = vpop.f32.mrf.mxu1 }
 0x7e4   :  { %v1921_v45 = vadd.f32 %v4623_v54, %v1920_v26  ;;  %v4270_v26 = vor.u32 %v4452_v24, %v4267_v28 }
 0x7e6   :  { %v1939_v11 = vadd.f32 %v1921_v45, %v6213_v20  ;;  %2251 = vmatpush.bf16.msra.mxu3 %v4270_v26  ;;  %v4257_v45 = vld [vmem:[%s7503_s5 + $0x60] sm:$0xf] }
 0x7e8   :  { %v1951_v30 = vsel %vm362_vm2, %v1939_v11, 0.0 }
 0x7e9   :  { %1952 = vadd.xlane.f32.xlu0 %v1951_v30  ;;  %v4450_v30 = vld [vmem:[%s7503_s5 + $0x64] sm:$0xf] }
 0x811   :  { %v1923_v29 = vpop.f32.mrf.mxu1 }
 0x812   :  { %v1924_v21 = vadd.f32 %v4623_v54, %v1923_v29 }
 0x814   :  { %v1940_v8 = vadd.f32 %v1924_v21, %v6227_v35  ;;  %v4259_v21 = vld [vmem:[%s7503_s5 + $0x68] sm:$0xf0] }
 0x816   :  { %v1954_v49 = vsel %vm362_vm2, %v1940_v8, 0.0 }
 0x817   :  { %1955 = vadd.xlane.f32.xlu2 %v1954_v49  ;;  %v4249_v49 = vld [vmem:[%s7503_s5 + $0x50] sm:$0xf] }
 0x819   :  { %v1925_v25 = vpop.f32.mrf.mxu1 }
 0x81a   :  { %v1926_v4 = vadd.f32 %v4623_v54, %v1925_v25  ;;  %v4449_v25 = vld [vmem:[%s7503_s5 + $0x54] sm:$0xf0] }
 0x81c   :  { %v1941_v12 = vadd.f32 %v1926_v4, %v6230_v9  ;;  %v4448_v4 = vld [vmem:[%s7503_s5 + $0x54] sm:$0xf] }
 0x81e   :  { %v1957_v2 = vsel %vm362_vm2, %v1941_v12, 0.0 }
 0x81f   :  { %1958 = vadd.xlane.f32.xlu1 %v1957_v2 }
 0x821   :  { %v1928_v32 = vpop.f32.mrf.mxu1 }
 0x822   :  { %v1929_v14 = vadd.f32 %v4623_v54, %v1928_v32  ;;  %v4250_v32 = vor.u32 %v4449_v25, %v4249_v49 }
 0x824   :  { %v1942_v20 = vadd.f32 %v1929_v14, %v6240_v16  ;;  %v4251_v14 = vld [vmem:[%s7503_s5 + $0x58] sm:$0xf0] }
 0x826   :  { %v1960_v40 = vsel %vm362_vm2, %v1942_v20, 0.0 }
 0x827   :  { %1961 = vadd.xlane.f32.xlu0 %v1960_v40 }
 0x829   :  { %v1930_v23 = vpop.f32.mrf.mxu1 }
 0x82a   :  { %v1931_v37 = vadd.f32 %v4623_v54, %v1930_v23  ;;  %v4254_v23 = vor.u32 %v4448_v4, %v4251_v14 }
 0x82c   :  { %v1943_v35 = vadd.f32 %v1931_v37, %v6243_v34 }
 0x82e   :  { %v1963_v15 = vsel %vm362_vm2, %v1943_v35, 0.0 }
 0x82f   :  { %1964 = vadd.xlane.f32.xlu2 %v1963_v15  ;;  %v4241_v15 = vld [vmem:[%s7503_s5 + $0x40] sm:$0xf] }
 0x854   :  { %v1950_v60 = vpop.xlane.xlu1 %1949 }
 0x855   :  { %v1972_v9 = vmul.f32 %v1950_v60, %v6147_v42  ;;  %v4447_v60 = vld [vmem:[%s7503_s5 + $0x44] sm:$0xf0] }
 0x856   :  { %v1933_v57 = vpop.f32.mrf.mxu1 }
 0x857   :  { %v6300_v38 = vsub.f32 %v1938_v27, %v1972_v9  ;;  %v1934_v6 = vadd.f32 %v4623_v54, %v1933_v57  ;;  %v4242_v9 = vor.u32 %v4447_v60, %v4241_v15  ;;  %v4446_v57 = vld [vmem:[%s7503_s5 + $0x44] sm:$0xf] }
 0x859   :  { %v1988_v16 = vmul.f32 %v6300_v38, %v6300_v38  ;;  %v6305_v50 = vadd.f32 %v1934_v6, %v6279_v61  ;;  %v4243_v6 = vld [vmem:[%s7503_s5 + $0x48] sm:$0xf0] }
 0x85b   :  { %v1996_v46 = vsel %vm362_vm2, %v1988_v16, 0.0  ;;  %v1966_v34 = vsel %vm362_vm2, %v6305_v50, 0.0 }
 0x85c   :  { %v1953_v59 = vpop.xlane.xlu0 %1952  ;;  %1997 = vadd.xlane.f32.xlu1 %v1996_v46  ;;  %1967 = vadd.xlane.f32.xlu2 %v1966_v34 }
 0x85d   :  { %v1973_v41 = vmul.f32 %v1953_v59, %v6147_v42 }
 0x85e   :  { %v1935_v53 = vpop.f32.mrf.mxu1 }
 0x85f   :  { %v6311_v47 = vsub.f32 %v1939_v11, %v1973_v41  ;;  %v1936_v58 = vadd.f32 %v4623_v54, %v1935_v53  ;;  %v4265_v54 = vld [vmem:[%s7503_s5 + $0x70] sm:$0xf]  ;;  %v4451_v11 = vld [vmem:[%s7503_s5 + $0x64] sm:$0xf0] }
 0x860   :  { %v4266_v27 = vor.u32 %v4453_v33, %v4265_v54  ;;  %v4258_v29 = vor.u32 %v4451_v11, %v4257_v45 }
 0x861   :  { %v1989_v55 = vmul.f32 %v6311_v47, %v6311_v47  ;;  %v6316_v61 = vadd.f32 %v1936_v58, %v6282_v39 }
 0x862   :  { %2222 = vmatpush.bf16.msrb.mxu2 %v4266_v27 }
 0x863   :  { %v1999_v0 = vsel %vm362_vm2, %v1989_v55, 0.0  ;;  %v1969_v17 = vsel %vm362_vm2, %v6316_v61, 0.0 }
 0x864   :  { %2000 = vadd.xlane.f32.xlu0 %v1999_v0  ;;  %1970 = vadd.xlane.f32.xlu1 %v1969_v17 }
 0x866   :  { %2223 = vmatpush.bf16.msrb.mxu2 %v4258_v29 }
 0x86a   :  { %2224 = vmatpush.bf16.msrb.mxu2 %v4250_v32 }
 0x86e   :  { %2225 = vmatpush.bf16.msrb.mxu2 %v4242_v9 }
 0x88a   :  { %v1956_v48 = vpop.xlane.xlu2 %1955 }
 0x88b   :  { %v1974_v44 = vmul.f32 %v1956_v48, %v6147_v42 }
 0x88d   :  { %v6322_v63 = vsub.f32 %v1940_v8, %v1974_v44  ;;  %v4262_v8 = vor.u32 %v4450_v30, %v4259_v21 }
 0x88f   :  { %v1990_v7 = vmul.f32 %v6322_v63, %v6322_v63  ;;  %2252 = vmatpush.bf16.msra.mxu3 %v4262_v8 }
 0x891   :  { %v2002_v52 = vsel %vm362_vm2, %v1990_v7, 0.0 }
 0x892   :  { %v1959_v56 = vpop.xlane.xlu1 %1958  ;;  %2003 = vadd.xlane.f32.xlu0 %v2002_v52 }
 0x893   :  { %v1975_v39 = vmul.f32 %v1959_v56, %v6147_v42  ;;  %2253 = vmatpush.bf16.msra.mxu3 %v4254_v23 }
 0x895   :  { %v6328_v19 = vsub.f32 %v1941_v12, %v1975_v39 }
 0x897   :  { %v1991_v10 = vmul.f32 %v6328_v19, %v6328_v19 }
 0x899   :  { %v2005_v31 = vsel %vm362_vm2, %v1991_v10, 0.0 }
 0x89a   :  { %v1962_v43 = vpop.xlane.xlu0 %1961  ;;  %2006 = vadd.xlane.f32.xlu2 %v2005_v31 }
 0x89b   :  { %v1976_v3 = vmul.f32 %v1962_v43, %v6147_v42 }
 0x89d   :  { %v6334_v62 = vsub.f32 %v1942_v20, %v1976_v3 }
 0x89f   :  { %v1992_v18 = vmul.f32 %v6334_v62, %v6334_v62 }
 0x8a1   :  { %v2008_v5 = vsel %vm362_vm2, %v1992_v18, 0.0 }
 0x8a2   :  { %2009 = vadd.xlane.f32.xlu1 %v2008_v5  ;;  %v1965_v36 = vpop.xlane.xlu2 %1964  ;;  %v6412_v5 = vld [vmem:[%s7509_s11] ss:$0 sm:$0xff] }
 0x8a3   :  { %v1977_v22 = vmul.f32 %v1965_v36, %v6147_v42 }
 0x8a5   :  { %v6340_v51 = vsub.f32 %v1943_v35, %v1977_v22 }
 0x8a7   :  { %v1993_v13 = vmul.f32 %v6340_v51, %v6340_v51 }
 0x8a9   :  { %v2011_v1 = vsel %vm362_vm2, %v1993_v13, 0.0 }
 0x8aa   :  { %2012 = vadd.xlane.f32.xlu0 %v2011_v1  ;;  %v6415_v1 = vld [vmem:[#allocation10] ss:$0 sm:$0xff] }
 0x8cf   :  { %v1998_v12 = vpop.xlane.xlu1 %1997  ;;  %v1968_v2 = vpop.xlane.xlu2 %1967 }
 0x8d0   :  { %v2020_v20 = vmul.f32 %v1998_v12, %v6147_v42  ;;  %v1978_v40 = vmul.f32 %v1968_v2, %v6147_v42 }
 0x8d2   :  { %v2028_v37 = vadd.f32 1e-05, %v2020_v20  ;;  %v6384_v35 = vsub.f32 %v6305_v50, %v1978_v40  ;;  %v4246_v50 = vor.u32 %v4446_v57, %v4243_v6 }
 0x8d4   :  { %4780 = vrsqrt.f32 %v2028_v37  ;;  %v1994_v16 = vmul.f32 %v6384_v35, %v6384_v35  ;;  %2254 = vmatpush.bf16.msra.mxu3 %v4246_v50  ;;  %vm2042_vm8 = vweird.f32 %v2028_v37 }
 0x8d6   :  { %v2014_v46 = vsel %vm362_vm2, %v1994_v16, 0.0 }
 0x8d7   :  { %v2001_v34 = vpop.xlane.xlu0 %2000  ;;  %v1971_v59 = vpop.xlane.xlu1 %1970  ;;  %2015 = vadd.xlane.f32.xlu2 %v2014_v46 }
 0x8d8   :  { %v2021_v41 = vmul.f32 %v2001_v34, %v6147_v42  ;;  %v1979_v53 = vmul.f32 %v1971_v59, %v6147_v42 }
 0x8da   :  { %v4781_v58 = vpop.eup %4780  ;;  %v2029_v55 = vadd.f32 1e-05, %v2021_v41  ;;  %v6404_v0 = vsub.f32 %v6316_v61, %v1979_v53 }
 0x8db   :  { %v2037_v17 = vmul.f32 %v4781_v58, %v2028_v37  ;;  %vm2043_vm7 = vweird.f32 %v4781_v58 }
 0x8dc   :  { %4782 = vrsqrt.f32 %v2029_v55  ;;  %v1995_v48 = vmul.f32 %v6404_v0, %v6404_v0  ;;  %vm2044_vm9 = vmor %vm2042_vm8, %vm2043_vm7  ;;  %vm2052_vm11 = vweird.f32 %v2029_v55 }
 0x8dd   :  { %v2038_v44 = vmul.f32 %v4781_v58, %v2037_v17 }
 0x8de   :  { %v2017_v7 = vsel %vm362_vm2, %v1995_v48, 0.0 }
 0x8df   :  { %v2039_v52 = vmul.f32 0.5, %v2038_v44  ;;  %2018 = vadd.xlane.f32.xlu1 %v2017_v7 }
 0x8e1   :  { %v2040_v56 = vsub.f32 1.5, %v2039_v52 }
 0x8e2   :  { %v4783_v39 = vpop.eup %4782 }
 0x8e3   :  { %v2041_v10 = vmul.f32 %v4781_v58, %v2040_v56  ;;  %v2047_v31 = vmul.f32 %v4783_v39, %v2029_v55  ;;  %vm2053_vm10 = vweird.f32 %v4783_v39 }
 0x8e4   :  { %vm2054_vm12 = vmor %vm2052_vm11, %vm2053_vm10 }
 0x8e5   :  { %v2048_v43 = vmul.f32 %v4783_v39, %v2047_v31  ;;  %v2045_v61 = vsel %vm2044_vm9, %v4781_v58, %v2041_v10 }
 0x8e6   :  { %v2116_v36 = vmul.f32 %v2045_v61, %v6300_v38 }
 0x8e7   :  { %v2049_v3 = vmul.f32 0.5, %v2048_v43 }
 0x8e8   :  { %v2127_v54 = vmul.f32 %v6412_v5, %v2116_v36 }
 0x8e9   :  { %v2050_v18 = vsub.f32 1.5, %v2049_v3 }
 0x8ea   :  { %v6421_v27 = vadd.f32 %v6415_v1, %v2127_v54 }
 0x8eb   :  { %v2051_v22 = vmul.f32 %v4783_v39, %v2050_v18 }
 0x8ed   :  { %v2055_v13 = vsel %vm2054_vm12, %v4783_v39, %v2051_v22 }
 0x8ee   :  { %v2117_v33 = vmul.f32 %v2055_v13, %v6311_v47 }
 0x8f0   :  { %v2128_v24 = vmul.f32 %v6412_v5, %v2117_v33 }
 0x8f2   :  { %v6424_v28 = vadd.f32 %v6415_v1, %v2128_v24 }
 0x8f4   :  { %v2146_v38 = vpack.c.bf16 %v6424_v28, %v6421_v27 }
 0x8f6   :  { %4271 = vmatmul.msk.bf16.vlgmr.msrb.gmra.mxu2 %vm362_vm2, %v2146_v38  ;;  %4275 = vmatmul.msk.bf16.vlgmr.msra.gmra.mxu3 %vm362_vm2, %v2146_v38 }
 0x905   :  { %v2004_v26 = vpop.xlane.xlu0 %2003 }
 0x906   :  { %v2022_v45 = vmul.f32 %v2004_v26, %v6147_v42 }
 0x908   :  { %v2030_v11 = vadd.f32 1e-05, %v2022_v45 }
 0x90a   :  { %4784 = vrsqrt.f32 %v2030_v11  ;;  %vm2062_vm14 = vweird.f32 %v2030_v11 }
 0x90d   :  { %v2007_v47 = vpop.xlane.xlu2 %2006 }
 0x90e   :  { %v2023_v30 = vmul.f32 %v2007_v47, %v6147_v42 }
 0x910   :  { %v4785_v29 = vpop.eup %4784  ;;  %v2031_v21 = vadd.f32 1e-05, %v2023_v30 }
 0x911   :  { %v2057_v8 = vmul.f32 %v4785_v29, %v2030_v11  ;;  %vm2063_vm13 = vweird.f32 %v4785_v29 }
 0x912   :  { %4786 = vrsqrt.f32 %v2031_v21  ;;  %vm2064_vm15 = vmor %vm2062_vm14, %vm2063_vm13  ;;  %vm2072_vm1 = vweird.f32 %v2031_v21 }
 0x913   :  { %v2058_v49 = vmul.f32 %v4785_v29, %v2057_v8 }
 0x915   :  { %v2059_v25 = vmul.f32 0.5, %v2058_v49  ;;  %v2010_v4 = vpop.xlane.xlu1 %2009 }
 0x916   :  { %v2024_v12 = vmul.f32 %v2010_v4, %v6147_v42 }
 0x917   :  { %v2060_v2 = vsub.f32 1.5, %v2059_v25 }
 0x918   :  { %v4787_v32 = vpop.eup %4786  ;;  %v2032_v14 = vadd.f32 1e-05, %v2024_v12 }
 0x919   :  { %v2061_v20 = vmul.f32 %v4785_v29, %v2060_v2  ;;  %v2067_v40 = vmul.f32 %v4787_v32, %v2031_v21  ;;  %vm2073_vm0 = vweird.f32 %v4787_v32 }
 0x91a   :  { %4788 = vrsqrt.f32 %v2032_v14  ;;  %vm2074_vm6 = vmor %vm2072_vm1, %vm2073_vm0  ;;  %vm2082_vm8 = vweird.f32 %v2032_v14 }
 0x91b   :  { %v2068_v23 = vmul.f32 %v4787_v32, %v2067_v40  ;;  %v2065_v37 = vsel %vm2064_vm15, %v4785_v29, %v2061_v20 }
 0x91c   :  { %v2118_v16 = vmul.f32 %v2065_v37, %v6322_v63 }
 0x91d   :  { %v2069_v15 = vmul.f32 0.5, %v2068_v23  ;;  %v2013_v60 = vpop.xlane.xlu0 %2012 }
 0x91e   :  { %v2025_v9 = vmul.f32 %v2013_v60, %v6147_v42  ;;  %v2129_v58 = vmul.f32 %v6412_v5, %v2118_v16 }
 0x91f   :  { %v2070_v57 = vsub.f32 1.5, %v2069_v15 }
 0x920   :  { %v4789_v6 = vpop.eup %4788  ;;  %v2033_v50 = vadd.f32 1e-05, %v2025_v9  ;;  %v6439_v7 = vadd.f32 %v6415_v1, %v2129_v58 }
 0x921   :  { %v2071_v46 = vmul.f32 %v4787_v32, %v2070_v57  ;;  %v2077_v34 = vmul.f32 %v4789_v6, %v2032_v14  ;;  %vm2083_vm7 = vweird.f32 %v4789_v6 }
 0x922   :  { %4790 = vrsqrt.f32 %v2033_v50  ;;  %vm2084_vm9 = vmor %vm2082_vm8, %vm2083_vm7  ;;  %vm2092_vm11 = vweird.f32 %v2033_v50 }
 0x923   :  { %v2075_v59 = vsel %vm2074_vm6, %v4787_v32, %v2071_v46  ;;  %v2078_v41 = vmul.f32 %v4789_v6, %v2077_v34 }
 0x924   :  { %v2119_v53 = vmul.f32 %v2075_v59, %v6328_v19 }
 0x925   :  { %v2079_v55 = vmul.f32 0.5, %v2078_v41 }
 0x926   :  { %v2130_v17 = vmul.f32 %v6412_v5, %v2119_v53 }
 0x927   :  { %v2080_v48 = vsub.f32 1.5, %v2079_v55 }
 0x928   :  { %v4791_v44 = vpop.eup %4790  ;;  %v6442_v63 = vadd.f32 %v6415_v1, %v2130_v17 }
 0x929   :  { %v2081_v52 = vmul.f32 %v4789_v6, %v2080_v48  ;;  %v2087_v56 = vmul.f32 %v4791_v44, %v2033_v50  ;;  %vm2093_vm10 = vweird.f32 %v4791_v44 }
 0x92a   :  { %v2147_v39 = vpack.c.bf16 %v6442_v63, %v6439_v7  ;;  %vm2094_vm12 = vmor %vm2092_vm11, %vm2093_vm10 }
 0x92b   :  { %v2088_v19 = vmul.f32 %v4791_v44, %v2087_v56  ;;  %v2085_v10 = vsel %vm2084_vm9, %v4789_v6, %v2081_v52 }
 0x92c   :  { %4272 = vmatmul.msk.bf16.gmra.mxu2 %vm362_vm2, %v2147_v39  ;;  %4276 = vmatmul.msk.bf16.gmra.mxu3 %vm362_vm2, %v2147_v39  ;;  %v2120_v61 = vmul.f32 %v2085_v10, %v6334_v62 }
 0x92d   :  { %v2089_v31 = vmul.f32 0.5, %v2088_v19 }
 0x92e   :  { %v2131_v22 = vmul.f32 %v6412_v5, %v2120_v61 }
 0x92f   :  { %v2090_v43 = vsub.f32 1.5, %v2089_v31 }
 0x930   :  { %v6453_v54 = vadd.f32 %v6415_v1, %v2131_v22 }
 0x931   :  { %v2091_v3 = vmul.f32 %v4791_v44, %v2090_v43 }
 0x933   :  { %v2095_v18 = vsel %vm2094_vm12, %v4791_v44, %v2091_v3 }
 0x934   :  { %v2121_v36 = vmul.f32 %v2095_v18, %v6340_v51 }
 0x936   :  { %v2132_v13 = vmul.f32 %v6412_v5, %v2121_v36 }
 0x938   :  { %v6456_v33 = vadd.f32 %v6415_v1, %v2132_v13 }
 0x93a   :  { %v2148_v24 = vpack.c.bf16 %v6456_v33, %v6453_v54 }
 0x93c   :  { %4273 = vmatmul.msk.bf16.gmra.mxu2 %vm362_vm2, %v2148_v24  ;;  %4277 = vmatmul.msk.bf16.gmra.mxu3 %vm362_vm2, %v2148_v24 }
 0x94a   :  { %v2016_v62 = vpop.xlane.xlu2 %2015 }
 0x94b   :  { %v2026_v51 = vmul.f32 %v2016_v62, %v6147_v42 }
 0x94d   :  { %v2034_v38 = vadd.f32 1e-05, %v2026_v51 }
 0x94f   :  { %4792 = vrsqrt.f32 %v2034_v38  ;;  %vm2102_vm14 = vweird.f32 %v2034_v38 }
 0x952   :  { %v2019_v26 = vpop.xlane.xlu1 %2018 }
 0x953   :  { %v2027_v45 = vmul.f32 %v2019_v26, %v6147_v42 }
 0x955   :  { %v4793_v11 = vpop.eup %4792  ;;  %v2035_v47 = vadd.f32 1e-05, %v2027_v45 }
 0x956   :  { %v2097_v30 = vmul.f32 %v4793_v11, %v2034_v38  ;;  %vm2103_vm13 = vweird.f32 %v4793_v11 }
 0x957   :  { %4794 = vrsqrt.f32 %v2035_v47  ;;  %vm2104_vm15 = vmor %vm2102_vm14, %vm2103_vm13  ;;  %vm2112_vm1 = vweird.f32 %v2035_v47 }
 0x958   :  { %v2098_v29 = vmul.f32 %v4793_v11, %v2097_v30 }
 0x95a   :  { %v2099_v21 = vmul.f32 0.5, %v2098_v29 }
 0x95c   :  { %v2100_v8 = vsub.f32 1.5, %v2099_v21 }
 0x95d   :  { %v4795_v49 = vpop.eup %4794 }
 0x95e   :  { %v2101_v25 = vmul.f32 %v4793_v11, %v2100_v8  ;;  %v2107_v4 = vmul.f32 %v4795_v49, %v2035_v47  ;;  %vm2113_vm0 = vweird.f32 %v4795_v49 }
 0x95f   :  { %vm2114_vm6 = vmor %vm2112_vm1, %vm2113_vm0 }
 0x960   :  { %v2108_v12 = vmul.f32 %v4795_v49, %v2107_v4  ;;  %v2105_v2 = vsel %vm2104_vm15, %v4793_v11, %v2101_v25 }
 0x961   :  { %v2122_v20 = vmul.f32 %v2105_v2, %v6384_v35  ;;  %v2160_v35 = vld [vmem:[#allocation4 + $0x2] sm:$0x3] }
 0x962   :  { %v2109_v32 = vmul.f32 0.5, %v2108_v12  ;;  %v6478_v16 = vperm.slane %v2160_v35, 1  ;;  %v2162_v48 = vperm.slane %v2160_v35, 0 }
 0x963   :  { %v2133_v15 = vmul.f32 %v6412_v5, %v2122_v20 }
 0x964   :  { %v2110_v14 = vsub.f32 1.5, %v2109_v32 }
 0x965   :  { %v6469_v9 = vadd.f32 %v6415_v1, %v2133_v15 }
 0x966   :  { %v2111_v40 = vmul.f32 %v4795_v49, %v2110_v14 }
 0x968   :  { %v2115_v23 = vsel %vm2114_vm6, %v4795_v49, %v2111_v40 }
 0x969   :  { %v2123_v37 = vmul.f32 %v2115_v23, %v6404_v0 }
 0x96b   :  { %v2134_v60 = vmul.f32 %v6412_v5, %v2123_v37 }
 0x96d   :  { %v6472_v57 = vadd.f32 %v6415_v1, %v2134_v60 }
 0x96f   :  { %v2149_v6 = vpack.c.bf16 %v6472_v57, %v6469_v9 }
 0x971   :  { %4274 = vmatmul.msk.bf16.gmra.mxu2 %vm362_vm2, %v2149_v6  ;;  %4278 = vmatmul.msk.bf16.gmra.mxu3 %vm362_vm2, %v2149_v6 }
 0x979   :  { %v2256_v0 = vpop.f32.mrf.mxu3  ;;  %v2227_v58 = vpop.f32.mrf.mxu2 }
 0x97a   :  { %v2257_v50 = vadd.f32 %v2256_v0, %v6478_v16  ;;  %v2228_v45 = vadd.f32 %v2227_v58, %v2162_v48 }
 0x97c   :  { %v2284_v46 = vpack.c.bf16 %v2257_v50, %v2257_v50  ;;  %v2276_v47 = vpack.c.bf16 %v2228_v45, %v2228_v45 }
 0x97e   :  { %v2473_v1 = vunpack.c.l.b16 %v2284_v46  ;;  %v2300_v21 = vunpack.c.l.b16 %v2276_v47 }
 0x981   :  { %v2258_v5 = vpop.f32.mrf.mxu3  ;;  %v2229_v55 = vpop.f32.mrf.mxu2 }
 0x982   :  { %v2259_v34 = vadd.f32 %v2258_v5, %v6478_v16  ;;  %v2230_v26 = vadd.f32 %v2229_v55, %v2162_v48 }
 0x984   :  { %v2285_v59 = vpack.c.bf16 %v2259_v34, %v2259_v34  ;;  %v2277_v11 = vpack.c.bf16 %v2230_v26, %v2230_v26 }
 0x986   :  { %v2474_v41 = vunpack.c.l.b16 %v2285_v59  ;;  %v2301_v29 = vunpack.c.l.b16 %v2277_v11 }
 0x988   :  { %v6482_v53 = vpack.c.b16 %v2474_v41, %v2473_v1  ;;  %v6500_v8 = vpack.c.b16 %v2301_v29, %v2300_v21 }
 0x9af   :  { %v2232_v17 = vpop.f32.mrf.mxu2  ;;  %v2261_v51 = vpop.f32.mrf.mxu3 }
 0x9b0   :  { %v2233_v44 = vadd.f32 %v2232_v17, %v2162_v48  ;;  %v2262_v46 = vadd.f32 %v2261_v51, %v6478_v16 }
 0x9b2   :  { %v2278_v56 = vpack.c.bf16 %v2233_v44, %v2233_v44 }
 0x9b4   :  { %v2302_v10 = vunpack.c.l.b16 %v2278_v56 }
 0x9b7   :  { %v2234_v52 = vpop.f32.mrf.mxu2  ;;  %v2263_v30 = vpop.f32.mrf.mxu3 }
 0x9b8   :  { %v2235_v39 = vadd.f32 %v2234_v52, %v2162_v48  ;;  %v2264_v35 = vadd.f32 %v2263_v30, %v6478_v16 }
 0x9ba   :  { %v2279_v19 = vpack.c.bf16 %v2235_v39, %v2235_v39  ;;  %v2287_v55 = vpack.c.bf16 %v2264_v35, %v2264_v35 }
 0x9bc   :  { %v2303_v31 = vunpack.c.l.b16 %v2279_v19 }
 0x9be   :  { %v6484_v43 = vpack.c.b16 %v2303_v31, %v2302_v10 }
 0x9bf   :  { %v2237_v61 = vpop.f32.mrf.mxu2  ;;  %v2266_v49 = vpop.f32.mrf.mxu3 }
 0x9c0   :  { %2314 = vrot.lane.b32.xlu1 %v6484_v43, %s5200_s21  ;;  %v2238_v3 = vadd.f32 %v2237_v61, %v2162_v48  ;;  %v2267_v20 = vadd.f32 %v2266_v49, %v6478_v16 }
 0x9c2   :  { %v2280_v36 = vpack.c.bf16 %v2238_v3, %v2238_v3  ;;  %v2288_v34 = vpack.c.bf16 %v2267_v20, %v2267_v20 }
 0x9c4   :  { %v2304_v24 = vunpack.c.l.b16 %v2280_v36  ;;  %v2477_v56 = vunpack.c.l.b16 %v2288_v34 }
 0x9c7   :  { %v2239_v18 = vpop.f32.mrf.mxu2  ;;  %v2268_v25 = vpop.f32.mrf.mxu3 }
 0x9c8   :  { %v2240_v22 = vadd.f32 %v2239_v18, %v2162_v48  ;;  %2532 = vrot.lane.b32.xlu1 %v6484_v43, %s5206_s30  ;;  %v2269_v14 = vadd.f32 %v2268_v25, %v6478_v16 }
 0x9ca   :  { %v2281_v13 = vpack.c.bf16 %v2240_v22, %v2240_v22  ;;  %v2289_v0 = vpack.c.bf16 %v2269_v14, %v2269_v14 }
 0x9cc   :  { %v2305_v62 = vunpack.c.l.b16 %v2281_v13  ;;  %v2478_v17 = vunpack.c.l.b16 %v2289_v0 }
 0x9ce   :  { %v6490_v38 = vpack.c.b16 %v2305_v62, %v2304_v24  ;;  %v6523_v39 = vpack.c.b16 %v2478_v17, %v2477_v56 }
 0x9d0   :  { %2542 = vrot.lane.b32.xlu2 %v6490_v38, %s5205_s16  ;;  %2970 = vrot.lane.b32.xlu1 %v6490_v38, %s5194_s27 }
 0x9d8   :  { %2316 = vrot.lane.b32.xlu2 %v6490_v38, %s5200_s21  ;;  %2968 = vrot.lane.b32.xlu1 %v6484_v43, %s5194_s27 }
 0x9e0   :  { %2530 = vrot.lane.b32.xlu2 %v6500_v8, %s5206_s30 }
 0x9e8   :  { %2534 = vrot.lane.b32.xlu2 %v6490_v38, %s5206_s30 }
 0x9f4   :  { %v2242_v4 = vpop.f32.mrf.mxu2  ;;  %v2271_v12 = vpop.f32.mrf.mxu3 }
 0x9f5   :  { %v2243_v2 = vadd.f32 %v2242_v4, %v2162_v48  ;;  %v2272_v32 = vadd.f32 %v2271_v12, %v6478_v16 }
 0x9f7   :  { %v2282_v37 = vpack.c.bf16 %v2243_v2, %v2243_v2  ;;  %v2290_v15 = vpack.c.bf16 %v2272_v32, %v2272_v32 }
 0x9f9   :  { %v2306_v59 = vunpack.c.l.b16 %v2282_v37  ;;  %v2479_v1 = vunpack.c.l.b16 %v2290_v15 }
 0x9fc   :  { %v2244_v40 = vpop.f32.mrf.mxu2  ;;  %v2273_v23 = vpop.f32.mrf.mxu3 }
 0x9fd   :  { %v2245_v60 = vadd.f32 %v2244_v40, %v2162_v48  ;;  %v2274_v6 = vadd.f32 %v2273_v23, %v6478_v16  ;;  %v2286_v48 = vpack.c.bf16 %v2262_v46, %v2262_v46  ;;  %v2476_v16 = vunpack.c.l.b16 %v2287_v55 }
 0x9ff   :  { %v2283_v50 = vpack.c.bf16 %v2245_v60, %v2245_v60  ;;  %v2291_v5 = vpack.c.bf16 %v2274_v6, %v2274_v6  ;;  %v2475_v19 = vunpack.c.l.b16 %v2286_v48 }
 0xa01   :  { %v2307_v41 = vunpack.c.l.b16 %v2283_v50  ;;  %v2480_v58 = vunpack.c.l.b16 %v2291_v5  ;;  %v6526_v10 = vpack.c.b16 %v2476_v16, %v2475_v19  ;;  %v6622_v19 = vld [vmem:[%s7502_s4] sm:$0xff] }
 0xa03   :  { %v6512_v44 = vpack.c.b16 %v2307_v41, %v2306_v59  ;;  %v6514_v52 = vpack.c.b16 %v2480_v58, %v2479_v1 }
 0xa05   :  { %2505 = vmatpush.bf16.msra.mxu1 %v6514_v52  ;;  %2758 = vrot.lane.b32.xlu2 %v6512_v44, %s5191_s24 }
 0xa06   :  { %2318 = vrot.lane.b32.xlu1 %v6512_v44, %s5200_s21  ;;  %2544 = vrot.lane.b32.xlu0 %v6512_v44, %s5205_s16 }
 0xa09   :  { %2506 = vmatpush.bf16.msra.mxu1 %v6523_v39 }
 0xa0d   :  { %2507 = vmatpush.bf16.msra.mxu1 %v6526_v10  ;;  %2756 = vrot.lane.b32.xlu2 %v6490_v38, %s5191_s24 }
 0xa0e   :  { %2754 = vrot.lane.b32.xlu1 %v6484_v43, %s5191_s24  ;;  %2540 = vrot.lane.b32.xlu0 %v6484_v43, %s5205_s16 }
 0xa11   :  { %2508 = vmatpush.bf16.msra.mxu1 %v6482_v53 }
 0xa15   :  { %2958 = vrot.lane.b32.xlu2 %v6500_v8, %s5208_s22 }
 0xa16   :  { %2744 = vrot.lane.b32.xlu1 %v6500_v8, %s5207_s20  ;;  %2538 = vrot.lane.b32.xlu0 %v6500_v8, %s5205_s16 }
 0xa1d   :  { %2960 = vrot.lane.b32.xlu2 %v6484_v43, %s5208_s22 }
 0xa1e   :  { %2962 = vrot.lane.b32.xlu1 %v6490_v38, %s5208_s22  ;;  %2312 = vrot.lane.b32.xlu0 %v6500_v8, %s5200_s21 }
 0xa25   :  { %2748 = vrot.lane.b32.xlu2 %v6490_v38, %s5207_s20 }
 0xa26   :  { %2695 = vrot.lane.b32.xlu1 %v6523_v39, %s5206_s30  ;;  %2972 = vrot.lane.b32.xlu0 %v6512_v44, %s5194_s27 }
 0xa2a   :  { %v2543_v31 = vpop.permute.xlu2 %2542 }
 0xa2b   :  { %v2565_v4 = vsel %vm477_vm3, %v2543_v31, 0 }
 0xa2d   :  { %2697 = vrot.lane.b32.xlu2 %v6514_v52, %s5206_s30 }
 0xa2e   :  { %2691 = vrot.lane.b32.xlu1 %v6482_v53, %s5206_s30  ;;  %2966 = vrot.lane.b32.xlu0 %v6500_v8, %s5194_s27 }
 0xa32   :  { %v2317_v61 = vpop.permute.xlu2 %2316  ;;  %v2315_v18 = vpop.permute.xlu1 %2314 }
 0xa33   :  { %v2339_v12 = vsel %vm477_vm3, %v2317_v61, 0  ;;  %v2336_v20 = vsel %vm477_vm3, %v2315_v18, 0 }
 0xa35   :  { %3125 = vrot.lane.b32.xlu2 %v6514_v52, %s5208_s22 }
 0xa36   :  { %2750 = vrot.lane.b32.xlu1 %v6512_v44, %s5207_s20  ;;  %2536 = vrot.lane.b32.xlu0 %v6512_v44, %s5206_s30 }
 0xa3a   :  { %v2531_v3 = vpop.permute.xlu2 %2530  ;;  %v2533_v22 = vpop.permute.xlu1 %2532 }
 0xa3e   :  { %2752 = vrot.lane.b32.xlu0 %v6500_v8, %s5191_s24 }
 0xa42   :  { %v6574_v36 = vpop.permute.xlu2 %2534  ;;  %v2971_v24 = vpop.permute.xlu1 %2970 }
 0xa43   :  { %v2993_v34 = vsel %vm477_vm3, %v2971_v24, 0 }
 0xa46   :  { %2746 = vrot.lane.b32.xlu0 %v6484_v43, %s5207_s20 }
 0xa4a   :  { %v2969_v26 = vpop.permute.xlu1 %2968 }
 0xa4b   :  { %v2990_v41 = vsel %vm477_vm3, %v2969_v26, 0 }
 0xa4e   :  { %2693 = vrot.lane.b32.xlu0 %v6526_v10, %s5206_s30 }
 0xa56   :  { %2964 = vrot.lane.b32.xlu0 %v6512_v44, %s5208_s22 }
 0xa5f   :  { %v2759_v13 = vpop.permute.xlu2 %2758 }
 0xa60   :  { %v2782_v6 = vsel %vm477_vm3, %v2759_v13, 0  ;;  %v6637_v13 = vld [vmem:[%s7502_s4 + $0x8] sm:$0xff] }
 0xa67   :  { %v2757_v62 = vpop.permute.xlu2 %2756 }
 0xa68   :  { %v2779_v5 = vsel %vm477_vm3, %v2757_v62, 0 }
 0xa6f   :  { %v6576_v51 = vpop.permute.xlu2 %2958 }
 0xa77   :  { %v6578_v45 = vpop.permute.xlu2 %2960 }
 0xa78   :  { %v2319_v11 = vpop.permute.xlu1 %2318  ;;  %v2545_v47 = vpop.permute.xlu0 %2544 }
 0xa79   :  { %v2342_v30 = vsel %vm477_vm3, %v2319_v11, 0  ;;  %v2568_v29 = vsel %vm477_vm3, %v2545_v47, 0 }
 0xa7a   :  { %2348 = vmatpush.bf16.xpose.msra.mxu0 %v2342_v30  ;;  %2574 = vmatpush.bf16.xpose.msra.mxu2 %v2568_v29 }
 0xa7f   :  { %v2749_v21 = vpop.permute.xlu2 %2748 }
 0xa80   :  { %v2755_v49 = vpop.permute.xlu1 %2754  ;;  %v2541_v25 = vpop.permute.xlu0 %2540 }
 0xa81   :  { %v2562_v40 = vsel %vm477_vm3, %v2541_v25, 0  ;;  %v2776_v59 = vsel %vm477_vm3, %v2755_v49, 0 }
 0xa82   :  { %2349 = vmatpush.bf16.xpose.msra.mxu0 %v2339_v12  ;;  %2575 = vmatpush.bf16.xpose.msra.mxu2 %v2565_v4  ;;  %v6667_v12 = vld [vmem:[%s7502_s4 + $0x18] sm:$0xff] }
 0xa87   :  { %v2698_v2 = vpop.permute.xlu2 %2697 }
 0xa88   :  { %v2745_v32 = vpop.permute.xlu1 %2744  ;;  %v2539_v14 = vpop.permute.xlu0 %2538  ;;  %2719 = vmatpush.bf16.msrb.mxu3 %v2698_v2 }
 0xa89   :  { %v2559_v60 = vsel %vm477_vm3, %v2539_v14, 0 }
 0xa8a   :  { %2350 = vmatpush.bf16.xpose.msra.mxu0 %v2336_v20  ;;  %2576 = vmatpush.bf16.xpose.msra.mxu2 %v2562_v40 }
 0xa8f   :  { %v3126_v56 = vpop.permute.xlu2 %3125 }
 0xa90   :  { %v2963_v23 = vpop.permute.xlu1 %2962  ;;  %v2313_v37 = vpop.permute.xlu0 %2312 }
 0xa91   :  { %v2333_v15 = vsel %vm477_vm3, %v2313_v37, 0  ;;  %v6682_v37 = vld [vmem:[%s7502_s4 + $0x20] sm:$0xff] }
 0xa92   :  { %2351 = vmatpush.bf16.xpose.msra.mxu0 %v2333_v15  ;;  %2577 = vmatpush.bf16.xpose.msra.mxu2 %v2559_v60 }
 0xa98   :  { %v2696_v35 = vpop.permute.xlu1 %2695  ;;  %v2973_v0 = vpop.permute.xlu0 %2972 }
 0xa99   :  { %v2996_v50 = vsel %vm477_vm3, %v2973_v0, 0  ;;  %4279 = vmatmul.msk.bf16.vlgmr.msra.gmra.mxu0 %vm477_vm3, %v6500_v8  ;;  %4287 = vmatmul.msk.bf16.vlgmr.msra.gmra.mxu2 %vm477_vm3, %v2531_v3 }
 0xa9a   :  { %2788 = vmatpush.bf16.xpose.msrb.mxu0 %v2782_v6  ;;  %2720 = vmatpush.bf16.msrb.mxu3 %v2696_v35 }
 0xa9b   :  { %3002 = vmatpush.bf16.xpose.msrb.mxu2 %v2996_v50 }
 0xaa0   :  { %v2967_v46 = vpop.permute.xlu0 %2966 }
 0xaa1   :  { %v2987_v58 = vsel %vm477_vm3, %v2967_v46, 0 }
 0xaa2   :  { %2789 = vmatpush.bf16.xpose.msrb.mxu0 %v2779_v5  ;;  %v6697_v5 = vld [vmem:[%s7502_s4 + $0x28] sm:$0xff] }
 0xaa3   :  { %3003 = vmatpush.bf16.xpose.msrb.mxu2 %v2993_v34 }
 0xaa8   :  { %v2537_v1 = vpop.permute.xlu0 %2536 }
 0xaa9   :  { %4280 = vmatmul.msk.bf16.gmra.mxu0 %vm477_vm3, %v6484_v43  ;;  %4288 = vmatmul.msk.bf16.gmra.mxu2 %vm477_vm3, %v2533_v22  ;;  %v2692_v43 = vpop.permute.xlu1 %2691 }
 0xaaa   :  { %2790 = vmatpush.bf16.xpose.msrb.mxu0 %v2776_v59 }
 0xaab   :  { %3004 = vmatpush.bf16.xpose.msrb.mxu2 %v2990_v41 }
 0xab0   :  { %v2753_v8 = vpop.permute.xlu0 %2752 }
 0xab1   :  { %v2773_v55 = vsel %vm477_vm3, %v2753_v8, 0 }
 0xab2   :  { %2791 = vmatpush.bf16.xpose.msrb.mxu0 %v2773_v55 }
 0xab3   :  { %3005 = vmatpush.bf16.xpose.msrb.mxu2 %v2987_v58  ;;  %v6712_v58 = vld [vmem:[%s7502_s4 + $0x30] sm:$0xff] }
 0xab8   :  { %v2747_v17 = vpop.permute.xlu0 %2746 }
 0xab9   :  { %4281 = vmatmul.msk.bf16.gmra.mxu0 %vm477_vm3, %v6490_v38  ;;  %4289 = vmatmul.msk.bf16.gmra.mxu2 %vm477_vm3, %v6574_v36  ;;  %v2751_v38 = vpop.permute.xlu1 %2750 }
 0xac0   :  { %v2694_v48 = vpop.permute.xlu0 %2693 }
 0xac1   :  { %2721 = vmatpush.bf16.msrb.mxu3 %v2694_v48 }
 0xac5   :  { %2722 = vmatpush.bf16.msrb.mxu3 %v2692_v43  ;;  %v6720_v43 = vld [vmem:[%s7502_s4 + $0x38] sm:$0xff] }
 0xac8   :  { %v2965_v16 = vpop.permute.xlu0 %2964 }
 0xac9   :  { %3147 = vmatpush.bf16.msra.mxu3 %v3126_v56  ;;  %4282 = vmatmul.msk.bf16.gmra.mxu0 %vm477_vm3, %v6512_v44 }
 0xaca   :  { %4290 = vmatmul.msk.bf16.gmra.mxu2 %vm477_vm3, %v2537_v1 }
 0xad9   :  { %4295 = vmatmul.msk.bf16.vlgmr.msrb.gmra.mxu0 %vm477_vm3, %v2745_v32 }
 0xada   :  { %4303 = vmatmul.msk.bf16.vlgmr.msrb.gmra.mxu2 %vm477_vm3, %v6576_v51 }
 0xae9   :  { %4296 = vmatmul.msk.bf16.gmra.mxu0 %vm477_vm3, %v2747_v17 }
 0xaea   :  { %4304 = vmatmul.msk.bf16.gmra.mxu2 %vm477_vm3, %v6578_v45  ;;  %v6648_v45 = vld [vmem:[%s7502_s4 + $0x10] sm:$0xff] }
 0xaf9   :  { %4297 = vmatmul.msk.bf16.gmra.mxu0 %vm477_vm3, %v2749_v21 }
 0xafa   :  { %4305 = vmatmul.msk.bf16.gmra.mxu2 %vm477_vm3, %v2963_v23 }
 0xb09   :  { %4298 = vmatmul.msk.bf16.gmra.mxu0 %vm477_vm3, %v2751_v38 }
 0xb0a   :  { %4306 = vmatmul.msk.bf16.gmra.mxu2 %vm477_vm3, %v2965_v16 }
 0xb16   :  { %v2353_v44 = vpop.f32.mrf.mxu0 }
 0xb17   :  { %v6625_v31 = vadd.f32 %v6622_v19, %v2353_v44 }
 0xb19   :  { %v2373_v61 = vsel %vm362_vm2, %v6625_v31, -inf }
 0xb1a   :  { %2374 = vmax.xlane.f32.xlu1 %v2373_v61 }
 0xb1c   :  { %v2579_v3 = vpop.f32.mrf.mxu2 }
 0xb1d   :  { %v6630_v18 = vadd.f32 %v6622_v19, %v2579_v3 }
 0xb1e   :  { %v2355_v36 = vpop.f32.mrf.mxu0 }
 0xb1f   :  { %v2599_v22 = vsel %vm362_vm2, %v6630_v18, -inf  ;;  %v6640_v24 = vadd.f32 %v6637_v13, %v2355_v36 }
 0xb20   :  { %2600 = vmax.xlane.f32.xlu2 %v2599_v22 }
 0xb21   :  { %v2376_v30 = vsel %vm362_vm2, %v6640_v24, -inf }
 0xb24   :  { %v2581_v62 = vpop.f32.mrf.mxu2 }
 0xb25   :  { %v6643_v51 = vadd.f32 %v6637_v13, %v2581_v62 }
 0xb26   :  { %v2358_v26 = vpop.f32.mrf.mxu0 }
 0xb27   :  { %v6651_v11 = vadd.f32 %v6648_v45, %v2358_v26  ;;  %v2602_v47 = vsel %vm362_vm2, %v6643_v51, -inf }
 0xb28   :  { %2603 = vmax.xlane.f32.xlu0 %v2602_v47  ;;  %2377 = vmax.xlane.f32.xlu2 %v2376_v30 }
 0xb29   :  { %v2379_v29 = vsel %vm362_vm2, %v6651_v11, -inf }
 0xb2a   :  { %2380 = vmax.xlane.f32.xlu1 %v2379_v29 }
 0xb2c   :  { %v2584_v21 = vpop.f32.mrf.mxu2 }
 0xb2d   :  { %v6660_v49 = vadd.f32 %v6648_v45, %v2584_v21 }
 0xb2e   :  { %v2360_v25 = vpop.f32.mrf.mxu0 }
 0xb2f   :  { %v2605_v4 = vsel %vm362_vm2, %v6660_v49, -inf  ;;  %v6670_v2 = vadd.f32 %v6667_v12, %v2360_v25 }
 0xb30   :  { %2606 = vmax.xlane.f32.xlu0 %v2605_v4 }
 0xb31   :  { %v2382_v40 = vsel %vm362_vm2, %v6670_v2, -inf }
 0xb34   :  { %v2586_v32 = vpop.f32.mrf.mxu2 }
 0xb35   :  { %v6673_v14 = vadd.f32 %v6667_v12, %v2586_v32 }
 0xb36   :  { %v2363_v20 = vpop.f32.mrf.mxu0 }
 0xb37   :  { %v2608_v23 = vsel %vm362_vm2, %v6673_v14, -inf  ;;  %v6685_v15 = vadd.f32 %v6682_v37, %v2363_v20 }
 0xb38   :  { %2383 = vmax.xlane.f32.xlu0 %v2382_v40  ;;  %2609 = vmax.xlane.f32.xlu2 %v2608_v23 }
 0xb39   :  { %v2385_v0 = vsel %vm362_vm2, %v6685_v15, -inf }
 0xb3c   :  { %v2589_v60 = vpop.f32.mrf.mxu2 }
 0xb3d   :  { %v6688_v6 = vadd.f32 %v6682_v37, %v2589_v60 }
 0xb3e   :  { %v2365_v35 = vpop.f32.mrf.mxu0 }
 0xb3f   :  { %v2611_v50 = vsel %vm362_vm2, %v6688_v6, -inf  ;;  %v6700_v46 = vadd.f32 %v6697_v5, %v2365_v35 }
 0xb40   :  { %2386 = vmax.xlane.f32.xlu0 %v2385_v0  ;;  %2612 = vmax.xlane.f32.xlu2 %v2611_v50 }
 0xb41   :  { %v2388_v8 = vsel %vm362_vm2, %v6700_v46, -inf }
 0xb44   :  { %v2591_v34 = vpop.f32.mrf.mxu2 }
 0xb45   :  { %v6703_v59 = vadd.f32 %v6697_v5, %v2591_v34 }
 0xb46   :  { %v2368_v1 = vpop.f32.mrf.mxu0 }
 0xb47   :  { %v2614_v41 = vsel %vm362_vm2, %v6703_v59, -inf  ;;  %v6715_v55 = vadd.f32 %v6712_v58, %v2368_v1 }
 0xb48   :  { %2615 = vmax.xlane.f32.xlu1 %v2614_v41  ;;  %2389 = vmax.xlane.f32.xlu2 %v2388_v8 }
 0xb49   :  { %v2391_v38 = vsel %vm362_vm2, %v6715_v55, -inf }
 0xb4d   :  { %v2594_v17 = vpop.f32.mrf.mxu2 }
 0xb4e   :  { %v2370_v48 = vpop.f32.mrf.mxu0  ;;  %v6730_v44 = vadd.f32 %v6712_v58, %v2594_v17 }
 0xb4f   :  { %v6723_v56 = vadd.f32 %v6720_v43, %v2370_v48 }
 0xb50   :  { %2392 = vmax.xlane.f32.xlu1 %v2391_v38  ;;  %v2617_v62 = vsel %vm362_vm2, %v6730_v44, -inf }
 0xb51   :  { %v2394_v16 = vsel %vm362_vm2, %v6723_v56, -inf }
 0xb52   :  { %2395 = vmax.xlane.f32.xlu0 %v2394_v16 }
 0xb55   :  { %v2596_v61 = vpop.f32.mrf.mxu2 }
 0xb56   :  { %v6733_v3 = vadd.f32 %v6720_v43, %v2596_v61  ;;  %v2793_v36 = vpop.f32.mrf.mxu0 }
 0xb57   :  { %v6736_v22 = vadd.f32 %v6622_v19, %v2793_v36 }
 0xb58   :  { %2618 = vmax.xlane.f32.xlu1 %v2617_v62  ;;  %v2620_v26 = vsel %vm362_vm2, %v6733_v3, -inf }
 0xb59   :  { %v2813_v47 = vsel %vm362_vm2, %v6736_v22, -inf }
 0xb5a   :  { %2621 = vmax.xlane.f32.xlu0 %v2620_v26  ;;  %2814 = vmax.xlane.f32.xlu2 %v2813_v47 }
 0xb5d   :  { %v3007_v30 = vpop.f32.mrf.mxu2 }
 0xb5e   :  { %v6745_v29 = vadd.f32 %v6622_v19, %v3007_v30  ;;  %v2795_v21 = vpop.f32.mrf.mxu0 }
 0xb5f   :  { %v6748_v25 = vadd.f32 %v6637_v13, %v2795_v21 }
 0xb60   :  { %v3027_v32 = vsel %vm362_vm2, %v6745_v29, -inf }
 0xb61   :  { %v2816_v4 = vsel %vm362_vm2, %v6748_v25, -inf }
 0xb62   :  { %2817 = vmax.xlane.f32.xlu2 %v2816_v4  ;;  %3028 = vmax.xlane.f32.xlu0 %v3027_v32 }
 0xb65   :  { %v3009_v20 = vpop.f32.mrf.mxu2 }
 0xb66   :  { %v6755_v40 = vadd.f32 %v6637_v13, %v3009_v20  ;;  %v2798_v23 = vpop.f32.mrf.mxu0 }
 0xb67   :  { %v6758_v19 = vadd.f32 %v6648_v45, %v2798_v23 }
 0xb68   :  { %v3030_v60 = vsel %vm362_vm2, %v6755_v40, -inf }
 0xb69   :  { %3031 = vmax.xlane.f32.xlu1 %v3030_v60  ;;  %v2819_v35 = vsel %vm362_vm2, %v6758_v19, -inf }
 0xb6a   :  { %2820 = vmax.xlane.f32.xlu0 %v2819_v35 }
 0xb6d   :  { %v3012_v0 = vpop.f32.mrf.mxu2 }
 0xb6e   :  { %v6765_v50 = vadd.f32 %v6648_v45, %v3012_v0  ;;  %v2800_v34 = vpop.f32.mrf.mxu0 }
 0xb6f   :  { %v6768_v13 = vadd.f32 %v6667_v12, %v2800_v34 }
 0xb70   :  { %v3033_v1 = vsel %vm362_vm2, %v6765_v50, -inf }
 0xb71   :  { %3034 = vmax.xlane.f32.xlu2 %v3033_v1  ;;  %v2822_v41 = vsel %vm362_vm2, %v6768_v13, -inf }
 0xb72   :  { %2823 = vmax.xlane.f32.xlu1 %v2822_v41 }
 0xb75   :  { %v3014_v8 = vpop.f32.mrf.mxu2 }
 0xb76   :  { %v6775_v17 = vadd.f32 %v6667_v12, %v3014_v8  ;;  %v2803_v48 = vpop.f32.mrf.mxu0 }
 0xb77   :  { %v6778_v45 = vadd.f32 %v6682_v37, %v2803_v48 }
 0xb78   :  { %v3036_v38 = vsel %vm362_vm2, %v6775_v17, -inf }
 0xb79   :  { %3037 = vmax.xlane.f32.xlu0 %v3036_v38  ;;  %v2825_v16 = vsel %vm362_vm2, %v6778_v45, -inf }
 0xb7a   :  { %2826 = vmax.xlane.f32.xlu2 %v2825_v16 }
 0xb7d   :  { %v3017_v61 = vpop.f32.mrf.mxu2 }
 0xb7e   :  { %v6785_v36 = vadd.f32 %v6682_v37, %v3017_v61  ;;  %v2805_v62 = vpop.f32.mrf.mxu0 }
 0xb7f   :  { %v6788_v12 = vadd.f32 %v6697_v5, %v2805_v62 }
 0xb80   :  { %v3039_v26 = vsel %vm362_vm2, %v6785_v36, -inf }
 0xb81   :  { %3040 = vmax.xlane.f32.xlu1 %v3039_v26  ;;  %v2828_v47 = vsel %vm362_vm2, %v6788_v12, -inf }
 0xb82   :  { %2829 = vmax.xlane.f32.xlu0 %v2828_v47 }
 0xb85   :  { %v3019_v30 = vpop.f32.mrf.mxu2 }
 0xb86   :  { %v6795_v21 = vadd.f32 %v6697_v5, %v3019_v30  ;;  %v2808_v4 = vpop.f32.mrf.mxu0 }
 0xb87   :  { %v6798_v37 = vadd.f32 %v6712_v58, %v2808_v4 }
 0xb88   :  { %v3042_v32 = vsel %vm362_vm2, %v6795_v21, -inf }
 0xb89   :  { %3043 = vmax.xlane.f32.xlu2 %v3042_v32  ;;  %v2831_v20 = vsel %vm362_vm2, %v6798_v37, -inf }
 0xb8a   :  { %2832 = vmax.xlane.f32.xlu0 %v2831_v20 }
 0xb8d   :  { %v3022_v23 = vpop.f32.mrf.mxu2  ;;  %v2375_v35 = vpop.xlane.xlu1 %2374 }
 0xb8e   :  { %v6805_v60 = vadd.f32 %v6712_v58, %v3022_v23  ;;  %v2397_v5 = vsub.f32 %v6625_v31, %v2375_v35  ;;  %v2810_v0 = vpop.f32.mrf.mxu0 }
 0xb8f   :  { %v6809_v34 = vadd.f32 %v6720_v43, %v2810_v0 }
 0xb90   :  { %v2405_v1 = vmul.f32 1.442695, %v2397_v5  ;;  %v3045_v8 = vsel %vm362_vm2, %v6805_v60, -inf }
 0xb91   :  { %v2834_v41 = vsel %vm362_vm2, %v6809_v34, -inf }
 0xb92   :  { %4796 = vpow2.f32 %v2405_v1  ;;  %2835 = vmax.xlane.f32.xlu1 %v2834_v41  ;;  %3046 = vmax.xlane.f32.xlu0 %v3045_v8 }
 0xb93   :  { %v2601_v48 = vpop.xlane.xlu2 %2600 }
 0xb94   :  { %v2623_v58 = vsub.f32 %v6630_v18, %v2601_v48 }
 0xb95   :  { %v3024_v38 = vpop.f32.mrf.mxu2 }
 0xb96   :  { %v6817_v31 = vadd.f32 %v6720_v43, %v3024_v38  ;;  %v2631_v16 = vmul.f32 1.442695, %v2623_v58 }
 0xb98   :  { %v6819_v61 = vpop.eup %4796  ;;  %4798 = vpow2.f32 %v2631_v16  ;;  %v3048_v62 = vsel %vm362_vm2, %v6817_v31, -inf }
 0xb99   :  { %v2421_v26 = vsel %vm362_vm2, %v6819_v61, 0.0 }
 0xb9a   :  { %3049 = vmax.xlane.f32.xlu1 %v3048_v62  ;;  %2422 = vadd.xlane.f32.xlu0 %v2421_v26 }
 0xb9b   :  { %v2604_v47 = vpop.xlane.xlu0 %2603  ;;  %v2378_v30 = vpop.xlane.xlu2 %2377 }
 0xb9c   :  { %v2624_v18 = vsub.f32 %v6643_v51, %v2604_v47  ;;  %v2398_v4 = vsub.f32 %v6640_v24, %v2378_v30 }
 0xb9d   :  { %v2381_v43 = vpop.xlane.xlu1 %2380 }
 0xb9e   :  { %v6827_v32 = vpop.eup %4798  ;;  %v2633_v20 = vmul.f32 1.442695, %v2624_v18  ;;  %v2407_v23 = vmul.f32 1.442695, %v2398_v4  ;;  %v2399_v35 = vsub.f32 %v6651_v11, %v2381_v43 }
 0xb9f   :  { %v2647_v5 = vsel %vm362_vm2, %v6827_v32, 0.0 }
 0xba0   :  { %4800 = vpow2.f32 %v2633_v20  ;;  %v2409_v0 = vmul.f32 1.442695, %v2399_v35 }
 0xba1   :  { %4802 = vpow2.f32 %v2407_v23 }
 0xba2   :  { %2648 = vadd.xlane.f32.xlu1 %v2647_v5  ;;  %4804 = vpow2.f32 %v2409_v0 }
 0xba3   :  { %v2607_v1 = vpop.xlane.xlu0 %2606 }
 0xba4   :  { %v2625_v41 = vsub.f32 %v6660_v49, %v2607_v1 }
 0xba6   :  { %v6833_v51 = vpop.eup %4800  ;;  %v2635_v24 = vmul.f32 1.442695, %v2625_v41 }
 0xba7   :  { %v6835_v8 = vpop.eup %4802  ;;  %v2650_v48 = vsel %vm362_vm2, %v6833_v51, 0.0 }
 0xba8   :  { %4806 = vpow2.f32 %v2635_v24  ;;  %2651 = vadd.xlane.f32.xlu0 %v2650_v48  ;;  %v2424_v11 = vsel %vm362_vm2, %v6835_v8, 0.0  ;;  %v6843_v16 = vpop.eup %4804 }
 0xba9   :  { %2425 = vadd.xlane.f32.xlu2 %v2424_v11  ;;  %v2427_v47 = vsel %vm362_vm2, %v6843_v16, 0.0 }
 0xbab   :  { %v6841_v58 = vpop.xlane.xlu0 %2383  ;;  %v2610_v38 = vpop.xlane.xlu2 %2609 }
 0xbac   :  { %v2626_v49 = vsub.f32 %v6673_v14, %v2610_v38 }
 0xbae   :  { %v6846_v62 = vpop.eup %4806  ;;  %v2637_v26 = vmul.f32 1.442695, %v2626_v49 }
 0xbaf   :  { %v2653_v30 = vsel %vm362_vm2, %v6846_v62, 0.0 }
 0xbb0   :  { %2428 = vadd.xlane.f32.xlu0 %v2427_v47  ;;  %4808 = vpow2.f32 %v2637_v26 }
 0xbb1   :  { %2654 = vadd.xlane.f32.xlu2 %v2653_v30 }
 0xbb3   :  { %v2387_v18 = vpop.xlane.xlu0 %2386  ;;  %v2613_v23 = vpop.xlane.xlu2 %2612 }
 0xbb4   :  { %v2401_v4 = vsub.f32 %v6685_v15, %v2387_v18 }
 0xbb6   :  { %v2413_v43 = vmul.f32 1.442695, %v2401_v4  ;;  %v6853_v20 = vpop.eup %4808 }
 0xbb7   :  { %v2656_v14 = vsel %vm362_vm2, %v6853_v20, 0.0 }
 0xbb8   :  { %4810 = vpow2.f32 %v2413_v43 }
 0xbb9   :  { %2657 = vadd.xlane.f32.xlu2 %v2656_v14 }
 0xbbb   :  { %v2616_v35 = vpop.xlane.xlu1 %2615  ;;  %2911 = vrot.lane.b32.xlu1 %v6514_v52, %s5207_s20  ;;  %v2390_v41 = vpop.xlane.xlu2 %2389 }
 0xbbc   :  { %v2628_v5 = vsub.f32 %v6703_v59, %v2616_v35  ;;  %v2402_v43 = vsub.f32 %v6700_v46, %v2390_v41 }
 0xbbe   :  { %v6860_v0 = vpop.eup %4810  ;;  %v2641_v1 = vmul.f32 1.442695, %v2628_v5  ;;  %v2415_v14 = vmul.f32 1.442695, %v2402_v43 }
 0xbbf   :  { %v2433_v15 = vsel %vm362_vm2, %v6860_v0, 0.0 }
 0xbc0   :  { %4812 = vpow2.f32 %v2641_v1 }
 0xbc1   :  { %2434 = vadd.xlane.f32.xlu2 %v2433_v15 }
 0xbc3   :  { %3121 = vrot.lane.b32.xlu1 %v6526_v10, %s5208_s22  ;;  %v2393_v18 = vpop.xlane.xlu1 %2392 }
 0xbc4   :  { %3123 = vrot.lane.b32.xlu0 %v6523_v39, %s5208_s22 }
 0xbc5   :  { %v2396_v24 = vpop.xlane.xlu0 %2395 }
 0xbc6   :  { %v6868_v48 = vpop.eup %4812  ;;  %v2404_v52 = vsub.f32 %v6723_v56, %v2396_v24 }
 0xbc7   :  { %v2662_v59 = vsel %vm362_vm2, %v6868_v48, 0.0 }
 0xbc8   :  { %v2419_v11 = vmul.f32 1.442695, %v2404_v52  ;;  %v2400_v52 = vsub.f32 %v6670_v2, %v6841_v58 }
 0xbc9   :  { %2663 = vadd.xlane.f32.xlu2 %v2662_v59 }
 0xbca   :  { %4814 = vpow2.f32 %v2419_v11  ;;  %v2411_v41 = vmul.f32 1.442695, %v2400_v52 }
 0xbcb   :  { %2909 = vrot.lane.b32.xlu1 %v6523_v39, %s5207_s20  ;;  %v2619_v35 = vpop.xlane.xlu1 %2618 }
 0xbcc   :  { %v2629_v5 = vsub.f32 %v6730_v44, %v2619_v35 }
 0xbcd   :  { %v2815_v38 = vpop.xlane.xlu2 %2814  ;;  %v6878_v30 = vpop.xlane.xlu0 %2621 }
 0xbce   :  { %v2837_v49 = vsub.f32 %v6736_v22, %v2815_v38  ;;  %v2643_v15 = vmul.f32 1.442695, %v2629_v5 }
 0xbd0   :  { %v6876_v26 = vpop.eup %4814  ;;  %v2845_v47 = vmul.f32 1.442695, %v2837_v49 }
 0xbd1   :  { %v2442_v56 = vsel %vm362_vm2, %v6876_v26, 0.0 }
 0xbd2   :  { %2443 = vadd.xlane.f32.xlu2 %v2442_v56  ;;  %4816 = vpow2.f32 %v2845_v47  ;;  %v2627_v56 = vsub.f32 %v6688_v6, %v2613_v23  ;;  %v2403_v6 = vsub.f32 %v6715_v55, %v2393_v18 }
 0xbd3   :  { %3119 = vrot.lane.b32.xlu1 %v6482_v53, %s5208_s22  ;;  %4818 = vpow2.f32 %v2415_v14 }
 0xbd4   :  { %4820 = vpow2.f32 %v2643_v15  ;;  %v2417_v52 = vmul.f32 1.442695, %v2403_v6 }
 0xbd5   :  { %v3029_v22 = vpop.xlane.xlu0 %3028  ;;  %v2818_v44 = vpop.xlane.xlu2 %2817  ;;  %4822 = vpow2.f32 %v2411_v41 }
 0xbd6   :  { %v3051_v59 = vsub.f32 %v6745_v29, %v3029_v22  ;;  %v2838_v2 = vsub.f32 %v6748_v25, %v2818_v44  ;;  %v2639_v22 = vmul.f32 1.442695, %v2627_v56 }
 0xbd8   :  { %v6884_v4 = vpop.eup %4816  ;;  %v3059_v49 = vmul.f32 1.442695, %v3051_v59  ;;  %v2847_v43 = vmul.f32 1.442695, %v2838_v2 }
 0xbd9   :  { %v2861_v39 = vsel %vm362_vm2, %v6884_v4, 0.0  ;;  %v6890_v24 = vpop.eup %4818 }
 0xbda   :  { %2862 = vadd.xlane.f32.xlu2 %v2861_v39  ;;  %v2436_v46 = vsel %vm362_vm2, %v6890_v24, 0.0  ;;  %v6899_v47 = vpop.eup %4820  ;;  %4824 = vpow2.f32 %v3059_v49 }
 0xbdb   :  { %v2665_v39 = vsel %vm362_vm2, %v6899_v47, 0.0  ;;  %v6909_v14 = vpop.eup %4822  ;;  %4826 = vpow2.f32 %v2639_v22 }
 0xbdc   :  { %v6895_v11 = vpop.xlane.xlu1 %3031  ;;  %4828 = vpow2.f32 %v2847_v43  ;;  %v2430_v25 = vsel %vm362_vm2, %v6909_v14, 0.0 }
 0xbdd   :  { %v2821_v1 = vpop.xlane.xlu0 %2820  ;;  %4830 = vpow2.f32 %v2417_v52 }
 0xbe0   :  { %v6911_v35 = vpop.eup %4824 }
 0xbe1   :  { %v3075_v15 = vsel %vm362_vm2, %v6911_v35, 0.0  ;;  %v6923_v41 = vpop.eup %4826 }
 0xbe2   :  { %v6925_v55 = vpop.eup %4828 }
 0xbe3   :  { %v2864_v56 = vsel %vm362_vm2, %v6925_v55, 0.0  ;;  %v6934_v22 = vpop.eup %4830 }
 0xbe4   :  { %v6917_v23 = vpop.xlane.xlu2 %3034  ;;  %v2439_v6 = vsel %vm362_vm2, %v6934_v22, 0.0 }
 0xbe5   :  { %v2824_v29 = vpop.xlane.xlu1 %2823 }
 0xbec   :  { %v3038_v38 = vpop.xlane.xlu0 %3037 }
 0xbed   :  { %v3054_v18 = vsub.f32 %v6775_v17, %v3038_v38  ;;  %v2827_v49 = vpop.xlane.xlu2 %2826  ;;  %v2840_v17 = vsub.f32 %v6768_v13, %v2824_v29 }
 0xbee   :  { %2437 = vadd.xlane.f32.xlu0 %v2436_v46 }
 0xbef   :  { %v2851_v52 = vmul.f32 1.442695, %v2840_v17 }
 0xbf2   :  { %2907 = vrot.lane.b32.xlu2 %v6526_v10, %s5207_s20  ;;  %v2839_v10 = vsub.f32 %v6758_v19, %v2821_v1  ;;  %v2630_v19 = vsub.f32 %v6733_v3, %v6878_v30  ;;  %v2659_v1 = vsel %vm362_vm2, %v6923_v41, 0.0  ;;  %v3052_v30 = vsub.f32 %v6755_v40, %v6895_v11 }
 0xbf4   :  { %v3041_v5 = vpop.xlane.xlu1 %3040  ;;  %v2849_v46 = vmul.f32 1.442695, %v2839_v10  ;;  %v2645_v2 = vmul.f32 1.442695, %v2630_v19  ;;  %v3061_v13 = vmul.f32 1.442695, %v3052_v30  ;;  %v2841_v30 = vsub.f32 %v6778_v45, %v2827_v49 }
 0xbf5   :  { %v6905_v58 = vpop.xlane.xlu0 %2829  ;;  %v3055_v38 = vsub.f32 %v6785_v36, %v3041_v5 }
 0xbf6   :  { %2666 = vadd.xlane.f32.xlu0 %v2665_v39  ;;  %4832 = vpow2.f32 %v2849_v46  ;;  %v3065_v39 = vmul.f32 1.442695, %v3054_v18 }
 0xbf7   :  { %4834 = vpow2.f32 %v2645_v2  ;;  %v3067_v29 = vmul.f32 1.442695, %v3055_v38 }
 0xbf8   :  { %4836 = vpow2.f32 %v3065_v39 }
 0xbf9   :  { %4838 = vpow2.f32 %v2851_v52 }
 0xbfa   :  { %4840 = vpow2.f32 %v3061_v13 }
 0xbfb   :  { %4842 = vpow2.f32 %v3067_v29  ;;  %v2853_v29 = vmul.f32 1.442695, %v2841_v30 }
 0xbfc   :  { %v6938_v3 = vpop.eup %4832  ;;  %v3044_v10 = vpop.xlane.xlu2 %3043 }
 0xbfd   :  { %2431 = vadd.xlane.f32.xlu1 %v2430_v25  ;;  %v6921_v59 = vpop.xlane.xlu0 %2832  ;;  %v3056_v46 = vsub.f32 %v6795_v21, %v3044_v10  ;;  %v6951_v40 = vpop.eup %4834 }
 0xbfe   :  { %3076 = vadd.xlane.f32.xlu0 %v3075_v15  ;;  %v2867_v15 = vsel %vm362_vm2, %v6938_v3, 0.0  ;;  %v6954_v11 = vpop.eup %4836  ;;  %v2668_v18 = vsel %vm362_vm2, %v6951_v40, 0.0 }
 0xbff   :  { %v3069_v19 = vmul.f32 1.442695, %v3056_v46  ;;  %v6960_v2 = vpop.eup %4838 }
 0xc00   :  { %v2870_v17 = vsel %vm362_vm2, %v6960_v2, 0.0 }
 0xc01   :  { %4844 = vpow2.f32 %v3069_v19 }
 0xc05   :  { %v2836_v44 = vpop.xlane.xlu1 %2835  ;;  %2660 = vadd.xlane.f32.xlu1 %v2659_v1  ;;  %v6936_v43 = vpop.xlane.xlu0 %3046 }
 0xc06   :  { %2865 = vadd.xlane.f32.xlu0 %v2864_v56  ;;  %v2844_v36 = vsub.f32 %v6809_v34, %v2836_v44  ;;  %v3084_v56 = vsel %vm362_vm2, %v6954_v11, 0.0  ;;  %v6962_v34 = vpop.eup %4840 }
 0xc07   :  { %v6964_v44 = vpop.eup %4842 }
 0xc08   :  { %v2859_v1 = vmul.f32 1.442695, %v2844_v36  ;;  %v3087_v10 = vsel %vm362_vm2, %v6964_v44, 0.0 }
 0xc0a   :  { %4846 = vpow2.f32 %v2859_v1 }
 0xc0d   :  { %v6946_v25 = vpop.xlane.xlu1 %3049  ;;  %2440 = vadd.xlane.f32.xlu1 %v2439_v6  ;;  %v2423_v5 = vpop.xlane.xlu0 %2422  ;;  %v3078_v6 = vsel %vm362_vm2, %v6962_v34, 0.0 }
 0xc0e   :  { %2868 = vadd.xlane.f32.xlu0 %v2867_v15  ;;  %v6973_v15 = vpop.eup %4844 }
 0xc10   :  { %v6975_v52 = vpop.eup %4846 }
 0xc11   :  { %v2882_v19 = vsel %vm362_vm2, %v6975_v52, 0.0 }
 0xc15   :  { %2669 = vadd.xlane.f32.xlu1 %v2668_v18  ;;  %v2649_v21 = vpop.xlane.xlu1 %2648  ;;  %v3057_v18 = vsub.f32 %v6805_v60, %v6936_v43  ;;  %v2843_v60 = vsub.f32 %v6798_v37, %v6921_v59 }
 0xc16   :  { %3085 = vadd.xlane.f32.xlu0 %v3084_v56  ;;  %4848 = vrcp.f32 %v2649_v21 }
 0xc17   :  { %4850 = vrcp.f32 %v2423_v5 }
 0xc1b   :  { %v2652_v39 = vpop.xlane.xlu0 %2651  ;;  %2871 = vadd.xlane.f32.xlu2 %v2870_v17  ;;  %v3090_v17 = vsel %vm362_vm2, %v6973_v15, 0.0 }
 0xc1c   :  { %4852 = vrcp.f32 %v2652_v39  ;;  %v2426_v38 = vpop.xlane.xlu2 %2425  ;;  %v4849_v13 = vpop.eup %4848 }
 0xc1d   :  { %4854 = vrcp.f32 %v2426_v38  ;;  %3079 = vadd.xlane.f32.xlu1 %v3078_v6  ;;  %v4851_v46 = vpop.eup %4850  ;;  %v2679_v36 = vmul.f32 %v4849_v13, %v6827_v32  ;;  %v2857_v6 = vmul.f32 1.442695, %v2843_v60 }
 0xc1e   :  { %3088 = vadd.xlane.f32.xlu0 %v3087_v10  ;;  %4856 = vpow2.f32 %v2853_v29  ;;  %v2453_v1 = vmul.f32 %v4851_v46, %v6819_v61 }
 0xc22   :  { %v4853_v45 = vpop.eup %4852 }
 0xc23   :  { %v4855_v49 = vpop.eup %4854  ;;  %v2680_v5 = vmul.f32 %v4853_v45, %v6833_v51  ;;  %2883 = vadd.xlane.f32.xlu2 %v2882_v19  ;;  %v3071_v51 = vmul.f32 1.442695, %v3057_v18  ;;  %v2429_v38 = vpop.xlane.xlu0 %2428 }
 0xc24   :  { %v2454_v56 = vmul.f32 %v4855_v49, %v6835_v8  ;;  %v2655_v21 = vpop.xlane.xlu2 %2654  ;;  %v6989_v30 = vpop.eup %4856 }
 0xc25   :  { %v2687_v39 = vpack.c.bf16 %v2680_v5, %v2679_v36  ;;  %4858 = vrcp.f32 %v2655_v21  ;;  %v2873_v43 = vsel %vm362_vm2, %v6989_v30, 0.0 }
 0xc26   :  { %v2461_v32 = vpack.c.bf16 %v2454_v56, %v2453_v1  ;;  %3091 = vadd.xlane.f32.xlu0 %v3090_v17  ;;  %4860 = vpow2.f32 %v3071_v51  ;;  %v2842_v17 = vsub.f32 %v6788_v12, %v6905_v58 }
 0xc27   :  { %4291 = vmatmul.msk.bf16.vlgmr.msrb.gmra.mxu3 %vm362_vm2, %v2687_v39 }
 0xc28   :  { %4283 = vmatmul.msk.bf16.vlgmr.msra.gmra.mxu1 %vm362_vm2, %v2461_v32  ;;  %v2855_v51 = vmul.f32 1.442695, %v2842_v17 }
 0xc2b   :  { %v4859_v10 = vpop.eup %4858 }
 0xc2c   :  { %v2658_v61 = vpop.xlane.xlu2 %2657  ;;  %v6995_v13 = vpop.eup %4860  ;;  %v2681_v46 = vmul.f32 %v4859_v10, %v6846_v62 }
 0xc2d   :  { %4862 = vrcp.f32 %v2658_v61  ;;  %v2912_v8 = vpop.permute.xlu1 %2911  ;;  %v3093_v49 = vsel %vm362_vm2, %v6995_v13, 0.0  ;;  %v3058_v61 = vsub.f32 %v6817_v31, %v6946_v25 }
 0xc2e   :  { %2933 = vmatpush.bf16.msrb.mxu1 %v2912_v8  ;;  %2874 = vadd.xlane.f32.xlu0 %v2873_v43  ;;  %4864 = vpow2.f32 %v2857_v6 }
 0xc33   :  { %v4863_v29 = vpop.eup %4862 }
 0xc34   :  { %v2682_v37 = vmul.f32 %v4863_v29, %v6853_v20  ;;  %v2435_v59 = vpop.xlane.xlu2 %2434  ;;  %v7004_v19 = vpop.eup %4864 }
 0xc35   :  { %v3122_v45 = vpop.permute.xlu1 %3121  ;;  %v2879_v20 = vsel %vm362_vm2, %v7004_v19, 0.0 }
 0xc36   :  { %v3124_v36 = vpop.permute.xlu0 %3123  ;;  %2905 = vrot.lane.b32.xlu1 %v6482_v53, %s5207_s20  ;;  %3094 = vadd.xlane.f32.xlu0 %v3093_v49  ;;  %v2688_v5 = vpack.c.bf16 %v2682_v37, %v2681_v46  ;;  %v3053_v53 = vsub.f32 %v6765_v50, %v6917_v23  ;;  %v3073_v50 = vmul.f32 1.442695, %v3058_v61 }
 0xc37   :  { %3148 = vmatpush.bf16.msra.mxu3 %v3124_v36 }
 0xc38   :  { %4292 = vmatmul.msk.bf16.gmra.mxu3 %vm362_vm2, %v2688_v5  ;;  %v3063_v39 = vmul.f32 1.442695, %v3053_v53 }
 0xc3a   :  { %4866 = vpow2.f32 %v3063_v39 }
 0xc3b   :  { %3149 = vmatpush.bf16.msra.mxu3 %v3122_v45  ;;  %4868 = vpow2.f32 %v2855_v51 }
 0xc3c   :  { %v2664_v62 = vpop.xlane.xlu2 %2663  ;;  %4870 = vpow2.f32 %v3073_v50 }
 0xc3d   :  { %v2910_v18 = vpop.permute.xlu1 %2909  ;;  %4872 = vrcp.f32 %v2429_v38 }
 0xc3e   :  { %2934 = vmatpush.bf16.msrb.mxu1 %v2910_v18  ;;  %2880 = vadd.xlane.f32.xlu0 %v2879_v20 }
 0xc40   :  { %v7014_v60 = vpop.eup %4866 }
 0xc41   :  { %v3081_v8 = vsel %vm362_vm2, %v7014_v60, 0.0  ;;  %v7020_v23 = vpop.eup %4868 }
 0xc42   :  { %v2876_v12 = vsel %vm362_vm2, %v7020_v23, 0.0  ;;  %v7024_v58 = vpop.eup %4870 }
 0xc43   :  { %v3096_v43 = vsel %vm362_vm2, %v7024_v58, 0.0  ;;  %v4873_v31 = vpop.eup %4872 }
 0xc44   :  { %v2455_v10 = vmul.f32 %v4873_v31, %v6843_v16 }
 0xc45   :  { %v3120_v1 = vpop.permute.xlu1 %3119  ;;  %v2444_v56 = vpop.xlane.xlu2 %2443 }
 0xc46   :  { %3150 = vmatpush.bf16.msra.mxu3 %v3120_v1 }
 0xc4d   :  { %v7010_v21 = vpop.xlane.xlu2 %2862 }
 0xc55   :  { %v2908_v32 = vpop.permute.xlu2 %2907 }
 0xc56   :  { %2935 = vmatpush.bf16.msrb.mxu1 %v2908_v32 }
 0xc60   :  { %3082 = vadd.xlane.f32.xlu1 %v3081_v8 }
 0xc61   :  { %v2438_v37 = vpop.xlane.xlu0 %2437 }
 0xc68   :  { %2877 = vadd.xlane.f32.xlu1 %v2876_v12 }
 0xc69   :  { %v2667_v16 = vpop.xlane.xlu0 %2666 }
 0xc70   :  { %v2432_v6 = vpop.xlane.xlu1 %2431  ;;  %3097 = vadd.xlane.f32.xlu1 %v3096_v43 }
 0xc71   :  { %4874 = vrcp.f32 %v2432_v6  ;;  %v3077_v32 = vpop.xlane.xlu0 %3076 }
 0xc72   :  { %4876 = vrcp.f32 %v2664_v62 }
 0xc77   :  { %v4875_v25 = vpop.eup %4874 }
 0xc78   :  { %v2456_v29 = vmul.f32 %v4875_v25, %v6909_v14  ;;  %v2661_v46 = vpop.xlane.xlu1 %2660  ;;  %v4877_v38 = vpop.eup %4876 }
 0xc79   :  { %4878 = vrcp.f32 %v2661_v46  ;;  %v2684_v36 = vmul.f32 %v4877_v38, %v6868_v48  ;;  %v2866_v43 = vpop.xlane.xlu0 %2865 }
 0xc7a   :  { %v2462_v45 = vpack.c.bf16 %v2456_v29, %v2455_v10  ;;  %4880 = vrcp.f32 %v2438_v37 }
 0xc7b   :  { %4882 = vrcp.f32 %v2435_v59 }
 0xc7c   :  { %4284 = vmatmul.msk.bf16.gmra.mxu1 %vm362_vm2, %v2462_v45  ;;  %4884 = vrcp.f32 %v2667_v16 }
 0xc7f   :  { %v4879_v49 = vpop.eup %4878 }
 0xc80   :  { %v2683_v5 = vmul.f32 %v4879_v49, %v6923_v41  ;;  %v2441_v18 = vpop.xlane.xlu1 %2440  ;;  %v4881_v20 = vpop.eup %4880 }
 0xc81   :  { %v4883_v14 = vpop.eup %4882  ;;  %v2458_v1 = vmul.f32 %v4881_v20, %v6890_v24  ;;  %v2869_v37 = vpop.xlane.xlu0 %2868 }
 0xc82   :  { %v2689_v62 = vpack.c.bf16 %v2684_v36, %v2683_v5  ;;  %v2457_v53 = vmul.f32 %v4883_v14, %v6860_v0  ;;  %v4885_v48 = vpop.eup %4884 }
 0xc83   :  { %v2685_v59 = vmul.f32 %v4885_v48, %v6899_v47 }
 0xc84   :  { %4293 = vmatmul.msk.bf16.gmra.mxu3 %vm362_vm2, %v2689_v62  ;;  %v2463_v17 = vpack.c.bf16 %v2458_v1, %v2457_v53 }
 0xc88   :  { %v2670_v39 = vpop.xlane.xlu1 %2669 }
 0xc89   :  { %4886 = vrcp.f32 %v2670_v39 }
 0xc8a   :  { %4888 = vrcp.f32 %v2441_v18 }
 0xc8b   :  { %4890 = vrcp.f32 %v2444_v56 }
 0xc8c   :  { %4285 = vmatmul.msk.bf16.gmra.mxu1 %vm362_vm2, %v2463_v17 }
 0xc8e   :  { %v2872_v38 = vpop.xlane.xlu2 %2871 }
 0xc8f   :  { %v4887_v41 = vpop.eup %4886 }
 0xc90   :  { %v2686_v51 = vmul.f32 %v4887_v41, %v6951_v40  ;;  %v3080_v61 = vpop.xlane.xlu1 %3079  ;;  %v4889_v24 = vpop.eup %4888 }
 0xc91   :  { %v4891_v0 = vpop.eup %4890  ;;  %4892 = vrcp.f32 %v3080_v61  ;;  %v2459_v50 = vmul.f32 %v4889_v24, %v6934_v22 }
 0xc92   :  { %v2690_v8 = vpack.c.bf16 %v2686_v51, %v2685_v59  ;;  %4894 = vrcp.f32 %v3077_v32  ;;  %v2460_v12 = vmul.f32 %v4891_v0, %v6876_v26 }
 0xc93   :  { %4896 = vrcp.f32 %v2866_v43 }
 0xc94   :  { %4294 = vmatmul.msk.bf16.gmra.mxu3 %vm362_vm2, %v2690_v8  ;;  %v2464_v6 = vpack.c.bf16 %v2460_v12, %v2459_v50  ;;  %4898 = vrcp.f32 %v7010_v21  ;;  %v3086_v21 = vpop.xlane.xlu0 %3085 }
 0xc95   :  { %4900 = vrcp.f32 %v2872_v38 }
 0xc96   :  { %4902 = vrcp.f32 %v2869_v37 }
 0xc97   :  { %v4893_v56 = vpop.eup %4892  ;;  %4904 = vrcp.f32 %v3086_v21 }
 0xc98   :  { %v4895_v47 = vpop.eup %4894  ;;  %v3108_v40 = vmul.f32 %v4893_v56, %v6962_v34 }
 0xc99   :  { %v3107_v31 = vmul.f32 %v4895_v47, %v6911_v35  ;;  %v4897_v10 = vpop.eup %4896 }
 0xc9a   :  { %v4899_v22 = vpop.eup %4898  ;;  %v2894_v26 = vmul.f32 %v4897_v10, %v6925_v55 }
 0xc9b   :  { %v3115_v25 = vpack.c.bf16 %v3108_v40, %v3107_v31  ;;  %v2893_v29 = vmul.f32 %v4899_v22, %v6884_v4  ;;  %v4901_v34 = vpop.eup %4900 }
 0xc9c   :  { %4286 = vmatmul.msk.bf16.gmra.mxu1 %vm362_vm2, %v2464_v6  ;;  %v4903_v5 = vpop.eup %4902  ;;  %v2896_v55 = vmul.f32 %v4901_v34, %v6960_v2  ;;  %v3089_v62 = vpop.xlane.xlu0 %3088 }
 0xc9d   :  { %v2901_v45 = vpack.c.bf16 %v2894_v26, %v2893_v29  ;;  %v2895_v4 = vmul.f32 %v4903_v5, %v6938_v3  ;;  %v4905_v1 = vpop.eup %4904 }
 0xc9e   :  { %v3110_v39 = vmul.f32 %v4905_v1, %v6954_v11  ;;  %v2884_v11 = vpop.xlane.xlu2 %2883 }
 0xc9f   :  { %v2902_v18 = vpack.c.bf16 %v2896_v55, %v2895_v4 }
 0xca4   :  { %4307 = vmatmul.msk.bf16.vlgmr.msra.gmra.mxu3 %vm362_vm2, %v3115_v25  ;;  %v3092_v20 = vpop.xlane.xlu0 %3091 }
 0xca5   :  { %v7059_v0 = vpop.f32.mrf.mxu1 }
 0xca8   :  { %v2906_v46 = vpop.permute.xlu1 %2905 }
 0xca9   :  { %2936 = vmatpush.bf16.msrb.mxu1 %v2906_v46 }
 0xcaa   :  { %v2724_v49 = vpop.f32.mrf.mxu3 }
 0xcac   :  { %4299 = vmatmul.msk.bf16.vlgmr.msrb.gmra.mxu1 %vm362_vm2, %v2901_v45  ;;  %v2875_v16 = vpop.xlane.xlu0 %2874 }
 0xcad   :  { %v7065_v56 = vpop.f32.mrf.mxu1 }
 0xcb2   :  { %v2726_v35 = vpop.f32.mrf.mxu3 }
 0xcb3   :  { %v4558_v36 = vpack.i.bf16 %v2726_v35, %v2724_v49 }
 0xcb4   :  { %v3095_v17 = vpop.xlane.xlu0 %3094 }
 0xcb5   :  { %4559 = vrot.lane.b32.xlu1 %v4558_v36, %s5194_s27 }
 0xcbb   :  { %v2729_v31 = vpop.f32.mrf.mxu3 }
 0xcbc   :  { %4300 = vmatmul.msk.bf16.gmra.mxu1 %vm362_vm2, %v2902_v18  ;;  %v2881_v61 = vpop.xlane.xlu0 %2880 }
 0xcc3   :  { %v2731_v46 = vpop.f32.mrf.mxu3 }
 0xcd3   :  { %v3083_v14 = vpop.xlane.xlu1 %3082 }
 0xcd4   :  { %4906 = vrcp.f32 %v3083_v14 }
 0xcd5   :  { %4908 = vrcp.f32 %v2875_v16 }
 0xcda   :  { %v4907_v53 = vpop.eup %4906 }
 0xcdb   :  { %v3109_v48 = vmul.f32 %v4907_v53, %v7014_v60  ;;  %v2878_v2 = vpop.xlane.xlu1 %2877  ;;  %v4909_v41 = vpop.eup %4908 }
 0xcdc   :  { %4910 = vrcp.f32 %v2878_v2  ;;  %v2897_v32 = vmul.f32 %v4909_v41, %v6989_v30  ;;  %v4457_v41 = vld [vmem:[#allocation6 + $0x38] sm:$0xff] }
 0xcdd   :  { %v3116_v3 = vpack.c.bf16 %v3110_v39, %v3109_v48  ;;  %4912 = vrcp.f32 %v3092_v20  ;;  %3350 = vmatpush.bf16.msra.mxu0 %v4457_v41 }
 0xcde   :  { %4914 = vrcp.f32 %v3089_v62  ;;  %v4573_v62 = vpack.i.bf16 %v2731_v46, %v2729_v31 }
 0xcdf   :  { %4308 = vmatmul.msk.bf16.gmra.mxu3 %vm362_vm2, %v3116_v3  ;;  %4916 = vrcp.f32 %v2881_v61 }
 0xce0   :  { %4918 = vrcp.f32 %v2884_v11 }
 0xce2   :  { %v4911_v59 = vpop.eup %4910 }
 0xce3   :  { %v2898_v51 = vmul.f32 %v4911_v59, %v7020_v23  ;;  %v4913_v24 = vpop.eup %4912  ;;  %v3098_v43 = vpop.xlane.xlu1 %3097  ;;  %v4456_v59 = vld [vmem:[#allocation6 + $0x30] sm:$0xff] }
 0xce4   :  { %v4915_v60 = vpop.eup %4914  ;;  %v3112_v50 = vmul.f32 %v4913_v24, %v6973_v15  ;;  %4920 = vrcp.f32 %v3098_v43  ;;  %3351 = vmatpush.bf16.msra.mxu0 %v4456_v59 }
 0xce5   :  { %v2903_v8 = vpack.c.bf16 %v2898_v51, %v2897_v32  ;;  %v3111_v12 = vmul.f32 %v4915_v60, %v6964_v44  ;;  %v4917_v30 = vpop.eup %4916  ;;  %4922 = vrcp.f32 %v3095_v17  ;;  %v4455_v51 = vld [vmem:[#allocation6 + $0x28] sm:$0xff] }
 0xce6   :  { %v4919_v23 = vpop.eup %4918  ;;  %v2899_v47 = vmul.f32 %v4917_v30, %v7004_v19 }
 0xce7   :  { %4301 = vmatmul.msk.bf16.gmra.mxu1 %vm362_vm2, %v2903_v8  ;;  %v3117_v6 = vpack.c.bf16 %v3112_v50, %v3111_v12  ;;  %v2900_v40 = vmul.f32 %v4919_v23, %v6975_v52  ;;  %v4454_v12 = vld [vmem:[#allocation6 + $0x20] sm:$0xff] }
 0xce8   :  { %3352 = vmatpush.bf16.msra.mxu0 %v4455_v51 }
 0xce9   :  { %v2904_v25 = vpack.c.bf16 %v2900_v40, %v2899_v47 }
 0xcea   :  { %v4921_v15 = vpop.eup %4920 }
 0xceb   :  { %v4923_v44 = vpop.eup %4922  ;;  %v3114_v10 = vmul.f32 %v4921_v15, %v7024_v58 }
 0xcec   :  { %v3113_v26 = vmul.f32 %v4923_v44, %v6995_v13  ;;  %3353 = vmatpush.bf16.msra.mxu0 %v4454_v12 }
 0xcee   :  { %v3118_v29 = vpack.c.bf16 %v3114_v10, %v3113_v26 }
 0xcef   :  { %4309 = vmatmul.msk.bf16.gmra.mxu3 %vm362_vm2, %v3117_v6 }
 0xcf7   :  { %4302 = vmatmul.msk.bf16.gmra.mxu1 %vm362_vm2, %v2904_v25 }
 0xcf9   :  { %v7071_v22 = vpop.f32.mrf.mxu1 }
 0xcff   :  { %4310 = vmatmul.msk.bf16.gmra.mxu3 %vm362_vm2, %v3118_v29 }
 0xd01   :  { %v7075_v19 = vpop.f32.mrf.mxu1 }
 0xd07   :  { %v2734_v37 = vpop.f32.mrf.mxu3 }
 0xd09   :  { %v7077_v52 = vpop.f32.mrf.mxu1 }
 0xd0f   :  { %v2736_v45 = vpop.f32.mrf.mxu3 }
 0xd10   :  { %v4588_v16 = vpack.i.bf16 %v2736_v45, %v2734_v37 }
 0xd11   :  { %v7079_v38 = vpop.f32.mrf.mxu1 }
 0xd17   :  { %v2739_v49 = vpop.f32.mrf.mxu3 }
 0xd19   :  { %v7081_v35 = vpop.f32.mrf.mxu1 }
 0xd1f   :  { %v2741_v58 = vpop.f32.mrf.mxu3 }
 0xd20   :  { %v4603_v1 = vpack.i.bf16 %v2741_v58, %v2739_v49 }
 0xd21   :  { %v7083_v34 = vpop.f32.mrf.mxu1 }
 0xd27   :  { %v3152_v21 = vpop.f32.mrf.mxu3  ;;  %v4560_v30 = vpop.permute.xlu1 %4559 }
 0xd28   :  { %v4562_v23 = vunpack.i.h.bf16 %v4560_v30  ;;  %v4561_v47 = vunpack.i.l.bf16 %v4560_v30 }
 0xd29   :  { %v2938_v13 = vpop.f32.mrf.mxu1 }
 0xd2a   :  { %v3268_v44 = vsel %vm477_vm3, %v7059_v0, %v4561_v47  ;;  %v3269_v10 = vsel %vm477_vm3, %v7065_v56, %v4562_v23 }
 0xd2f   :  { %v3154_v36 = vpop.f32.mrf.mxu3 }
 0xd30   :  { %v4568_v5 = vpack.i.bf16 %v3154_v36, %v3152_v21 }
 0xd31   :  { %v2940_v55 = vpop.f32.mrf.mxu1 }
 0xd32   :  { %v4563_v4 = vpack.i.bf16 %v2940_v55, %v2938_v13  ;;  %4569 = vrot.lane.b32.xlu2 %v4568_v5, %s5205_s16 }
 0xd34   :  { %4564 = vrot.lane.b32.xlu0 %v4563_v4, %s5191_s24 }
 0xd39   :  { %v2943_v18 = vpop.f32.mrf.mxu1 }
 0xd3c   :  { %4574 = vrot.lane.b32.xlu0 %v4573_v62, %s5194_s27 }
 0xd41   :  { %v2945_v20 = vpop.f32.mrf.mxu1 }
 0xd42   :  { %v4578_v14 = vpack.i.bf16 %v2945_v20, %v2943_v18 }
 0xd44   :  { %4589 = vrot.lane.b32.xlu0 %v4588_v16, %s5194_s27  ;;  %4579 = vrot.lane.b32.xlu1 %v4578_v14, %s5191_s24 }
 0xd4c   :  { %4604 = vrot.lane.b32.xlu0 %v4603_v1, %s5194_s27 }
 0xd62   :  { %v3157_v53 = vpop.f32.mrf.mxu3 }
 0xd64   :  { %v2948_v39 = vpop.f32.mrf.mxu1 }
 0xd6a   :  { %v3159_v17 = vpop.f32.mrf.mxu3 }
 0xd6b   :  { %v4583_v48 = vpack.i.bf16 %v3159_v17, %v3157_v53 }
 0xd6c   :  { %v2950_v2 = vpop.f32.mrf.mxu1 }
 0xd6d   :  { %v4593_v3 = vpack.i.bf16 %v2950_v2, %v2948_v39  ;;  %4584 = vrot.lane.b32.xlu2 %v4583_v48, %s5205_s16 }
 0xd6f   :  { %4594 = vrot.lane.b32.xlu1 %v4593_v3, %s5191_s24 }
 0xd72   :  { %v3162_v32 = vpop.f32.mrf.mxu3 }
 0xd74   :  { %v2953_v61 = vpop.f32.mrf.mxu1 }
 0xd7a   :  { %v3164_v8 = vpop.f32.mrf.mxu3 }
 0xd7b   :  { %v4598_v24 = vpack.i.bf16 %v3164_v8, %v3162_v32 }
 0xd7c   :  { %v2955_v11 = vpop.f32.mrf.mxu1 }
 0xd7d   :  { %v4608_v60 = vpack.i.bf16 %v2955_v11, %v2953_v61  ;;  %4599 = vrot.lane.b32.xlu2 %v4598_v24, %s5205_s16 }
 0xd7f   :  { %4609 = vrot.lane.b32.xlu1 %v4608_v60, %s5191_s24 }
 0xd82   :  { %v3167_v50 = vpop.f32.mrf.mxu3 }
 0xd8a   :  { %v3169_v43 = vpop.f32.mrf.mxu3 }
 0xd8b   :  { %v4613_v6 = vpack.i.bf16 %v3169_v43, %v3167_v50 }
 0xd8c   :  { %v4570_v40 = vpop.permute.xlu2 %4569 }
 0xd8d   :  { %4614 = vrot.lane.b32.xlu2 %v4613_v6, %s5205_s16  ;;  %v4572_v26 = vunpack.i.h.bf16 %v4570_v40  ;;  %v4571_v29 = vunpack.i.l.bf16 %v4570_v40 }
 0xda6   :  { %v4565_v31 = vpop.permute.xlu0 %4564 }
 0xda7   :  { %v4567_v25 = vunpack.i.h.bf16 %v4565_v31  ;;  %v4566_v15 = vunpack.i.l.bf16 %v4565_v31 }
 0xda9   :  { %v3277_v46 = vsel %vm1434_vm4, %v3269_v10, %v4567_v25  ;;  %v3276_v37 = vsel %vm1434_vm4, %v3268_v44, %v4566_v15 }
 0xdaa   :  { %v3284_v45 = vsel %vm1443_vm5, %v3276_v37, %v4571_v29  ;;  %v3285_v49 = vsel %vm1443_vm5, %v3277_v46, %v4572_v26 }
 0xdab   :  { %v3292_v58 = vpack.c.bf16 %v3285_v49, %v3284_v45 }
 0xdad   :  { %4328 = vmatmul.msk.bf16.vlgmr.msra.gmra.mxu0 %vm362_vm2, %v3292_v58 }
 0xdae   :  { %v4575_v21 = vpop.permute.xlu0 %4574 }
 0xdaf   :  { %v4577_v36 = vunpack.i.h.bf16 %v4575_v21  ;;  %v4576_v0 = vunpack.i.l.bf16 %v4575_v21 }
 0xdb1   :  { %v3271_v4 = vsel %vm477_vm3, %v7075_v19, %v4577_v36  ;;  %v3270_v18 = vsel %vm477_vm3, %v7071_v22, %v4576_v0 }
 0xdb6   :  { %v4580_v13 = vpop.permute.xlu1 %4579  ;;  %v4590_v17 = vpop.permute.xlu0 %4589 }
 0xdb7   :  { %v4582_v5 = vunpack.i.h.bf16 %v4580_v13  ;;  %v4581_v55 = vunpack.i.l.bf16 %v4580_v13  ;;  %v4592_v48 = vunpack.i.h.bf16 %v4590_v17  ;;  %v4591_v2 = vunpack.i.l.bf16 %v4590_v17 }
 0xdb9   :  { %v3279_v16 = vsel %vm1434_vm4, %v3271_v4, %v4582_v5  ;;  %v3278_v14 = vsel %vm1434_vm4, %v3270_v18, %v4581_v55  ;;  %v3273_v59 = vsel %vm477_vm3, %v7079_v38, %v4592_v48  ;;  %v3272_v32 = vsel %vm477_vm3, %v7077_v52, %v4591_v2 }
 0xdbe   :  { %v4605_v12 = vpop.permute.xlu0 %4604 }
 0xdbf   :  { %v4607_v43 = vunpack.i.h.bf16 %v4605_v12  ;;  %v4606_v6 = vunpack.i.l.bf16 %v4605_v12 }
 0xdc1   :  { %v3275_v47 = vsel %vm477_vm3, %v7083_v34, %v4607_v43  ;;  %v3274_v40 = vsel %vm477_vm3, %v7081_v35, %v4606_v6  ;;  %v4626_v34 = vld [vmem:[%s7506_s8 + $0x1] ss:$0 sm:$0xff] }
 0xdc7   :  { %v4585_v56 = vpop.permute.xlu2 %4584 }
 0xdc8   :  { %v4587_v62 = vunpack.i.h.bf16 %v4585_v56  ;;  %v4586_v20 = vunpack.i.l.bf16 %v4585_v56 }
 0xdca   :  { %v3287_v1 = vsel %vm1443_vm5, %v3279_v16, %v4587_v62  ;;  %v3286_v53 = vsel %vm1443_vm5, %v3278_v14, %v4586_v20 }
 0xdcb   :  { %v3293_v39 = vpack.c.bf16 %v3287_v1, %v3286_v53 }
 0xdcd   :  { %4329 = vmatmul.msk.bf16.gmra.mxu0 %vm362_vm2, %v3293_v39 }
 0xdd7   :  { %v4600_v19 = vpop.permute.xlu2 %4599 }
 0xdd8   :  { %v4602_v51 = vunpack.i.h.bf16 %v4600_v19  ;;  %v4601_v61 = vunpack.i.l.bf16 %v4600_v19 }
 0xde1   :  { %v4595_v3 = vpop.permute.xlu1 %4594 }
 0xde2   :  { %v4597_v41 = vunpack.i.h.bf16 %v4595_v3  ;;  %v4596_v22 = vunpack.i.l.bf16 %v4595_v3 }
 0xde4   :  { %v3281_v8 = vsel %vm1434_vm4, %v3273_v59, %v4597_v41  ;;  %v3280_v24 = vsel %vm1434_vm4, %v3272_v32, %v4596_v22 }
 0xde5   :  { %v3288_v11 = vsel %vm1443_vm5, %v3280_v24, %v4601_v61  ;;  %v3289_v60 = vsel %vm1443_vm5, %v3281_v8, %v4602_v51 }
 0xde6   :  { %v3294_v50 = vpack.c.bf16 %v3289_v60, %v3288_v11 }
 0xde7   :  { %v4615_v38 = vpop.permute.xlu2 %4614 }
 0xde8   :  { %4330 = vmatmul.msk.bf16.gmra.mxu0 %vm362_vm2, %v3294_v50  ;;  %v4617_v31 = vunpack.i.h.bf16 %v4615_v38  ;;  %v4616_v25 = vunpack.i.l.bf16 %v4615_v38 }
 0xdf1   :  { %v4610_v30 = vpop.permute.xlu1 %4609 }
 0xdf2   :  { %v4612_v23 = vunpack.i.h.bf16 %v4610_v30  ;;  %v4611_v52 = vunpack.i.l.bf16 %v4610_v30 }
 0xdf4   :  { %v3283_v15 = vsel %vm1434_vm4, %v3275_v47, %v4612_v23  ;;  %v3282_v44 = vsel %vm1434_vm4, %v3274_v40, %v4611_v52 }
 0xdf5   :  { %v3290_v10 = vsel %vm1443_vm5, %v3282_v44, %v4616_v25  ;;  %v3291_v26 = vsel %vm1443_vm5, %v3283_v15, %v4617_v31 }
 0xdf6   :  { %v3295_v29 = vpack.c.bf16 %v3291_v26, %v3290_v10 }
 0xdf8   :  { %4331 = vmatmul.msk.bf16.gmra.mxu0 %vm362_vm2, %v3295_v29 }
 0xe2a   :  { %v3355_v46 = vpop.f32.mrf.mxu0 }
 0xe2b   :  { %v3356_v37 = vadd.f32 %v4626_v34, %v3355_v46 }
 0xe2d   :  { %v3375_v35 = vadd.f32 %v3356_v37, %v6421_v27 }
 0xe2f   :  { %v3387_v45 = vsel %vm362_vm2, %v3375_v35, 0.0 }
 0xe30   :  { %3388 = vadd.xlane.f32.xlu0 %v3387_v45 }
 0xe32   :  { %v3357_v49 = vpop.f32.mrf.mxu0 }
 0xe33   :  { %v3358_v58 = vadd.f32 %v4626_v34, %v3357_v49  ;;  %v4461_v49 = vld [vmem:[#allocation12 + $0x38] sm:$0xff] }
 0xe34   :  { %3643 = vmatpush.bf16.msra.mxu1 %v4461_v49 }
 0xe35   :  { %v3376_v21 = vadd.f32 %v3358_v58, %v6424_v28  ;;  %v4460_v58 = vld [vmem:[#allocation12 + $0x30] sm:$0xff] }
 0xe37   :  { %v3390_v13 = vsel %vm362_vm2, %v3376_v21, 0.0 }
 0xe38   :  { %3391 = vadd.xlane.f32.xlu1 %v3390_v13  ;;  %3644 = vmatpush.bf16.msra.mxu1 %v4460_v58 }
 0xe4a   :  { %v3360_v36 = vpop.f32.mrf.mxu0 }
 0xe4b   :  { %v3361_v0 = vadd.f32 %v4626_v34, %v3360_v36 }
 0xe4d   :  { %v3377_v5 = vadd.f32 %v3361_v0, %v6439_v7 }
 0xe4f   :  { %v3393_v55 = vsel %vm362_vm2, %v3377_v5, 0.0 }
 0xe50   :  { %3394 = vadd.xlane.f32.xlu2 %v3393_v55 }
 0xe52   :  { %v3362_v56 = vpop.f32.mrf.mxu0 }
 0xe53   :  { %v3363_v4 = vadd.f32 %v4626_v34, %v3362_v56 }
 0xe55   :  { %v3378_v27 = vadd.f32 %v3363_v4, %v6442_v63 }
 0xe57   :  { %v3396_v18 = vsel %vm362_vm2, %v3378_v27, 0.0 }
 0xe58   :  { %3397 = vadd.xlane.f32.xlu0 %v3396_v18 }
 0xe65   :  { %v3365_v62 = vpop.f32.mrf.mxu0 }
 0xe66   :  { %v3366_v20 = vadd.f32 %v4626_v34, %v3365_v62 }
 0xe68   :  { %v3379_v28 = vadd.f32 %v3366_v20, %v6453_v54 }
 0xe6a   :  { %v3399_v16 = vsel %vm362_vm2, %v3379_v28, 0.0 }
 0xe6b   :  { %3400 = vadd.xlane.f32.xlu1 %v3399_v16 }
 0xe6d   :  { %v3367_v14 = vpop.f32.mrf.mxu0 }
 0xe6e   :  { %v3368_v1 = vadd.f32 %v4626_v34, %v3367_v14 }
 0xe70   :  { %v3380_v7 = vadd.f32 %v3368_v1, %v6456_v33 }
 0xe72   :  { %v3402_v53 = vsel %vm362_vm2, %v3380_v7, 0.0 }
 0xe73   :  { %3403 = vadd.xlane.f32.xlu2 %v3402_v53 }
 0xe75   :  { %v3370_v39 = vpop.f32.mrf.mxu0 }
 0xe76   :  { %v3371_v17 = vadd.f32 %v4626_v34, %v3370_v39 }
 0xe78   :  { %v3381_v63 = vadd.f32 %v3371_v17, %v6469_v9 }
 0xe7a   :  { %v3405_v48 = vsel %vm362_vm2, %v3381_v63, 0.0 }
 0xe7b   :  { %3406 = vadd.xlane.f32.xlu2 %v3405_v48 }
 0xe7d   :  { %v3372_v3 = vpop.f32.mrf.mxu0 }
 0xe7e   :  { %v3373_v33 = vadd.f32 %v4626_v34, %v3372_v3 }
 0xe80   :  { %v3382_v9 = vadd.f32 %v3373_v33, %v6472_v57 }
 0xe82   :  { %v3408_v24 = vsel %vm362_vm2, %v3382_v9, 0.0 }
 0xea3   :  { %v3389_v2 = vpop.xlane.xlu0 %3388 }
 0xea4   :  { %v3411_v54 = vmul.f32 %v3389_v2, %v6147_v42 }
 0xea6   :  { %v7150_v19 = vsub.f32 %v3375_v35, %v3411_v54 }
 0xea8   :  { %v3427_v41 = vmul.f32 %v7150_v19, %v7150_v19 }
 0xeaa   :  { %v3435_v22 = vsel %vm362_vm2, %v3427_v41, 0.0  ;;  %v7201_v41 = vld [vmem:[#allocation7 + $0x1] ss:$0 sm:$0xff] }
 0xeab   :  { %v3392_v59 = vpop.xlane.xlu1 %3391  ;;  %3436 = vadd.xlane.f32.xlu0 %v3435_v22 }
 0xeac   :  { %v3412_v32 = vmul.f32 %v3392_v59, %v6147_v42 }
 0xeae   :  { %v7157_v51 = vsub.f32 %v3376_v21, %v3412_v32  ;;  %v4459_v21 = vld [vmem:[#allocation12 + $0x28] sm:$0xff]  ;;  %v7204_v32 = vld [vmem:[#allocation9 + $0x1] ss:$0 sm:$0xff] }
 0xeaf   :  { %3645 = vmatpush.bf16.msra.mxu1 %v4459_v21 }
 0xeb0   :  { %v3428_v61 = vmul.f32 %v7157_v51, %v7157_v51 }
 0xeb2   :  { %v3438_v8 = vsel %vm362_vm2, %v3428_v61, 0.0 }
 0xeb3   :  { %3439 = vadd.xlane.f32.xlu1 %v3438_v8  ;;  %3409 = vadd.xlane.f32.xlu0 %v3408_v24 }
 0xec3   :  { %v3395_v11 = vpop.xlane.xlu2 %3394 }
 0xec4   :  { %v3413_v60 = vmul.f32 %v3395_v11, %v6147_v42 }
 0xec6   :  { %v7164_v50 = vsub.f32 %v3377_v5, %v3413_v60  ;;  %v4458_v5 = vld [vmem:[#allocation12 + $0x20] sm:$0xff] }
 0xec7   :  { %3646 = vmatpush.bf16.msra.mxu1 %v4458_v5 }
 0xec8   :  { %v3429_v12 = vmul.f32 %v7164_v50, %v7164_v50 }
 0xeca   :  { %v3441_v57 = vsel %vm362_vm2, %v3429_v12, 0.0 }
 0xecb   :  { %3442 = vadd.xlane.f32.xlu1 %v3441_v57  ;;  %v3398_v43 = vpop.xlane.xlu0 %3397 }
 0xecc   :  { %v3414_v6 = vmul.f32 %v3398_v43, %v6147_v42 }
 0xece   :  { %v7170_v38 = vsub.f32 %v3378_v27, %v3414_v6 }
 0xed0   :  { %v3430_v30 = vmul.f32 %v7170_v38, %v7170_v38 }
 0xed2   :  { %v3444_v23 = vsel %vm362_vm2, %v3430_v30, 0.0 }
 0xed3   :  { %3445 = vadd.xlane.f32.xlu2 %v3444_v23 }
 0xede   :  { %v3401_v52 = vpop.xlane.xlu1 %3400 }
 0xedf   :  { %v3415_v47 = vmul.f32 %v3401_v52, %v6147_v42 }
 0xee1   :  { %v7176_v40 = vsub.f32 %v3379_v28, %v3415_v47 }
 0xee3   :  { %v3431_v31 = vmul.f32 %v7176_v40, %v7176_v40 }
 0xee5   :  { %v3447_v25 = vsel %vm362_vm2, %v3431_v31, 0.0 }
 0xee6   :  { %v3404_v15 = vpop.xlane.xlu2 %3403  ;;  %3448 = vadd.xlane.f32.xlu0 %v3447_v25 }
 0xee7   :  { %v3416_v44 = vmul.f32 %v3404_v15, %v6147_v42 }
 0xee9   :  { %v7182_v10 = vsub.f32 %v3380_v7, %v3416_v44 }
 0xeeb   :  { %v3432_v26 = vmul.f32 %v7182_v10, %v7182_v10 }
 0xeed   :  { %v3450_v29 = vsel %vm362_vm2, %v3432_v26, 0.0 }
 0xeee   :  { %v3407_v34 = vpop.xlane.xlu2 %3406  ;;  %3451 = vadd.xlane.f32.xlu1 %v3450_v29 }
 0xeef   :  { %v3417_v46 = vmul.f32 %v3407_v34, %v6147_v42 }
 0xef1   :  { %v7188_v37 = vsub.f32 %v3381_v63, %v3417_v46 }
 0xef3   :  { %v3433_v35 = vmul.f32 %v7188_v37, %v7188_v37 }
 0xef5   :  { %v3453_v45 = vsel %vm362_vm2, %v3433_v35, 0.0 }
 0xef6   :  { %3454 = vadd.xlane.f32.xlu2 %v3453_v45 }
 0xf1e   :  { %v3437_v13 = vpop.xlane.xlu0 %3436 }
 0xf1f   :  { %v3459_v36 = vmul.f32 %v3437_v13, %v6147_v42 }
 0xf21   :  { %v3467_v0 = vadd.f32 1e-05, %v3459_v36 }
 0xf23   :  { %4924 = vrsqrt.f32 %v3467_v0  ;;  %vm3481_vm4 = vweird.f32 %v3467_v0 }
 0xf26   :  { %v3440_v55 = vpop.xlane.xlu1 %3439  ;;  %v3410_v56 = vpop.xlane.xlu0 %3409 }
 0xf27   :  { %v3460_v4 = vmul.f32 %v3440_v55, %v6147_v42  ;;  %v3418_v27 = vmul.f32 %v3410_v56, %v6147_v42 }
 0xf29   :  { %v4925_v18 = vpop.eup %4924  ;;  %v3468_v62 = vadd.f32 1e-05, %v3460_v4  ;;  %v7196_v20 = vsub.f32 %v3382_v9, %v3418_v27 }
 0xf2a   :  { %v3476_v28 = vmul.f32 %v4925_v18, %v3467_v0  ;;  %vm3482_vm3 = vweird.f32 %v4925_v18 }
 0xf2b   :  { %4926 = vrsqrt.f32 %v3468_v62  ;;  %v3434_v16 = vmul.f32 %v7196_v20, %v7196_v20  ;;  %vm3483_vm5 = vmor %vm3481_vm4, %vm3482_vm3  ;;  %vm3491_vm8 = vweird.f32 %v3468_v62 }
 0xf2c   :  { %v3477_v14 = vmul.f32 %v4925_v18, %v3476_v28 }
 0xf2d   :  { %v3456_v1 = vsel %vm362_vm2, %v3434_v16, 0.0 }
 0xf2e   :  { %v3478_v7 = vmul.f32 0.5, %v3477_v14  ;;  %3457 = vadd.xlane.f32.xlu0 %v3456_v1 }
 0xf30   :  { %v3479_v53 = vsub.f32 1.5, %v3478_v7 }
 0xf31   :  { %v4927_v39 = vpop.eup %4926 }
 0xf32   :  { %v3480_v17 = vmul.f32 %v4925_v18, %v3479_v53  ;;  %v3486_v63 = vmul.f32 %v4927_v39, %v3468_v62  ;;  %vm3492_vm7 = vweird.f32 %v4927_v39 }
 0xf33   :  { %vm3493_vm9 = vmor %vm3491_vm8, %vm3492_vm7 }
 0xf34   :  { %v3487_v48 = vmul.f32 %v4927_v39, %v3486_v63  ;;  %v3484_v2 = vsel %vm3483_vm5, %v4925_v18, %v3480_v17 }
 0xf35   :  { %v3555_v33 = vmul.f32 %v3484_v2, %v7150_v19 }
 0xf36   :  { %v3488_v54 = vmul.f32 0.5, %v3487_v48 }
 0xf37   :  { %v3566_v9 = vmul.f32 %v7201_v41, %v3555_v33 }
 0xf38   :  { %v3489_v3 = vsub.f32 1.5, %v3488_v54 }
 0xf39   :  { %v7211_v60 = vadd.f32 %v7204_v32, %v3566_v9 }
 0xf3a   :  { %v3490_v22 = vmul.f32 %v4927_v39, %v3489_v3 }
 0xf3c   :  { %v3494_v59 = vsel %vm3493_vm9, %v4927_v39, %v3490_v22 }
 0xf3d   :  { %v3556_v61 = vmul.f32 %v3494_v59, %v7157_v51 }
 0xf3e   :  { %v3443_v8 = vpop.xlane.xlu1 %3442 }
 0xf3f   :  { %v3567_v24 = vmul.f32 %v7201_v41, %v3556_v61  ;;  %v3461_v11 = vmul.f32 %v3443_v8, %v6147_v42 }
 0xf41   :  { %v7214_v19 = vadd.f32 %v7204_v32, %v3567_v24  ;;  %v3469_v12 = vadd.f32 1e-05, %v3461_v11 }
 0xf43   :  { %v3585_v57 = vpack.c.bf16 %v7214_v19, %v7211_v60  ;;  %4928 = vrsqrt.f32 %v3469_v12  ;;  %vm3501_vm11 = vweird.f32 %v3469_v12 }
 0xf45   :  { %4348 = vmatmul.msk.bf16.vlgmr.msra.gmra.mxu1 %vm362_vm2, %v3585_v57  ;;  %v4467_v57 = vld [vmem:[%s7513_s15 + $0x68] sm:$0xff] }
 0xf46   :  { %v3446_v43 = vpop.xlane.xlu2 %3445 }
 0xf47   :  { %v3462_v51 = vmul.f32 %v3446_v43, %v6147_v42 }
 0xf49   :  { %v4929_v6 = vpop.eup %4928  ;;  %v3470_v30 = vadd.f32 1e-05, %v3462_v51  ;;  %v4466_v51 = vld [vmem:[%s7513_s15 + $0x60] sm:$0xff] }
 0xf4a   :  { %v3496_v23 = vmul.f32 %v4929_v6, %v3469_v12  ;;  %vm3502_vm10 = vweird.f32 %v4929_v6  ;;  %v4468_v12 = vld [vmem:[%s7513_s15 + $0x70] sm:$0xff] }
 0xf4b   :  { %4930 = vrsqrt.f32 %v3470_v30  ;;  %vm3503_vm12 = vmor %vm3501_vm11, %vm3502_vm10  ;;  %vm3511_vm14 = vweird.f32 %v3470_v30 }
 0xf4c   :  { %v3497_v52 = vmul.f32 %v4929_v6, %v3496_v23 }
 0xf4e   :  { %v3498_v47 = vmul.f32 0.5, %v3497_v52  ;;  %v4465_v52 = vld [vmem:[%s7513_s15 + $0x58] sm:$0xff] }
 0xf50   :  { %v3499_v31 = vsub.f32 1.5, %v3498_v47 }
 0xf51   :  { %v4931_v25 = vpop.eup %4930 }
 0xf52   :  { %v3500_v15 = vmul.f32 %v4929_v6, %v3499_v31  ;;  %v3506_v44 = vmul.f32 %v4931_v25, %v3470_v30  ;;  %vm3512_vm13 = vweird.f32 %v4931_v25 }
 0xf53   :  { %vm3513_vm15 = vmor %vm3511_vm14, %vm3512_vm13 }
 0xf54   :  { %v3507_v26 = vmul.f32 %v4931_v25, %v3506_v44  ;;  %v3504_v29 = vsel %vm3503_vm12, %v4929_v6, %v3500_v15  ;;  %v4464_v15 = vld [vmem:[%s7513_s15 + $0x50] sm:$0xff] }
 0xf55   :  { %v3557_v35 = vmul.f32 %v3504_v29, %v7164_v50 }
 0xf56   :  { %v3508_v34 = vmul.f32 0.5, %v3507_v26  ;;  %v4463_v26 = vld [vmem:[%s7513_s15 + $0x48] sm:$0xff] }
 0xf57   :  { %v3568_v0 = vmul.f32 %v7201_v41, %v3557_v35  ;;  %v4462_v35 = vld [vmem:[%s7513_s15 + $0x40] sm:$0xff] }
 0xf58   :  { %v3509_v46 = vsub.f32 1.5, %v3508_v34 }
 0xf59   :  { %v3449_v45 = vpop.xlane.xlu0 %3448  ;;  %v7226_v56 = vadd.f32 %v7204_v32, %v3568_v0 }
 0xf5a   :  { %v3510_v49 = vmul.f32 %v4931_v25, %v3509_v46  ;;  %v3463_v58 = vmul.f32 %v3449_v45, %v6147_v42 }
 0xf5c   :  { %v3514_v21 = vsel %vm3513_vm15, %v4931_v25, %v3510_v49  ;;  %v3471_v13 = vadd.f32 1e-05, %v3463_v58 }
 0xf5d   :  { %v3558_v36 = vmul.f32 %v3514_v21, %v7170_v38 }
 0xf5e   :  { %4932 = vrsqrt.f32 %v3471_v13  ;;  %vm3521_vm1 = vweird.f32 %v3471_v13 }
 0xf5f   :  { %v3569_v5 = vmul.f32 %v7201_v41, %v3558_v36 }
 0xf61   :  { %v3452_v55 = vpop.xlane.xlu1 %3451  ;;  %v7229_v50 = vadd.f32 %v7204_v32, %v3569_v5 }
 0xf62   :  { %v3464_v4 = vmul.f32 %v3452_v55, %v6147_v42 }
 0xf63   :  { %v3586_v27 = vpack.c.bf16 %v7229_v50, %v7226_v56 }
 0xf64   :  { %v4933_v18 = vpop.eup %4932  ;;  %v3472_v62 = vadd.f32 1e-05, %v3464_v4 }
 0xf65   :  { %v3516_v38 = vmul.f32 %v4933_v18, %v3471_v13  ;;  %4349 = vmatmul.msk.bf16.gmra.mxu1 %vm362_vm2, %v3586_v27  ;;  %vm3522_vm0 = vweird.f32 %v4933_v18 }
 0xf66   :  { %4934 = vrsqrt.f32 %v3472_v62  ;;  %vm3523_vm6 = vmor %vm3521_vm1, %vm3522_vm0  ;;  %vm3531_vm4 = vweird.f32 %v3472_v62 }
 0xf67   :  { %v3517_v28 = vmul.f32 %v4933_v18, %v3516_v38  ;;  %v4629_v38 = vld [vmem:[#allocation13 + $0x1] ss:$0 sm:$0xff] }
 0xf69   :  { %v3518_v16 = vmul.f32 0.5, %v3517_v28 }
 0xf6b   :  { %v3519_v14 = vsub.f32 1.5, %v3518_v16 }
 0xf6c   :  { %v4935_v1 = vpop.eup %4934 }
 0xf6d   :  { %v3520_v7 = vmul.f32 %v4933_v18, %v3519_v14  ;;  %v3526_v53 = vmul.f32 %v4935_v1, %v3472_v62  ;;  %vm3532_vm3 = vweird.f32 %v4935_v1 }
 0xf6e   :  { %vm3533_vm5 = vmor %vm3531_vm4, %vm3532_vm3 }
 0xf6f   :  { %v3527_v39 = vmul.f32 %v4935_v1, %v3526_v53  ;;  %v3524_v17 = vsel %vm3523_vm6, %v4933_v18, %v3520_v7 }
 0xf70   :  { %v3559_v2 = vmul.f32 %v3524_v17, %v7176_v40  ;;  %v3455_v40 = vpop.xlane.xlu2 %3454 }
 0xf71   :  { %v3528_v63 = vmul.f32 0.5, %v3527_v39  ;;  %v3465_v24 = vmul.f32 %v3455_v40, %v6147_v42 }
 0xf72   :  { %v3570_v22 = vmul.f32 %v7201_v41, %v3559_v2 }
 0xf73   :  { %v3529_v48 = vsub.f32 1.5, %v3528_v63  ;;  %v3473_v11 = vadd.f32 1e-05, %v3465_v24 }
 0xf74   :  { %v7240_v9 = vadd.f32 %v7204_v32, %v3570_v22 }
 0xf75   :  { %v3530_v54 = vmul.f32 %v4935_v1, %v3529_v48  ;;  %4936 = vrsqrt.f32 %v3473_v11  ;;  %vm3541_vm8 = vweird.f32 %v3473_v11 }
 0xf77   :  { %v3534_v3 = vsel %vm3533_vm5, %v4935_v1, %v3530_v54 }
 0xf78   :  { %v3560_v33 = vmul.f32 %v3534_v3, %v7182_v10  ;;  %v4469_v10 = vld [vmem:[%s7513_s15 + $0x78] sm:$0xff] }
 0xf79   :  { %3750 = vmatpush.bf16.msra.mxu2 %v4469_v10 }
 0xf7a   :  { %v3571_v59 = vmul.f32 %v7201_v41, %v3560_v33 }
 0xf7b   :  { %v4937_v43 = vpop.eup %4936 }
 0xf7c   :  { %v7243_v61 = vadd.f32 %v7204_v32, %v3571_v59  ;;  %v3536_v6 = vmul.f32 %v4937_v43, %v3473_v11  ;;  %vm3542_vm7 = vweird.f32 %v4937_v43 }
 0xf7d   :  { %3751 = vmatpush.bf16.msra.mxu2 %v4468_v12  ;;  %vm3543_vm9 = vmor %vm3541_vm8, %vm3542_vm7 }
 0xf7e   :  { %v3587_v8 = vpack.c.bf16 %v7243_v61, %v7240_v9  ;;  %v3537_v30 = vmul.f32 %v4937_v43, %v3536_v6 }
 0xf80   :  { %4350 = vmatmul.msk.bf16.gmra.mxu1 %vm362_vm2, %v3587_v8  ;;  %v3538_v25 = vmul.f32 0.5, %v3537_v30 }
 0xf81   :  { %3752 = vmatpush.bf16.msra.mxu2 %v4467_v57 }
 0xf82   :  { %v3539_v44 = vsub.f32 1.5, %v3538_v25 }
 0xf84   :  { %v3540_v34 = vmul.f32 %v4937_v43, %v3539_v44 }
 0xf85   :  { %3753 = vmatpush.bf16.msra.mxu2 %v4466_v51  ;;  %v4630_v51 = vld [vmem:[#allocation15 + $0x1] ss:$0 sm:$0xff] }
 0xf86   :  { %v3544_v49 = vsel %vm3543_vm9, %v4937_v43, %v3540_v34 }
 0xf87   :  { %v3561_v13 = vmul.f32 %v3544_v49, %v7188_v37 }
 0xf89   :  { %3754 = vmatpush.bf16.msra.mxu2 %v4465_v52  ;;  %v3572_v55 = vmul.f32 %v7201_v41, %v3561_v13 }
 0xf8b   :  { %v7279_v27 = vadd.f32 %v7204_v32, %v3572_v55 }
 0xf8d   :  { %3755 = vmatpush.bf16.msra.mxu2 %v4464_v15 }
 0xf91   :  { %3756 = vmatpush.bf16.msra.mxu2 %v4463_v26 }
 0xf95   :  { %3757 = vmatpush.bf16.msra.mxu2 %v4462_v35 }
 0xfa1   :  { %v3458_v23 = vpop.xlane.xlu0 %3457 }
 0xfa2   :  { %v3466_v47 = vmul.f32 %v3458_v23, %v6147_v42 }
 0xfa4   :  { %v3474_v31 = vadd.f32 1e-05, %v3466_v47 }
 0xfa6   :  { %4938 = vrsqrt.f32 %v3474_v31  ;;  %vm3551_vm11 = vweird.f32 %v3474_v31 }
 0xfac   :  { %v4939_v29 = vpop.eup %4938 }
 0xfad   :  { %v3546_v46 = vmul.f32 %v4939_v29, %v3474_v31  ;;  %vm3552_vm10 = vweird.f32 %v4939_v29 }
 0xfae   :  { %vm3553_vm12 = vmor %vm3551_vm11, %vm3552_vm10 }
 0xfaf   :  { %v3547_v45 = vmul.f32 %v4939_v29, %v3546_v46 }
 0xfb1   :  { %v3548_v58 = vmul.f32 0.5, %v3547_v45 }
 0xfb3   :  { %v3549_v21 = vsub.f32 1.5, %v3548_v58 }
 0xfb5   :  { %v3550_v36 = vmul.f32 %v4939_v29, %v3549_v21 }
 0xfb7   :  { %v3554_v0 = vsel %vm3553_vm12, %v4939_v29, %v3550_v36 }
 0xfb8   :  { %v3562_v5 = vmul.f32 %v3554_v0, %v7196_v20 }
 0xfba   :  { %v3573_v4 = vmul.f32 %v7201_v41, %v3562_v5 }
 0xfbc   :  { %v7282_v18 = vadd.f32 %v7204_v32, %v3573_v4 }
 0xfbe   :  { %v3588_v62 = vpack.c.bf16 %v7282_v18, %v7279_v27 }
 0xfc0   :  { %4351 = vmatmul.msk.bf16.gmra.mxu1 %vm362_vm2, %v3588_v62 }
 0xfc2   :  { %v3648_v37 = vpop.f32.mrf.mxu1 }
 0xfc3   :  { %v3649_v28 = vadd.f32 %v4629_v38, %v3648_v37 }
 0xfc5   :  { %v3668_v14 = vmax.f32 %v3649_v28, 0.0 }
 0xfca   :  { %v3650_v16 = vpop.f32.mrf.mxu1 }
 0xfcb   :  { %v3651_v20 = vadd.f32 %v4629_v38, %v3650_v16 }
 0xfcd   :  { %v3669_v1 = vmax.f32 %v3651_v20, 0.0 }
 0xfcf   :  { %v3676_v7 = vpack.c.bf16 %v3669_v1, %v3668_v14 }
 0xfd1   :  { %3758 = vmatmul.bf16.vlgmr.msra.gmra.mxu2 %v3676_v7 }
 0xfe2   :  { %v3653_v41 = vpop.f32.mrf.mxu1 }
 0xfe3   :  { %v3654_v53 = vadd.f32 %v4629_v38, %v3653_v41 }
 0xfe5   :  { %v3670_v32 = vmax.f32 %v3654_v53, 0.0 }
 0xfea   :  { %v3655_v39 = vpop.f32.mrf.mxu1 }
 0xfeb   :  { %v3656_v17 = vadd.f32 %v4629_v38, %v3655_v39 }
 0xfed   :  { %v3671_v63 = vmax.f32 %v3656_v17, 0.0 }
 0xfef   :  { %v3677_v48 = vpack.c.bf16 %v3671_v63, %v3670_v32 }
 0xff1   :  { %3763 = vmatmul.bf16.gmra.mxu2 %v3677_v48 }
 0xffd   :  { %v3658_v2 = vpop.f32.mrf.mxu1 }
 0xffe   :  { %v3659_v54 = vadd.f32 %v4629_v38, %v3658_v2 }
0x1000   :  { %v3672_v22 = vmax.f32 %v3659_v54, 0.0 }
0x1005   :  { %v3660_v3 = vpop.f32.mrf.mxu1 }
0x1006   :  { %v3661_v33 = vadd.f32 %v4629_v38, %v3660_v3 }
0x1008   :  { %v3673_v59 = vmax.f32 %v3661_v33, 0.0 }
0x100a   :  { %v3678_v8 = vpack.c.bf16 %v3673_v59, %v3672_v22 }
0x100c   :  { %3768 = vmatmul.bf16.gmra.mxu2 %v3678_v8 }
0x103d   :  { %v3663_v40 = vpop.f32.mrf.mxu1 }
0x103e   :  { %v3664_v24 = vadd.f32 %v4629_v38, %v3663_v40 }
0x1040   :  { %v3674_v12 = vmax.f32 %v3664_v24, 0.0 }
0x1045   :  { %v3665_v11 = vpop.f32.mrf.mxu1 }
0x1046   :  { %v3666_v10 = vadd.f32 %v4629_v38, %v3665_v11 }
0x1048   :  { %v3675_v57 = vmax.f32 %v3666_v10, 0.0 }
0x104a   :  { %v3679_v43 = vpack.c.bf16 %v3675_v57, %v3674_v12 }
0x104c   :  { %3773 = vmatmul.bf16.gmra.mxu2 %v3679_v43 }
0x1054   :  { %v3759_v6 = vpop.f32.mrf.mxu2 }
0x1055   :  { %v3760_v30 = vadd.f32 %v4630_v51, %v3759_v6 }
0x1057   :  { %v3779_v23 = vadd.f32 %v3760_v30, %v7211_v60 }
0x1059   :  { %v3791_v52 = vsel %vm362_vm2, %v3779_v23, 0.0 }
0x105a   :  { %3792 = vadd.xlane.f32.xlu1 %v3791_v52 }
0x105c   :  { %v3761_v47 = vpop.f32.mrf.mxu2 }
0x105d   :  { %v3762_v31 = vadd.f32 %v4630_v51, %v3761_v47 }
0x105f   :  { %v3780_v25 = vadd.f32 %v3762_v31, %v7214_v19 }
0x1061   :  { %v3794_v15 = vsel %vm362_vm2, %v3780_v25, 0.0 }
0x1062   :  { %3795 = vadd.xlane.f32.xlu2 %v3794_v15 }
0x1074   :  { %v3764_v44 = vpop.f32.mrf.mxu2 }
0x1075   :  { %v3765_v26 = vadd.f32 %v4630_v51, %v3764_v44 }
0x1077   :  { %v3781_v29 = vadd.f32 %v3765_v26, %v7226_v56 }
0x1079   :  { %v3797_v34 = vsel %vm362_vm2, %v3781_v29, 0.0 }
0x107a   :  { %3798 = vadd.xlane.f32.xlu0 %v3797_v34 }
0x107c   :  { %v3766_v46 = vpop.f32.mrf.mxu2 }
0x107d   :  { %v3767_v35 = vadd.f32 %v4630_v51, %v3766_v46 }
0x107f   :  { %v3782_v60 = vadd.f32 %v3767_v35, %v7229_v50 }
0x1081   :  { %v3800_v45 = vsel %vm362_vm2, %v3782_v60, 0.0 }
0x1082   :  { %3801 = vadd.xlane.f32.xlu1 %v3800_v45 }
0x108f   :  { %v3769_v49 = vpop.f32.mrf.mxu2 }
0x1090   :  { %v3770_v58 = vadd.f32 %v4630_v51, %v3769_v49 }
0x1092   :  { %v3783_v19 = vadd.f32 %v3770_v58, %v7240_v9 }
0x1094   :  { %v3803_v21 = vsel %vm362_vm2, %v3783_v19, 0.0 }
0x1095   :  { %3804 = vadd.xlane.f32.xlu2 %v3803_v21 }
0x1097   :  { %v3771_v13 = vpop.f32.mrf.mxu2 }
0x1098   :  { %v3772_v36 = vadd.f32 %v4630_v51, %v3771_v13 }
0x109a   :  { %v3784_v56 = vadd.f32 %v3772_v36, %v7243_v61 }
0x109c   :  { %v3806_v0 = vsel %vm362_vm2, %v3784_v56, 0.0 }
0x109d   :  { %3807 = vadd.xlane.f32.xlu0 %v3806_v0 }
0x10cd   :  { %v3793_v5 = vpop.xlane.xlu1 %3792 }
0x10ce   :  { %v3815_v50 = vmul.f32 %v3793_v5, %v6147_v42 }
0x10cf   :  { %v3774_v55 = vpop.f32.mrf.mxu2 }
0x10d0   :  { %v7300_v4 = vsub.f32 %v3779_v23, %v3815_v50  ;;  %v3775_v62 = vadd.f32 %v4630_v51, %v3774_v55 }
0x10d2   :  { %v3785_v37 = vadd.f32 %v3775_v62, %v7279_v27  ;;  %v3831_v9 = vmul.f32 %v7300_v4, %v7300_v4 }
0x10d4   :  { %v3839_v38 = vsel %vm362_vm2, %v3831_v9, 0.0  ;;  %v3809_v28 = vsel %vm362_vm2, %v3785_v37, 0.0 }
0x10d5   :  { %v3796_v61 = vpop.xlane.xlu2 %3795  ;;  %3840 = vadd.xlane.f32.xlu0 %v3839_v38  ;;  %3810 = vadd.xlane.f32.xlu1 %v3809_v28 }
0x10d6   :  { %v3816_v16 = vmul.f32 %v3796_v61, %v6147_v42 }
0x10d7   :  { %v3776_v20 = vpop.f32.mrf.mxu2 }
0x10d8   :  { %v7308_v14 = vsub.f32 %v3780_v25, %v3816_v16  ;;  %v3777_v1 = vadd.f32 %v4630_v51, %v3776_v20 }
0x10da   :  { %v3786_v7 = vadd.f32 %v3777_v1, %v7282_v18  ;;  %v3832_v27 = vmul.f32 %v7308_v14, %v7308_v14 }
0x10dc   :  { %v3812_v41 = vsel %vm362_vm2, %v3786_v7, 0.0  ;;  %v3842_v53 = vsel %vm362_vm2, %v3832_v27, 0.0 }
0x10dd   :  { %3813 = vadd.xlane.f32.xlu2 %v3812_v41  ;;  %3843 = vadd.xlane.f32.xlu1 %v3842_v53 }
0x10ed   :  { %v3799_v39 = vpop.xlane.xlu0 %3798 }
0x10ee   :  { %v3817_v17 = vmul.f32 %v3799_v39, %v6147_v42 }
0x10f0   :  { %v7316_v32 = vsub.f32 %v3781_v29, %v3817_v17  ;;  %v4473_v17 = vld [vmem:[%s7515_s17 + $0x18] sm:$0xff] }
0x10f1   :  { %4048 = vmatpush.bf16.msrb.mxu3 %v4473_v17 }
0x10f2   :  { %v3833_v63 = vmul.f32 %v7316_v32, %v7316_v32 }
0x10f4   :  { %v3845_v48 = vsel %vm362_vm2, %v3833_v63, 0.0 }
0x10f5   :  { %v3802_v18 = vpop.xlane.xlu1 %3801  ;;  %3846 = vadd.xlane.f32.xlu2 %v3845_v48 }
0x10f6   :  { %v3818_v2 = vmul.f32 %v3802_v18, %v6147_v42 }
0x10f8   :  { %v7322_v54 = vsub.f32 %v3782_v60, %v3818_v2 }
0x10fa   :  { %v3834_v3 = vmul.f32 %v7322_v54, %v7322_v54 }
0x10fc   :  { %v3848_v33 = vsel %vm362_vm2, %v3834_v3, 0.0 }
0x10fd   :  { %3849 = vadd.xlane.f32.xlu0 %v3848_v33 }
0x1108   :  { %v3805_v22 = vpop.xlane.xlu2 %3804 }
0x1109   :  { %v3819_v59 = vmul.f32 %v3805_v22, %v6147_v42  ;;  %v4472_v22 = vld [vmem:[%s7515_s17 + $0x10] sm:$0xff] }
0x110a   :  { %4049 = vmatpush.bf16.msrb.mxu3 %v4472_v22 }
0x110b   :  { %v7328_v8 = vsub.f32 %v3783_v19, %v3819_v59 }
0x110d   :  { %v3835_v40 = vmul.f32 %v7328_v8, %v7328_v8 }
0x110f   :  { %v3851_v24 = vsel %vm362_vm2, %v3835_v40, 0.0 }
0x1110   :  { %3852 = vadd.xlane.f32.xlu1 %v3851_v24  ;;  %v3808_v11 = vpop.xlane.xlu0 %3807 }
0x1111   :  { %v3820_v10 = vmul.f32 %v3808_v11, %v6147_v42 }
0x1113   :  { %v7334_v12 = vsub.f32 %v3784_v56, %v3820_v10 }
0x1115   :  { %v3836_v57 = vmul.f32 %v7334_v12, %v7334_v12 }
0x1117   :  { %v3854_v43 = vsel %vm362_vm2, %v3836_v57, 0.0 }
0x1118   :  { %3855 = vadd.xlane.f32.xlu2 %v3854_v43 }
0x1148   :  { %v3811_v51 = vpop.xlane.xlu1 %3810  ;;  %v3841_v26 = vpop.xlane.xlu0 %3840 }
0x1149   :  { %v3821_v6 = vmul.f32 %v3811_v51, %v6147_v42  ;;  %v3863_v60 = vmul.f32 %v3841_v26, %v6147_v42 }
0x114b   :  { %v7340_v30 = vsub.f32 %v3785_v37, %v3821_v6  ;;  %v7357_v21 = vadd.f32 1e-05, %v3863_v60  ;;  %v4471_v6 = vld [vmem:[%s7515_s17 + $0x8] sm:$0xff] }
0x114c   :  { %4050 = vmatpush.bf16.msrb.mxu3 %v4471_v6 }
0x114d   :  { %v3837_v23 = vmul.f32 %v7340_v30, %v7340_v30  ;;  %vm3885_vm1 = vweird.f32 %v7357_v21 }
0x114f   :  { %v3857_v52 = vsel %vm362_vm2, %v3837_v23, 0.0 }
0x1150   :  { %v3814_v47 = vpop.xlane.xlu2 %3813  ;;  %3858 = vadd.xlane.f32.xlu0 %v3857_v52  ;;  %v3844_v29 = vpop.xlane.xlu1 %3843 }
0x1151   :  { %v3822_v31 = vmul.f32 %v3814_v47, %v6147_v42  ;;  %v3864_v46 = vmul.f32 %v3844_v29, %v6147_v42  ;;  %v4470_v29 = vld [vmem:[%s7515_s17] sm:$0xff] }
0x1152   :  { %4051 = vmatpush.bf16.msrb.mxu3 %v4470_v29 }
0x1153   :  { %v7346_v25 = vsub.f32 %v3786_v7, %v3822_v31  ;;  %v7355_v19 = vadd.f32 1e-05, %v3864_v46 }
0x1155   :  { %v3838_v15 = vmul.f32 %v7346_v25, %v7346_v25  ;;  %4940 = vrsqrt.f32 %v7355_v19  ;;  %vm3895_vm15 = vweird.f32 %v7355_v19 }
0x1156   :  { %4942 = vrsqrt.f32 %v7357_v21 }
0x1157   :  { %v3860_v44 = vsel %vm362_vm2, %v3838_v15, 0.0 }
0x1158   :  { %3861 = vadd.xlane.f32.xlu1 %v3860_v44 }
0x115b   :  { %v7373_v62 = vpop.eup %4940 }
0x115c   :  { %v7376_v37 = vpop.eup %4942  ;;  %v3890_v28 = vmul.f32 %v7373_v62, %v7355_v19  ;;  %vm3896_vm13 = vweird.f32 %v7373_v62 }
0x115d   :  { %v3880_v61 = vmul.f32 %v7376_v37, %v7357_v21  ;;  %vm3886_vm14 = vweird.f32 %v7376_v37  ;;  %vm7429_vm6 = vmor %vm3895_vm15, %vm3896_vm13 }
0x115e   :  { %v3891_v7 = vmul.f32 %v7373_v62, %v3890_v28  ;;  %vm7435_vm4 = vmor %vm3885_vm1, %vm3886_vm14  ;;  %v4631_v28 = vld [vmem:[%s7509_s11 + $0x1] ss:$0 sm:$0xff] }
0x115f   :  { %v3881_v41 = vmul.f32 %v7376_v37, %v3880_v61 }
0x1160   :  { %v3892_v48 = vmul.f32 0.5, %v3891_v7 }
0x1161   :  { %v3882_v2 = vmul.f32 0.5, %v3881_v41 }
0x1162   :  { %v3893_v40 = vsub.f32 1.5, %v3892_v48 }
0x1163   :  { %v3883_v57 = vsub.f32 1.5, %v3882_v2 }
0x1164   :  { %v3894_v47 = vmul.f32 %v7373_v62, %v3893_v40 }
0x1165   :  { %v3884_v15 = vmul.f32 %v7376_v37, %v3883_v57 }
0x1166   :  { %v3898_v60 = vsel %vm7429_vm6, %v7373_v62, %v3894_v47 }
0x1167   :  { %v3888_v21 = vsel %vm7435_vm4, %v7376_v37, %v3884_v15 }
0x1168   :  { %v3847_v34 = vpop.xlane.xlu2 %3846  ;;  %v3959_v61 = vmul.f32 %v3888_v21, %v7300_v4 }
0x1169   :  { %v3865_v45 = vmul.f32 %v3847_v34, %v6147_v42 }
0x116b   :  { %v7359_v36 = vadd.f32 1e-05, %v3865_v45 }
0x116d   :  { %4944 = vrsqrt.f32 %v7359_v36  ;;  %vm3905_vm5 = vweird.f32 %v7359_v36 }
0x1170   :  { %v3850_v35 = vpop.xlane.xlu0 %3849 }
0x1171   :  { %v3866_v49 = vmul.f32 %v3850_v35, %v6147_v42 }
0x1173   :  { %v7362_v0 = vadd.f32 1e-05, %v3866_v49  ;;  %v7378_v9 = vpop.eup %4944 }
0x1174   :  { %v3900_v16 = vmul.f32 %v7378_v9, %v7359_v36  ;;  %vm3906_vm0 = vweird.f32 %v7378_v9  ;;  %v4633_v36 = vld [vmem:[%s7516_s18] ss:$0 sm:$0xff] }
0x1175   :  { %4946 = vrsqrt.f32 %v7362_v0  ;;  %vm7443_vm7 = vmor %vm3905_vm5, %vm3906_vm0  ;;  %vm3915_vm8 = vweird.f32 %v7362_v0 }
0x1176   :  { %v3901_v53 = vmul.f32 %v7378_v9, %v3900_v16 }
0x1178   :  { %v3902_v3 = vmul.f32 0.5, %v3901_v53  ;;  %v4632_v53 = vld [vmem:[#allocation10 + $0x1] ss:$0 sm:$0xff] }
0x117a   :  { %v3903_v43 = vsub.f32 1.5, %v3902_v3 }
0x117b   :  { %v7381_v38 = vpop.eup %4946 }
0x117c   :  { %v3910_v1 = vmul.f32 %v7381_v38, %v7362_v0  ;;  %v3904_v44 = vmul.f32 %v7378_v9, %v3903_v43  ;;  %vm3916_vm3 = vweird.f32 %v7381_v38  ;;  %v3960_v0 = vmul.f32 %v3898_v60, %v7308_v14 }
0x117d   :  { %vm7455_vm9 = vmor %vm3915_vm8, %vm3916_vm3 }
0x117e   :  { %v3911_v63 = vmul.f32 %v7381_v38, %v3910_v1  ;;  %v3971_v16 = vmul.f32 %v4631_v28, %v3960_v0 }
0x1180   :  { %v3912_v59 = vmul.f32 0.5, %v3911_v63  ;;  %v3982_v48 = vadd.f32 %v4632_v53, %v3971_v16 }
0x1182   :  { %v3913_v23 = vsub.f32 1.5, %v3912_v59  ;;  %v3990_v59 = vsel %vm362_vm2, %v3982_v48, 0.0 }
0x1183   :  { %v3853_v58 = vpop.xlane.xlu1 %3852 }
0x1184   :  { %v3867_v56 = vmul.f32 %v3853_v58, %v6147_v42  ;;  %v3914_v46 = vmul.f32 %v7381_v38, %v3913_v23 }
0x1186   :  { %v7368_v50 = vadd.f32 1e-05, %v3867_v56 }
0x1188   :  { %4948 = vrsqrt.f32 %v7368_v50  ;;  %vm3925_vm11 = vweird.f32 %v7368_v50 }
0x118b   :  { %v3856_v13 = vpop.xlane.xlu2 %3855 }
0x118c   :  { %v3868_v5 = vmul.f32 %v3856_v13, %v6147_v42  ;;  %v3908_v13 = vsel %vm7443_vm7, %v7378_v9, %v3904_v44 }
0x118d   :  { %v3961_v14 = vmul.f32 %v3908_v13, %v7316_v32 }
0x118e   :  { %v7371_v55 = vadd.f32 1e-05, %v3868_v5  ;;  %v7389_v20 = vpop.eup %4948 }
0x118f   :  { %v3920_v39 = vmul.f32 %v7389_v20, %v7368_v50  ;;  %vm3926_vm10 = vweird.f32 %v7389_v20  ;;  %v3972_v17 = vmul.f32 %v4631_v28, %v3961_v14 }
0x1190   :  { %4950 = vrsqrt.f32 %v7371_v55  ;;  %vm3927_vm13 = vmor %vm3925_vm11, %vm3926_vm10  ;;  %vm3935_vm14 = vweird.f32 %v7371_v55 }
0x1191   :  { %v3921_v33 = vmul.f32 %v7389_v20, %v3920_v39  ;;  %v3970_v39 = vmul.f32 %v4631_v28, %v3959_v61  ;;  %v3983_v3 = vadd.f32 %v4632_v53, %v3972_v17 }
0x1193   :  { %v3922_v51 = vmul.f32 0.5, %v3921_v33  ;;  %v3981_v2 = vadd.f32 %v4632_v53, %v3970_v39 }
0x1195   :  { %v3923_v26 = vsub.f32 1.5, %v3922_v51 }
0x1196   :  { %v7394_v27 = vpop.eup %4950 }
0x1197   :  { %v3930_v18 = vmul.f32 %v7394_v27, %v7371_v55  ;;  %v3924_v56 = vmul.f32 %v7389_v20, %v3923_v26  ;;  %vm3936_vm12 = vweird.f32 %v7394_v27 }
0x1198   :  { %vm3937_vm15 = vmor %vm3935_vm14, %vm3936_vm12 }
0x1199   :  { %v3931_v24 = vmul.f32 %v7394_v27, %v3930_v18 }
0x119b   :  { %v3932_v31 = vmul.f32 0.5, %v3931_v24 }
0x119d   :  { %v3933_v45 = vsub.f32 1.5, %v3932_v31 }
0x119f   :  { %v3934_v37 = vmul.f32 %v7394_v27, %v3933_v45 }
0x11a1   :  { %v3938_v7 = vsel %vm3937_vm15, %v7394_v27, %v3934_v37 }
0x11a2   :  { %v3964_v55 = vmul.f32 %v3938_v7, %v7334_v12  ;;  %v3992_v12 = vsel %vm362_vm2, %v3983_v3, 0.0 }
0x11a4   :  { %v3975_v40 = vmul.f32 %v4631_v28, %v3964_v55 }
0x11c3   :  { %v3859_v11 = vpop.xlane.xlu0 %3858 }
0x11c4   :  { %v3869_v10 = vmul.f32 %v3859_v11, %v6147_v42 }
0x11c6   :  { %v7415_v52 = vadd.f32 1e-05, %v3869_v10  ;;  %v3989_v10 = vsel %vm362_vm2, %v3981_v2, 0.0 }
0x11c7   :  { %v3991_v51 = vadd.f32 %v3990_v59, %v3989_v10 }
0x11c8   :  { %4952 = vrsqrt.f32 %v7415_v52  ;;  %vm3945_vm1 = vweird.f32 %v7415_v52 }
0x11c9   :  { %v3993_v47 = vadd.f32 %v3992_v12, %v3991_v51 }
0x11cb   :  { %v3862_v49 = vpop.xlane.xlu1 %3861 }
0x11cc   :  { %v3870_v19 = vmul.f32 %v3862_v49, %v6147_v42  ;;  %v3918_v42 = vsel %vm7455_vm9, %v7381_v38, %v3914_v46  ;;  %v3928_v38 = vsel %vm3927_vm13, %v7389_v20, %v3924_v56 }
0x11cd   :  { %v3962_v1 = vmul.f32 %v3918_v42, %v7322_v54  ;;  %v3963_v4 = vmul.f32 %v3928_v38, %v7328_v8 }
0x11ce   :  { %v4953_v5 = vpop.eup %4952  ;;  %v3878_v62 = vadd.f32 1e-05, %v3870_v19 }
0x11cf   :  { %v3940_v9 = vmul.f32 %v4953_v5, %v7415_v52  ;;  %vm3946_vm0 = vweird.f32 %v4953_v5  ;;  %v3973_v20 = vmul.f32 %v4631_v28, %v3962_v1  ;;  %v3974_v27 = vmul.f32 %v4631_v28, %v3963_v4 }
0x11d0   :  { %4954 = vrsqrt.f32 %v3878_v62  ;;  %vm3947_vm6 = vmor %vm3945_vm1, %vm3946_vm0  ;;  %v3986_v52 = vadd.f32 %v4632_v53, %v3975_v40  ;;  %vm3955_vm4 = vweird.f32 %v3878_v62 }
0x11d1   :  { %v3941_v50 = vmul.f32 %v4953_v5, %v3940_v9  ;;  %v3984_v8 = vadd.f32 %v4632_v53, %v3973_v20  ;;  %v3985_v57 = vadd.f32 %v4632_v53, %v3974_v27 }
0x11d2   :  { %v3998_v29 = vsel %vm362_vm2, %v3986_v52, 0.0 }
0x11d3   :  { %v3942_v41 = vmul.f32 0.5, %v3941_v50  ;;  %v3994_v23 = vsel %vm362_vm2, %v3984_v8, 0.0  ;;  %v3996_v15 = vsel %vm362_vm2, %v3985_v57, 0.0 }
0x11d5   :  { %v3943_v32 = vsub.f32 1.5, %v3942_v41 }
0x11d6   :  { %v4955_v63 = vpop.eup %4954 }
0x11d7   :  { %v3944_v18 = vmul.f32 %v4953_v5, %v3943_v32  ;;  %v3950_v54 = vmul.f32 %v4955_v63, %v3878_v62  ;;  %vm3956_vm3 = vweird.f32 %v4955_v63 }
0x11d8   :  { %vm3957_vm5 = vmor %vm3955_vm4, %vm3956_vm3 }
0x11d9   :  { %v3948_v33 = vsel %vm3947_vm6, %v4953_v5, %v3944_v18  ;;  %v3951_v22 = vmul.f32 %v4955_v63, %v3950_v54 }
0x11da   :  { %v3965_v24 = vmul.f32 %v3948_v33, %v7340_v30  ;;  %v3995_v30 = vadd.f32 %v3994_v23, %v3993_v47 }
0x11db   :  { %v3952_v11 = vmul.f32 0.5, %v3951_v22 }
0x11dc   :  { %v3976_v43 = vmul.f32 %v4631_v28, %v3965_v24  ;;  %v3997_v46 = vadd.f32 %v3996_v15, %v3995_v30 }
0x11dd   :  { %v3953_v6 = vsub.f32 1.5, %v3952_v11 }
0x11de   :  { %v3987_v44 = vadd.f32 %v4632_v53, %v3976_v43  ;;  %v3999_v45 = vadd.f32 %v3998_v29, %v3997_v46 }
0x11df   :  { %v3954_v31 = vmul.f32 %v4955_v63, %v3953_v6 }
0x11e0   :  { %v4000_v35 = vsel %vm362_vm2, %v3987_v44, 0.0 }
0x11e1   :  { %v3958_v26 = vsel %vm3957_vm5, %v4955_v63, %v3954_v31  ;;  %v4001_v58 = vadd.f32 %v4000_v35, %v3999_v45 }
0x11e2   :  { %v3966_v34 = vmul.f32 %v3958_v26, %v7346_v25 }
0x11e4   :  { %v3977_v60 = vmul.f32 %v4631_v28, %v3966_v34 }
0x11e6   :  { %v3988_v49 = vadd.f32 %v4632_v53, %v3977_v60 }
0x11e8   :  { %v4002_v19 = vsel %vm362_vm2, %v3988_v49, 0.0 }
0x11e9   :  { %v4003_v21 = vadd.f32 %v4002_v19, %v4001_v58 }
0x11eb   :  { %v4004_v13 = vpack.c.bf16 %v4003_v21, %v4003_v21 }
0x11ed   :  { %4417 = vmatmul.msk.bf16.vlgmr.msrb.gmra.mxu3 %vm362_vm2, %v4004_v13 }
0x1270   :  { %v4053_v56 = vpop.f32.mrf.mxu3 }
0x1271   :  { %v4054_v5 = vadd.f32 %v4633_v36, %v4053_v56 }
0x1273   :  { %4057 = vst [vmem:[%s7517_s19] sm:$0xff] %v4054_v5 }
0x1278   :  { %v4055_v25 = vpop.f32.mrf.mxu3 }
0x1279   :  { %4062 = vsyncpa [#allocation3], 1 }
0x127a   :  { %4063 = vsyncpa [#allocation5], 1 }
0x127b   :  { %4064 = vsyncpa [#allocation8], 1 }
0x127c   :  { %4065 = vsyncpa [#allocation11], 1 }
0x127d   :  { %4066 = vsyncpa [#allocation14], 1 }

</bundles_post_ra>
